<compile_context>
chip_gen: v5e
topology: v5e:2x2
jax: 0.10.0
libtpu: 0.0.40
codegen_flags: <defaults>
</compile_context>

<pallas_src>
import functools

import jax
import jax.numpy as jnp
import numpy as np
from jax import lax
from jax.experimental import pallas as pl
from jax.experimental.pallas import tpu as pltpu

S = 8             # words per sentence
W = 8             # chars per word
C = 32            # char embedding dim
H = 32            # word/sentence hidden dim
NUM_CHARS = 50    # num_embedding_chars
NCP = 64          # char vocab padded to a power of two (ids < 64 stay exact everywhere)
WC = W * C        # 256: wide char-embedding lanes per (product, word) row
WN = W * NCP      # 512: wide one-hot lanes per (product, word) row
OUT_LANES = 128   # packed lane-dense kernel output width
META_LANES = 16   # packed int32 input lanes: [ids(8) | word_len(1) | sen_len(1) | pad(6)]


# ----------------------------------------------------------------------------
# BaseModel kernel: one grid step per tile of TB products.
#   rows  = (product, word) pairs          (PS = TB*S rows)
#   lanes = chars-within-word x emb dim    (wide layout)
# ----------------------------------------------------------------------------
def _basemodel_kernel(meta_ref, embblk_ref, wcblk_ref, vcblk_ref, attrep_ref,
                      wpblk_ref, ws_ref, bc_ref, vecs_ref,
                      grpT_ref, grp_ref, wsel_ref, wsel2_ref,
                      out_ref):
    f32 = jnp.float32
    bf16 = jnp.bfloat16
    PS = meta_ref.shape[0]          # (product, word) rows in this tile
    P = out_ref.shape[0]            # products in this tile
    neg_inf = jnp.float32(-1e30)

    meta = meta_ref[...]                               # (PS, 16) int32
    ids = meta[:, :W]                                  # char ids per row
    wlen = meta[:, W:W + 1]                            # chars per word
    slenf = meta[:, W + 1:W + 2].astype(f32)           # words per sentence (per row)

    # ---- embedding gather: exact one-hot built with VPU compares + one bf16 matmul ----
    # onehot[i, w*NCP + k] = (ids[i, w] == k);  e_wide = onehot @ kron(I_W, emb_table)
    kpat = lax.broadcasted_iota(jnp.int32, (1, NCP), 1)
    onehot = jnp.concatenate(
        [(ids[:, w:w + 1] == kpat).astype(f32) for w in range(W)], axis=-1)  # (PS, WN)
    e_wide = jnp.dot(onehot.astype(bf16), embblk_ref[...],
                     preferred_element_type=f32)                             # (PS, WC)

    # ---- char-level scoring + masked softmax, vectorized over all rows ----
    h = jnp.tanh(jnp.dot(e_wide.astype(bf16), wcblk_ref[...],
                         preferred_element_type=f32) + bc_ref[...])          # (PS, WC)
    sc = jnp.dot(h.astype(bf16), vcblk_ref[...],
                 preferred_element_type=f32)                                 # (PS, W)
    wmask = (lax.broadcasted_iota(jnp.int32, (PS, W), 1) < wlen).astype(f32)
    sc_m = jnp.where(wmask > 0, sc, neg_inf)
    ex = jnp.exp(sc_m - jnp.max(sc_m, axis=-1, keepdims=True)) * wmask
    att = ex / jnp.maximum(jnp.sum(ex, axis=-1, keepdims=True), 1e-9)        # (PS, W)

    # ---- word / sentence projections; wv is folded into wpblk = kron(1_W, Wp) ----
    att_wide = jnp.dot(att.astype(bf16), attrep_ref[...],
                       preferred_element_type=f32)                           # (PS, WC)
    bp = vecs_ref[0:1, :]
    bs = vecs_ref[1:2, :]
    vs = vecs_ref[2:3, :]
    wh = jnp.tanh(jnp.dot((att_wide * e_wide).astype(bf16), wpblk_ref[...],
                          preferred_element_type=f32) + bp)                  # (PS, H)
    hs = jnp.tanh(jnp.dot(wh.astype(bf16), ws_ref[...],
                          preferred_element_type=f32) + bs)                  # (PS, H)
    # word score: VPU multiply + lane reduce instead of an N=1 MXU matmul
    ss = jnp.sum(hs * vs, axis=-1, keepdims=True)                            # (PS, 1)

    # ---- sentence-level masked softmax in (product-row, word-lane) layout ----
    wsel = wsel_ref[...]                                                     # (PS, S) 0/1
    grpT = grpT_ref[...]                                                     # (P, PS) 0/1
    ps16 = jnp.dot(grpT, jnp.concatenate([ss * wsel, slenf * wsel], axis=-1),
                   preferred_element_type=f32)                               # (P, 2S)
    ss_ps = ps16[:, :S]
    slen_ps = ps16[:, S:2 * S]
    smask = (lax.broadcasted_iota(jnp.int32, (P, S), 1).astype(f32)
             < slen_ps).astype(f32)
    ss_m = jnp.where(smask > 0, ss_ps, neg_inf)
    sex = jnp.exp(ss_m - jnp.max(ss_m, axis=-1, keepdims=True)) * smask
    satt = sex / jnp.maximum(jnp.sum(sex, axis=-1, keepdims=True), 1e-9)     # (P, S)

    # satt back to row layout (one scalar per (product, word) row)
    satt_rows = jnp.sum(jnp.dot(grp_ref[...], satt, preferred_element_type=f32) * wsel,
                        axis=-1, keepdims=True)                              # (PS, 1)

    # ---- single fused f32 (P, PS) @ (PS, 128) matmul writes the whole output slab:
    #      lanes [senvec(H) | satt(S) | watt(S*W) | pad(24)] ----
    watt_rows = jnp.concatenate([att] * W, axis=-1) * wsel2_ref[...]         # (PS, S*W)
    rhs = jnp.concatenate(
        [satt_rows * wh, satt_rows * wsel, watt_rows,
         jnp.zeros((PS, OUT_LANES - H - S - S * W), f32)], axis=-1)          # (PS, 128)
    out_ref[...] = jnp.dot(grpT, rhs, preferred_element_type=f32)


# ----------------------------------------------------------------------------
# Constant operands (built once, not per grid step / per call).
# ----------------------------------------------------------------------------
@functools.lru_cache(maxsize=8)
def _structural_consts(tb):
    """Grid-invariant 0/1 indicator operands for a tile of `tb` products."""
    ps = tb * S
    rows = np.arange(ps)
    grpT = (rows[None, :] // S == np.arange(tb)[:, None]).astype(np.float32)   # (tb, ps)
    grp = np.ascontiguousarray(grpT.T)                                          # (ps, tb)
    wsel = ((rows % S)[:, None] == np.arange(S)[None, :]).astype(np.float32)    # (ps, S)
    wsel2 = ((rows % S)[:, None] ==
             (np.arange(S * W)[None, :] // W)).astype(np.float32)               # (ps, S*W)
    attrep = (np.arange(W)[:, None] ==
              (np.arange(WC)[None, :] // C)).astype(np.float32)                 # (W, WC)
    return (jnp.asarray(grpT), jnp.asarray(grp), jnp.asarray(wsel),
            jnp.asarray(wsel2), jnp.asarray(attrep, dtype=jnp.bfloat16))


def pack_params(params):
    """Block-diagonal / packed weight operands; build once and reuse across calls."""
    f32 = jnp.float32
    bf16 = jnp.bfloat16
    eye_w = jnp.eye(W, dtype=f32)
    table_pad = jnp.zeros((NCP, C), f32).at[:NUM_CHARS].set(params["char_emb"])
    return dict(
        embblk=jnp.kron(eye_w, table_pad).astype(bf16),                       # (WN, WC)
        wcblk=jnp.kron(eye_w, params["Wc"]).astype(bf16),                     # (WC, WC)
        vcblk=jnp.kron(eye_w, params["vc"]).astype(bf16),                     # (WC, W)
        wpblk=jnp.kron(jnp.ones((W, 1), f32), params["Wp"]).astype(bf16),     # (WC, H)
        ws=params["Ws"].astype(bf16),                                         # (H, H)
        bc_t=jnp.tile(params["bc"].astype(f32), (1, W)),                      # (1, WC)
        vecs=(jnp.zeros((8, H), f32)                                          # bp/bs/vs
              .at[0].set(params["bp"][0])
              .at[1].set(params["bs"][0])
              .at[2].set(params["vs"][:, 0])),
    )


# ----------------------------------------------------------------------------
# Wrapper: tiling, packed int32 inputs, output unpack.
# ----------------------------------------------------------------------------
def basemodel_forward(params, products, sen_lens, word_lens,
                      max_tile=128, packed=None):
    """products: int32 [B, S, W]; sen_lens: int32 [B]; word_lens: int32 [B, S]."""
    if packed is None:
        packed = pack_params(params)
    B = products.shape[0]
    if B <= max_tile:
        tb, bp_ = B, B
    else:
        tb = max_tile
        bp_ = ((B + tb - 1) // tb) * tb
    npad = bp_ - B
    prod_p = jnp.pad(products.astype(jnp.int32), ((0, npad), (0, 0), (0, 0)))
    slen_p = jnp.pad(sen_lens.astype(jnp.int32), ((0, npad),))
    wlen_p = jnp.pad(word_lens.astype(jnp.int32), ((0, npad), (0, 0)))

    # one lane-dense int32 operand per tile: [ids(8) | word_len | sen_len | pad]
    ps_total = bp_ * S
    meta = jnp.concatenate(
        [prod_p.reshape(ps_total, W),
         wlen_p.reshape(ps_total, 1),
         jnp.repeat(slen_p, S).reshape(ps_total, 1),
         jnp.zeros((ps_total, META_LANES - W - 2), jnp.int32)], axis=-1)

    grpT, grp, wsel, wsel2, attrep = _structural_consts(tb)

    ps = tb * S
    inv = lambda b: (0, 0)    # grid-invariant operands: DMA'd once across the grid
    out = pl.pallas_call(
        _basemodel_kernel,
        out_shape=jax.ShapeDtypeStruct((bp_, OUT_LANES), jnp.float32),
        grid=(bp_ // tb,),
        in_specs=[
            pl.BlockSpec((ps, META_LANES), lambda b: (b, 0)),   # packed int32 inputs
            pl.BlockSpec((WN, WC), inv),                        # kron(I_W, emb table) bf16
            pl.BlockSpec((WC, WC), inv),                        # kron(I_W, Wc)        bf16
            pl.BlockSpec((WC, W), inv),                         # kron(I_W, vc)        bf16
            pl.BlockSpec((W, WC), inv),                         # att lane expander    bf16
            pl.BlockSpec((WC, H), inv),                         # kron(1_W, Wp)        bf16
            pl.BlockSpec((H, H), inv),                          # Ws                   bf16
            pl.BlockSpec((1, WC), inv),                         # tiled bc             f32
            pl.BlockSpec((8, H), inv),                          # packed bp/bs/vs      f32
            pl.BlockSpec((tb, ps), inv),                        # grpT                 f32
            pl.BlockSpec((ps, tb), inv),                        # grp                  f32
            pl.BlockSpec((ps, S), inv),                         # wsel                 f32
            pl.BlockSpec((ps, S * W), inv),                     # wsel2                f32
        ],
        out_specs=pl.BlockSpec((tb, OUT_LANES), lambda b: (b, 0)),
        compiler_params=pltpu.CompilerParams(
            dimension_semantics=("parallel",),                  # independent batch tiles
            vmem_limit_bytes=32 * 1024 * 1024),                 # covers v5e 16 MiB default
    )(meta, packed["embblk"], packed["wcblk"], packed["vcblk"], attrep,
      packed["wpblk"], packed["ws"], packed["bc_t"], packed["vecs"],
      grpT, grp, wsel, wsel2)

    out = out[:B]
    sentence_vectors = out[:, :H]
    sen_att_scores = out[:, H:H + S]
    word_att_scores = out[:, H + S:H + S + S * W].reshape(B, S, W)
    return sentence_vectors, (word_att_scores, sen_att_scores)


# ----------------------------------------------------------------------------
# TripletCharWordModel.forward
# ----------------------------------------------------------------------------
def triplet_charword_forward(params, products, sen_lens, word_lens,
                             is_predict=False, packed=None):
    sentence_vectors, (word_att_scores, sen_att_scores) = basemodel_forward(
        params, products, sen_lens, word_lens, packed=packed)
    if not is_predict:
        b = products.shape[0]
        batch_size = b // 3
        # torch.split(x, batch_size, dim=0): chunks of `batch_size` rows (last may be ragged)
        n_chunks = -(-b // batch_size)
        # TODO(synk): compute_custom_loss / penalty_ratio branch is not defined in the
        # reference snippet; only the plain triplet split is implemented.
        return tuple(sentence_vectors[i * batch_size:(i + 1) * batch_size]
                     for i in range(n_chunks))
    # predict mode: exp(-||anchor - candidate||_2); tiny op, done in plain jnp.
    anchor = sentence_vectors[:1]
    cand = sentence_vectors[1:]
    diff = cand - anchor
    return jnp.exp(-jnp.sqrt(jnp.sum(diff * diff, axis=-1)))


# ----------------------------------------------------------------------------
# Pure-JAX reference (same math) for a correctness self-check.
# ----------------------------------------------------------------------------
def basemodel_reference(params, products, sen_lens, word_lens):
    hi = jax.lax.Precision.HIGHEST
    emb = params["char_emb"][products]                                   # [B,S,W,C]
    h = jnp.tanh(jnp.einsum('bswc,cd->bswd', emb, params["Wc"], precision=hi)
                 + params["bc"][0])
    sc = jnp.einsum('bswd,d->bsw', h, params["vc"][:, 0], precision=hi)
    wmask = (jnp.arange(W)[None, None, :] < word_lens[:, :, None]).astype(jnp.float32)
    sc_m = jnp.where(wmask > 0, sc, -1e30)
    ex = jnp.exp(sc_m - sc_m.max(-1, keepdims=True)) * wmask
    att = ex / jnp.maximum(ex.sum(-1, keepdims=True), 1e-9)
    wv = jnp.einsum('bsw,bswc->bsc', att, emb, precision=hi)
    wh = jnp.tanh(jnp.einsum('bsc,cd->bsd', wv, params["Wp"], precision=hi)
                  + params["bp"][0])
    hs = jnp.tanh(jnp.einsum('bsd,de->bse', wh, params["Ws"], precision=hi)
                  + params["bs"][0])
    ss = jnp.einsum('bse,e->bs', hs, params["vs"][:, 0], precision=hi)
    smask = (jnp.arange(S)[None, :] < sen_lens[:, None]).astype(jnp.float32)
    ss_m = jnp.where(smask > 0, ss, -1e30)
    sex = jnp.exp(ss_m - ss_m.max(-1, keepdims=True)) * smask
    satt = sex / jnp.maximum(sex.sum(-1, keepdims=True), 1e-9)
    senvec = jnp.einsum('bs,bsd->bd', satt, wh, precision=hi)
    return senvec, att, satt


def init_params(key):
    ks = jax.random.split(key, 6)
    s = 0.1
    return dict(
        char_emb=s * jax.random.normal(ks[0], (NUM_CHARS, C), jnp.float32),
        Wc=s * jax.random.normal(ks[1], (C, C), jnp.float32),
        bc=jnp.zeros((1, C), jnp.float32),
        vc=s * jax.random.normal(ks[2], (C, 1), jnp.float32),
        Wp=s * jax.random.normal(ks[3], (C, H), jnp.float32),
        bp=jnp.zeros((1, H), jnp.float32),
        Ws=s * jax.random.normal(ks[4], (H, H), jnp.float32),
        bs=jnp.zeros((1, H), jnp.float32),
        vs=s * jax.random.normal(ks[5], (C, 1), jnp.float32),
    )


if __name__ == "__main__":
    key = jax.random.PRNGKey(0)
    pkey, dkey, lkey, wkey = jax.random.split(key, 4)
    params = init_params(pkey)
    packed = pack_params(params)   # param-derived constants built ONCE, reused below

    # training-mode batch: 2 triplets -> 6 products, each S words x W chars
    B = 6
    products = jax.random.randint(dkey, (B, S, W), 0, NUM_CHARS, dtype=jnp.int32)
    sen_lens = jax.random.randint(lkey, (B,), 1, S + 1, dtype=jnp.int32)
    word_lens = jax.random.randint(wkey, (B, S), 1, W + 1, dtype=jnp.int32)
    # padded words (beyond sentence length) have zero char length
    word_lens = jnp.where(jnp.arange(S)[None, :] < sen_lens[:, None], word_lens, 0)

    # kernel vs pure-JAX reference (bf16 MXU operands keep errors ~1e-3 here)
    sv, (watt, satt) = basemodel_forward(params, products, sen_lens, word_lens,
                                         packed=packed)
    jax.block_until_ready((sv, watt, satt))
    sv_r, watt_r, satt_r = basemodel_reference(params, products, sen_lens, word_lens)
    assert bool(jnp.allclose(sv, sv_r, atol=5e-3, rtol=5e-3))
    assert bool(jnp.allclose(watt, watt_r, atol=5e-3, rtol=5e-3))
    assert bool(jnp.allclose(satt, satt_r, atol=5e-3, rtol=5e-3))

    # training mode: split into (anchor, positive, negative)
    anchor, pos, neg = triplet_charword_forward(
        params, products, sen_lens, word_lens, is_predict=False, packed=packed)
    jax.block_until_ready((anchor, pos, neg))
    assert anchor.shape == (2, H) and pos.shape == (2, H) and neg.shape == (2, H)

    # predict mode: 1 anchor + 3 candidates
    scores = triplet_charword_forward(
        params, products[:4], sen_lens[:4], word_lens[:4],
        is_predict=True, packed=packed)
    jax.block_until_ready(scores)
    assert scores.shape == (3,)
    assert bool(jnp.all(jnp.isfinite(scores)))

    print("KERNEL_OK")
</pallas_src>

<mosaic_0001>
module attributes {stable_mosaic.version = 11 : i64} {
  func.func @_basemodel_kernel(%arg0: i32, %arg1: memref<48x16xi32, #tpu.memory_space<vmem>>, %arg2: memref<512x256xbf16, #tpu.memory_space<vmem>>, %arg3: memref<256x256xbf16, #tpu.memory_space<vmem>>, %arg4: memref<256x8xbf16, #tpu.memory_space<vmem>>, %arg5: memref<8x256xbf16, #tpu.memory_space<vmem>>, %arg6: memref<256x32xbf16, #tpu.memory_space<vmem>>, %arg7: memref<32x32xbf16, #tpu.memory_space<vmem>>, %arg8: memref<1x256xf32, #tpu.memory_space<vmem>>, %arg9: memref<8x32xf32, #tpu.memory_space<vmem>>, %arg10: memref<6x48xf32, #tpu.memory_space<vmem>>, %arg11: memref<48x6xf32, #tpu.memory_space<vmem>>, %arg12: memref<48x8xf32, #tpu.memory_space<vmem>>, %arg13: memref<48x64xf32, #tpu.memory_space<vmem>>, %arg14: memref<6x128xf32, #tpu.memory_space<vmem>>) attributes {dimension_semantics = [#tpu.dimension_semantics<parallel>], iteration_bounds = array<i64: 1>, scalar_prefetch = 0 : i64, scratch_operands = 0 : i64, tpu.core_type = #tpu.core_type<tc>, window_params = [{transform_indices = @transform_0, window_bounds = array<i64: 48, 16>}, {pipeline_mode = #tpu.pipeline_mode<synchronous>, transform_indices = @transform_1, window_bounds = array<i64: 512, 256>}, {pipeline_mode = #tpu.pipeline_mode<synchronous>, transform_indices = @transform_2, window_bounds = array<i64: 256, 256>}, {pipeline_mode = #tpu.pipeline_mode<synchronous>, transform_indices = @transform_3, window_bounds = array<i64: 256, 8>}, {pipeline_mode = #tpu.pipeline_mode<synchronous>, transform_indices = @transform_4, window_bounds = array<i64: 8, 256>}, {pipeline_mode = #tpu.pipeline_mode<synchronous>, transform_indices = @transform_5, window_bounds = array<i64: 256, 32>}, {pipeline_mode = #tpu.pipeline_mode<synchronous>, transform_indices = @transform_6, window_bounds = array<i64: 32, 32>}, {pipeline_mode = #tpu.pipeline_mode<synchronous>, transform_indices = @transform_7, window_bounds = array<i64: 1, 256>}, {pipeline_mode = #tpu.pipeline_mode<synchronous>, transform_indices = @transform_8, window_bounds = array<i64: 8, 32>}, {pipeline_mode = #tpu.pipeline_mode<synchronous>, transform_indices = @transform_9, window_bounds = array<i64: 6, 48>}, {pipeline_mode = #tpu.pipeline_mode<synchronous>, transform_indices = @transform_10, window_bounds = array<i64: 48, 6>}, {pipeline_mode = #tpu.pipeline_mode<synchronous>, transform_indices = @transform_11, window_bounds = array<i64: 48, 8>}, {pipeline_mode = #tpu.pipeline_mode<synchronous>, transform_indices = @transform_12, window_bounds = array<i64: 48, 64>}, {transform_indices = @transform_13, window_bounds = array<i64: 6, 128>}]} {
    %c0 = arith.constant 0 : index
    %c0_0 = arith.constant 0 : index
    %0 = vector.load %arg1[%c0, %c0_0] : memref<48x16xi32, #tpu.memory_space<vmem>>, vector<48x16xi32>
    %1 = vector.extract_strided_slice %0 {offsets = [0, 0], sizes = [48, 8], strides = [1, 1]} : vector<48x16xi32> to vector<48x8xi32>
    %2 = vector.extract_strided_slice %0 {offsets = [0, 8], sizes = [48, 1], strides = [1, 1]} : vector<48x16xi32> to vector<48x1xi32>
    %3 = vector.extract_strided_slice %0 {offsets = [0, 9], sizes = [48, 1], strides = [1, 1]} : vector<48x16xi32> to vector<48x1xi32>
    %4 = arith.sitofp %3 : vector<48x1xi32> to vector<48x1xf32>
    %5 = tpu.iota {dimensions = array<i32: 1>} : vector<1x64xi32>
    %6 = vector.extract_strided_slice %1 {offsets = [0, 0], sizes = [48, 1], strides = [1, 1]} : vector<48x8xi32> to vector<48x1xi32>
    %7 = vector.broadcast %6 : vector<48x1xi32> to vector<48x64xi32>
    %8 = vector.broadcast %5 : vector<1x64xi32> to vector<48x64xi32>
    %9 = arith.cmpi eq, %7, %8 : vector<48x64xi32>
    %10 = arith.extui %9 : vector<48x64xi1> to vector<48x64xi32>
    %11 = arith.sitofp %10 : vector<48x64xi32> to vector<48x64xf32>
    %12 = vector.extract_strided_slice %1 {offsets = [0, 1], sizes = [48, 1], strides = [1, 1]} : vector<48x8xi32> to vector<48x1xi32>
    %13 = vector.broadcast %12 : vector<48x1xi32> to vector<48x64xi32>
    %14 = vector.broadcast %5 : vector<1x64xi32> to vector<48x64xi32>
    %15 = arith.cmpi eq, %13, %14 : vector<48x64xi32>
    %16 = arith.extui %15 : vector<48x64xi1> to vector<48x64xi32>
    %17 = arith.sitofp %16 : vector<48x64xi32> to vector<48x64xf32>
    %18 = vector.extract_strided_slice %1 {offsets = [0, 2], sizes = [48, 1], strides = [1, 1]} : vector<48x8xi32> to vector<48x1xi32>
    %19 = vector.broadcast %18 : vector<48x1xi32> to vector<48x64xi32>
    %20 = vector.broadcast %5 : vector<1x64xi32> to vector<48x64xi32>
    %21 = arith.cmpi eq, %19, %20 : vector<48x64xi32>
    %22 = arith.extui %21 : vector<48x64xi1> to vector<48x64xi32>
    %23 = arith.sitofp %22 : vector<48x64xi32> to vector<48x64xf32>
    %24 = vector.extract_strided_slice %1 {offsets = [0, 3], sizes = [48, 1], strides = [1, 1]} : vector<48x8xi32> to vector<48x1xi32>
    %25 = vector.broadcast %24 : vector<48x1xi32> to vector<48x64xi32>
    %26 = vector.broadcast %5 : vector<1x64xi32> to vector<48x64xi32>
    %27 = arith.cmpi eq, %25, %26 : vector<48x64xi32>
    %28 = arith.extui %27 : vector<48x64xi1> to vector<48x64xi32>
    %29 = arith.sitofp %28 : vector<48x64xi32> to vector<48x64xf32>
    %30 = vector.extract_strided_slice %1 {offsets = [0, 4], sizes = [48, 1], strides = [1, 1]} : vector<48x8xi32> to vector<48x1xi32>
    %31 = vector.broadcast %30 : vector<48x1xi32> to vector<48x64xi32>
    %32 = vector.broadcast %5 : vector<1x64xi32> to vector<48x64xi32>
    %33 = arith.cmpi eq, %31, %32 : vector<48x64xi32>
    %34 = arith.extui %33 : vector<48x64xi1> to vector<48x64xi32>
    %35 = arith.sitofp %34 : vector<48x64xi32> to vector<48x64xf32>
    %36 = vector.extract_strided_slice %1 {offsets = [0, 5], sizes = [48, 1], strides = [1, 1]} : vector<48x8xi32> to vector<48x1xi32>
    %37 = vector.broadcast %36 : vector<48x1xi32> to vector<48x64xi32>
    %38 = vector.broadcast %5 : vector<1x64xi32> to vector<48x64xi32>
    %39 = arith.cmpi eq, %37, %38 : vector<48x64xi32>
    %40 = arith.extui %39 : vector<48x64xi1> to vector<48x64xi32>
    %41 = arith.sitofp %40 : vector<48x64xi32> to vector<48x64xf32>
    %42 = vector.extract_strided_slice %1 {offsets = [0, 6], sizes = [48, 1], strides = [1, 1]} : vector<48x8xi32> to vector<48x1xi32>
    %43 = vector.broadcast %42 : vector<48x1xi32> to vector<48x64xi32>
    %44 = vector.broadcast %5 : vector<1x64xi32> to vector<48x64xi32>
    %45 = arith.cmpi eq, %43, %44 : vector<48x64xi32>
    %46 = arith.extui %45 : vector<48x64xi1> to vector<48x64xi32>
    %47 = arith.sitofp %46 : vector<48x64xi32> to vector<48x64xf32>
    %48 = vector.extract_strided_slice %1 {offsets = [0, 7], sizes = [48, 1], strides = [1, 1]} : vector<48x8xi32> to vector<48x1xi32>
    %49 = vector.broadcast %48 : vector<48x1xi32> to vector<48x64xi32>
    %50 = vector.broadcast %5 : vector<1x64xi32> to vector<48x64xi32>
    %51 = arith.cmpi eq, %49, %50 : vector<48x64xi32>
    %52 = arith.extui %51 : vector<48x64xi1> to vector<48x64xi32>
    %53 = arith.sitofp %52 : vector<48x64xi32> to vector<48x64xf32>
    %54 = tpu.concatenate %11, %17, %23, %29, %35, %41, %47, %53 in 1 : vector<48x64xf32>, vector<48x64xf32>, vector<48x64xf32>, vector<48x64xf32>, vector<48x64xf32>, vector<48x64xf32>, vector<48x64xf32>, vector<48x64xf32> -> vector<48x512xf32>
    %55 = arith.truncf %54 : vector<48x512xf32> to vector<48x512xbf16>
    %c0_1 = arith.constant 0 : index
    %c0_2 = arith.constant 0 : index
    %56 = vector.load %arg2[%c0_1, %c0_2] : memref<512x256xbf16, #tpu.memory_space<vmem>>, vector<512x256xbf16>
    %cst = arith.constant dense<0.000000e+00> : vector<48x256xf32>
    %57 = tpu.matmul %55, %56, %cst {dimension_numbers = #tpu.dot_dimension_numbers<[1], [0], [0], [1], [0, 0, 1, 1], [], []>} : vector<48x512xbf16>, vector<512x256xbf16>, vector<48x256xf32> -> vector<48x256xf32>
    %58 = arith.truncf %57 : vector<48x256xf32> to vector<48x256xbf16>
    %c0_3 = arith.constant 0 : index
    %c0_4 = arith.constant 0 : index
    %59 = vector.load %arg3[%c0_3, %c0_4] : memref<256x256xbf16, #tpu.memory_space<vmem>>, vector<256x256xbf16>
    %cst_5 = arith.constant dense<0.000000e+00> : vector<48x256xf32>
    %60 = tpu.matmul %58, %59, %cst_5 {dimension_numbers = #tpu.dot_dimension_numbers<[1], [0], [0], [1], [0, 0, 1, 1], [], []>} : vector<48x256xbf16>, vector<256x256xbf16>, vector<48x256xf32> -> vector<48x256xf32>
    %c0_6 = arith.constant 0 : index
    %c0_7 = arith.constant 0 : index
    %61 = vector.load %arg8[%c0_6, %c0_7] : memref<1x256xf32, #tpu.memory_space<vmem>>, vector<1x256xf32>
    %62 = vector.broadcast %61 : vector<1x256xf32> to vector<48x256xf32>
    %63 = arith.addf %60, %62 : vector<48x256xf32>
    %64 = math.tanh %63 : vector<48x256xf32>
    %65 = arith.truncf %64 : vector<48x256xf32> to vector<48x256xbf16>
    %c0_8 = arith.constant 0 : index
    %c0_9 = arith.constant 0 : index
    %66 = vector.load %arg4[%c0_8, %c0_9] : memref<256x8xbf16, #tpu.memory_space<vmem>>, vector<256x8xbf16>
    %cst_10 = arith.constant dense<0.000000e+00> : vector<48x8xf32>
    %67 = tpu.matmul %65, %66, %cst_10 {dimension_numbers = #tpu.dot_dimension_numbers<[1], [0], [0], [1], [0, 0, 1, 1], [], []>} : vector<48x256xbf16>, vector<256x8xbf16>, vector<48x8xf32> -> vector<48x8xf32>
    %68 = tpu.iota {dimensions = array<i32: 1>} : vector<48x8xi32>
    %69 = vector.broadcast %2 : vector<48x1xi32> to vector<48x8xi32>
    %70 = arith.cmpi slt, %68, %69 : vector<48x8xi32>
    %71 = arith.extui %70 : vector<48x8xi1> to vector<48x8xi32>
    %72 = arith.sitofp %71 : vector<48x8xi32> to vector<48x8xf32>
    %cst_11 = arith.constant 0.000000e+00 : f32
    %73 = vector.broadcast %cst_11 : f32 to vector<48x8xf32>
    %74 = arith.cmpf ogt, %72, %73 : vector<48x8xf32>
    %cst_12 = arith.constant -1.000000e+30 : f32
    %75 = vector.broadcast %cst_12 : f32 to vector<48x8xf32>
    %76 = arith.select %74, %67, %75 : vector<48x8xi1>, vector<48x8xf32>
    %cst_13 = arith.constant dense<0xFF800000> : vector<48xf32>
    %77 = vector.multi_reduction <maximumf>, %76, %cst_13 [1] : vector<48x8xf32> to vector<48xf32>
    %78 = vector.shape_cast %77 : vector<48xf32> to vector<48x1xf32>
    %79 = vector.broadcast %78 : vector<48x1xf32> to vector<48x8xf32>
    %80 = arith.subf %76, %79 : vector<48x8xf32>
    %81 = math.exp %80 : vector<48x8xf32>
    %82 = arith.mulf %81, %72 : vector<48x8xf32>
    %cst_14 = arith.constant dense<0.000000e+00> : vector<48xf32>
    %83 = vector.multi_reduction <add>, %82, %cst_14 [1] : vector<48x8xf32> to vector<48xf32>
    %84 = vector.shape_cast %83 : vector<48xf32> to vector<48x1xf32>
    %cst_15 = arith.constant 9.99999971E-10 : f32
    %85 = vector.broadcast %cst_15 : f32 to vector<48x1xf32>
    %86 = arith.maximumf %84, %85 : vector<48x1xf32>
    %87 = vector.broadcast %86 : vector<48x1xf32> to vector<48x8xf32>
    %88 = arith.divf %82, %87 : vector<48x8xf32>
    %89 = arith.truncf %88 : vector<48x8xf32> to vector<48x8xbf16>
    %c0_16 = arith.constant 0 : index
    %c0_17 = arith.constant 0 : index
    %90 = vector.load %arg5[%c0_16, %c0_17] : memref<8x256xbf16, #tpu.memory_space<vmem>>, vector<8x256xbf16>
    %cst_18 = arith.constant dense<0.000000e+00> : vector<48x256xf32>
    %91 = tpu.matmul %89, %90, %cst_18 {dimension_numbers = #tpu.dot_dimension_numbers<[1], [0], [0], [1], [0, 0, 1, 1], [], []>} : vector<48x8xbf16>, vector<8x256xbf16>, vector<48x256xf32> -> vector<48x256xf32>
    %c0_19 = arith.constant 0 : index
    %c0_20 = arith.constant 0 : index
    %92 = vector.load %arg9[%c0_19, %c0_20] : memref<8x32xf32, #tpu.memory_space<vmem>>, vector<1x32xf32>
    %c1 = arith.constant 1 : index
    %c0_21 = arith.constant 0 : index
    %93 = vector.load %arg9[%c1, %c0_21] : memref<8x32xf32, #tpu.memory_space<vmem>>, vector<1x32xf32>
    %c2 = arith.constant 2 : index
    %c0_22 = arith.constant 0 : index
    %94 = vector.load %arg9[%c2, %c0_22] : memref<8x32xf32, #tpu.memory_space<vmem>>, vector<1x32xf32>
    %95 = arith.mulf %91, %57 : vector<48x256xf32>
    %96 = arith.truncf %95 : vector<48x256xf32> to vector<48x256xbf16>
    %c0_23 = arith.constant 0 : index
    %c0_24 = arith.constant 0 : index
    %97 = vector.load %arg6[%c0_23, %c0_24] : memref<256x32xbf16, #tpu.memory_space<vmem>>, vector<256x32xbf16>
    %cst_25 = arith.constant dense<0.000000e+00> : vector<48x32xf32>
    %98 = tpu.matmul %96, %97, %cst_25 {dimension_numbers = #tpu.dot_dimension_numbers<[1], [0], [0], [1], [0, 0, 1, 1], [], []>} : vector<48x256xbf16>, vector<256x32xbf16>, vector<48x32xf32> -> vector<48x32xf32>
    %99 = vector.broadcast %92 : vector<1x32xf32> to vector<48x32xf32>
    %100 = arith.addf %98, %99 : vector<48x32xf32>
    %101 = math.tanh %100 : vector<48x32xf32>
    %102 = arith.truncf %101 : vector<48x32xf32> to vector<48x32xbf16>
    %c0_26 = arith.constant 0 : index
    %c0_27 = arith.constant 0 : index
    %103 = vector.load %arg7[%c0_26, %c0_27] : memref<32x32xbf16, #tpu.memory_space<vmem>>, vector<32x32xbf16>
    %cst_28 = arith.constant dense<0.000000e+00> : vector<48x32xf32>
    %104 = tpu.matmul %102, %103, %cst_28 {dimension_numbers = #tpu.dot_dimension_numbers<[1], [0], [0], [1], [0, 0, 1, 1], [], []>} : vector<48x32xbf16>, vector<32x32xbf16>, vector<48x32xf32> -> vector<48x32xf32>
    %105 = vector.broadcast %93 : vector<1x32xf32> to vector<48x32xf32>
    %106 = arith.addf %104, %105 : vector<48x32xf32>
    %107 = math.tanh %106 : vector<48x32xf32>
    %108 = vector.broadcast %94 : vector<1x32xf32> to vector<48x32xf32>
    %109 = arith.mulf %107, %108 : vector<48x32xf32>
    %cst_29 = arith.constant dense<0.000000e+00> : vector<48xf32>
    %110 = vector.multi_reduction <add>, %109, %cst_29 [1] : vector<48x32xf32> to vector<48xf32>
    %111 = vector.shape_cast %110 : vector<48xf32> to vector<48x1xf32>
    %c0_30 = arith.constant 0 : index
    %c0_31 = arith.constant 0 : index
    %112 = vector.load %arg12[%c0_30, %c0_31] : memref<48x8xf32, #tpu.memory_space<vmem>>, vector<48x8xf32>
    %c0_32 = arith.constant 0 : index
    %c0_33 = arith.constant 0 : index
    %113 = vector.load %arg10[%c0_32, %c0_33] : memref<6x48xf32, #tpu.memory_space<vmem>>, vector<6x48xf32>
    %114 = vector.broadcast %111 : vector<48x1xf32> to vector<48x8xf32>
    %115 = arith.mulf %114, %112 : vector<48x8xf32>
    %116 = vector.broadcast %4 : vector<48x1xf32> to vector<48x8xf32>
    %117 = arith.mulf %116, %112 : vector<48x8xf32>
    %118 = tpu.concatenate %115, %117 in 1 : vector<48x8xf32>, vector<48x8xf32> -> vector<48x16xf32>
    %cst_34 = arith.constant dense<0.000000e+00> : vector<6x16xf32>
    %119 = tpu.matmul %113, %118, %cst_34 {dimension_numbers = #tpu.dot_dimension_numbers<[1], [0], [0], [1], [0, 0, 1, 1], [], []>} : vector<6x48xf32>, vector<48x16xf32>, vector<6x16xf32> -> vector<6x16xf32>
    %120 = vector.extract_strided_slice %119 {offsets = [0, 0], sizes = [6, 8], strides = [1, 1]} : vector<6x16xf32> to vector<6x8xf32>
    %121 = vector.extract_strided_slice %119 {offsets = [0, 8], sizes = [6, 8], strides = [1, 1]} : vector<6x16xf32> to vector<6x8xf32>
    %122 = tpu.iota {dimensions = array<i32: 1>} : vector<6x8xi32>
    %123 = arith.sitofp %122 : vector<6x8xi32> to vector<6x8xf32>
    %124 = arith.cmpf olt, %123, %121 : vector<6x8xf32>
    %125 = arith.extui %124 : vector<6x8xi1> to vector<6x8xi32>
    %126 = arith.sitofp %125 : vector<6x8xi32> to vector<6x8xf32>
    %cst_35 = arith.constant 0.000000e+00 : f32
    %127 = vector.broadcast %cst_35 : f32 to vector<6x8xf32>
    %128 = arith.cmpf ogt, %126, %127 : vector<6x8xf32>
    %cst_36 = arith.constant -1.000000e+30 : f32
    %129 = vector.broadcast %cst_36 : f32 to vector<6x8xf32>
    %130 = arith.select %128, %120, %129 : vector<6x8xi1>, vector<6x8xf32>
    %cst_37 = arith.constant dense<0xFF800000> : vector<6xf32>
    %131 = vector.multi_reduction <maximumf>, %130, %cst_37 [1] : vector<6x8xf32> to vector<6xf32>
    %132 = vector.shape_cast %131 : vector<6xf32> to vector<6x1xf32>
    %133 = vector.broadcast %132 : vector<6x1xf32> to vector<6x8xf32>
    %134 = arith.subf %130, %133 : vector<6x8xf32>
    %135 = math.exp %134 : vector<6x8xf32>
    %136 = arith.mulf %135, %126 : vector<6x8xf32>
    %cst_38 = arith.constant dense<0.000000e+00> : vector<6xf32>
    %137 = vector.multi_reduction <add>, %136, %cst_38 [1] : vector<6x8xf32> to vector<6xf32>
    %138 = vector.shape_cast %137 : vector<6xf32> to vector<6x1xf32>
    %cst_39 = arith.constant 9.99999971E-10 : f32
    %139 = vector.broadcast %cst_39 : f32 to vector<6x1xf32>
    %140 = arith.maximumf %138, %139 : vector<6x1xf32>
    %141 = vector.broadcast %140 : vector<6x1xf32> to vector<6x8xf32>
    %142 = arith.divf %136, %141 : vector<6x8xf32>
    %c0_40 = arith.constant 0 : index
    %c0_41 = arith.constant 0 : index
    %143 = vector.load %arg11[%c0_40, %c0_41] : memref<48x6xf32, #tpu.memory_space<vmem>>, vector<48x6xf32>
    %cst_42 = arith.constant dense<0.000000e+00> : vector<48x8xf32>
    %144 = tpu.matmul %143, %142, %cst_42 {dimension_numbers = #tpu.dot_dimension_numbers<[1], [0], [0], [1], [0, 0, 1, 1], [], []>} : vector<48x6xf32>, vector<6x8xf32>, vector<48x8xf32> -> vector<48x8xf32>
    %145 = arith.mulf %144, %112 : vector<48x8xf32>
    %cst_43 = arith.constant dense<0.000000e+00> : vector<48xf32>
    %146 = vector.multi_reduction <add>, %145, %cst_43 [1] : vector<48x8xf32> to vector<48xf32>
    %147 = vector.shape_cast %146 : vector<48xf32> to vector<48x1xf32>
    %148 = tpu.concatenate %88, %88, %88, %88, %88, %88, %88, %88 in 1 : vector<48x8xf32>, vector<48x8xf32>, vector<48x8xf32>, vector<48x8xf32>, vector<48x8xf32>, vector<48x8xf32>, vector<48x8xf32>, vector<48x8xf32> -> vector<48x64xf32>
    %c0_44 = arith.constant 0 : index
    %c0_45 = arith.constant 0 : index
    %149 = vector.load %arg13[%c0_44, %c0_45] : memref<48x64xf32, #tpu.memory_space<vmem>>, vector<48x64xf32>
    %150 = arith.mulf %148, %149 : vector<48x64xf32>
    %151 = vector.broadcast %147 : vector<48x1xf32> to vector<48x32xf32>
    %152 = arith.mulf %151, %101 : vector<48x32xf32>
    %153 = vector.broadcast %147 : vector<48x1xf32> to vector<48x8xf32>
    %154 = arith.mulf %153, %112 : vector<48x8xf32>
    %cst_46 = arith.constant 0.000000e+00 : f32
    %155 = vector.broadcast %cst_46 : f32 to vector<48x24xf32>
    %156 = tpu.concatenate %152, %154, %150, %155 in 1 : vector<48x32xf32>, vector<48x8xf32>, vector<48x64xf32>, vector<48x24xf32> -> vector<48x128xf32>
    %cst_47 = arith.constant dense<0.000000e+00> : vector<6x128xf32>
    %157 = tpu.matmul %113, %156, %cst_47 {dimension_numbers = #tpu.dot_dimension_numbers<[1], [0], [0], [1], [0, 0, 1, 1], [], []>} : vector<6x48xf32>, vector<48x128xf32>, vector<6x128xf32> -> vector<6x128xf32>
    %c0_48 = arith.constant 0 : index
    %c0_49 = arith.constant 0 : index
    %158 = vector.load %arg14[%c0_48, %c0_49] : memref<6x128xf32, #tpu.memory_space<vmem>>, vector<6x128xf32>
    tpu.vector_store %arg14[%c0_48, %c0_49], %157 {strides = array<i32>} : memref<6x128xf32, #tpu.memory_space<vmem>>, vector<6x128xf32>,
    return
  }
  func.func @transform_0(%arg0: i32) -> (i32, i32) {
    %c0_i32 = arith.constant 0 : i32
    %c0_i32_0 = arith.constant 0 : i32
    return %arg0, %c0_i32 : i32, i32
  }
  func.func @transform_1(%arg0: i32) -> (i32, i32) {
    %c0_i32 = arith.constant 0 : i32
    %c0_i32_0 = arith.constant 0 : i32
    %c0_i32_1 = arith.constant 0 : i32
    return %c0_i32, %c0_i32_0 : i32, i32
  }
  func.func @transform_2(%arg0: i32) -> (i32, i32) {
    %c0_i32 = arith.constant 0 : i32
    %c0_i32_0 = arith.constant 0 : i32
    %c0_i32_1 = arith.constant 0 : i32
    return %c0_i32, %c0_i32_0 : i32, i32
  }
  func.func @transform_3(%arg0: i32) -> (i32, i32) {
    %c0_i32 = arith.constant 0 : i32
    %c0_i32_0 = arith.constant 0 : i32
    %c0_i32_1 = arith.constant 0 : i32
    return %c0_i32, %c0_i32_0 : i32, i32
  }
  func.func @transform_4(%arg0: i32) -> (i32, i32) {
    %c0_i32 = arith.constant 0 : i32
    %c0_i32_0 = arith.constant 0 : i32
    %c0_i32_1 = arith.constant 0 : i32
    return %c0_i32, %c0_i32_0 : i32, i32
  }
  func.func @transform_5(%arg0: i32) -> (i32, i32) {
    %c0_i32 = arith.constant 0 : i32
    %c0_i32_0 = arith.constant 0 : i32
    %c0_i32_1 = arith.constant 0 : i32
    return %c0_i32, %c0_i32_0 : i32, i32
  }
  func.func @transform_6(%arg0: i32) -> (i32, i32) {
    %c0_i32 = arith.constant 0 : i32
    %c0_i32_0 = arith.constant 0 : i32
    %c0_i32_1 = arith.constant 0 : i32
    return %c0_i32, %c0_i32_0 : i32, i32
  }
  func.func @transform_7(%arg0: i32) -> (i32, i32) {
    %c0_i32 = arith.constant 0 : i32
    %c0_i32_0 = arith.constant 0 : i32
    %c0_i32_1 = arith.constant 0 : i32
    return %c0_i32, %c0_i32_0 : i32, i32
  }
  func.func @transform_8(%arg0: i32) -> (i32, i32) {
    %c0_i32 = arith.constant 0 : i32
    %c0_i32_0 = arith.constant 0 : i32
    %c0_i32_1 = arith.constant 0 : i32
    return %c0_i32, %c0_i32_0 : i32, i32
  }
  func.func @transform_9(%arg0: i32) -> (i32, i32) {
    %c0_i32 = arith.constant 0 : i32
    %c0_i32_0 = arith.constant 0 : i32
    %c0_i32_1 = arith.constant 0 : i32
    return %c0_i32, %c0_i32_0 : i32, i32
  }
  func.func @transform_10(%arg0: i32) -> (i32, i32) {
    %c0_i32 = arith.constant 0 : i32
    %c0_i32_0 = arith.constant 0 : i32
    %c0_i32_1 = arith.constant 0 : i32
    return %c0_i32, %c0_i32_0 : i32, i32
  }
  func.func @transform_11(%arg0: i32) -> (i32, i32) {
    %c0_i32 = arith.constant 0 : i32
    %c0_i32_0 = arith.constant 0 : i32
    %c0_i32_1 = arith.constant 0 : i32
    return %c0_i32, %c0_i32_0 : i32, i32
  }
  func.func @transform_12(%arg0: i32) -> (i32, i32) {
    %c0_i32 = arith.constant 0 : i32
    %c0_i32_0 = arith.constant 0 : i32
    %c0_i32_1 = arith.constant 0 : i32
    return %c0_i32, %c0_i32_0 : i32, i32
  }
  func.func @transform_13(%arg0: i32) -> (i32, i32) {
    %c0_i32 = arith.constant 0 : i32
    %c0_i32_0 = arith.constant 0 : i32
    return %arg0, %c0_i32 : i32, i32
  }
}

</mosaic_0001>

<bundles_post_ra>
// kernel: tpu_custom_call.1
= control target key start
LH: loop header
LB: loop body
LE: loop exit
PB: predicated region body
PF: predicated region fallthrough
CT: control target
= control target key end

     0   :  { %18 = vsyncpa [#allocation3], 0  ;;  %s4977_s0 = inlined_call_operand.vmem [shape: s32[48,16], index: 0, kind: input, shape index: {}]   ;;  %s4978_s1 = inlined_call_operand.hbm [shape: bf16[512,256], index: 1, kind: input, shape index: {}]   ;;  %s4979_s2 = inlined_call_operand.vmem [shape: bf16[256,256], index: 2, kind: input, shape index: {}]   ;;  %s4980_s3 = inlined_call_operand.vmem [shape: bf16[256,8], index: 3, kind: input, shape index: {}]   ;;  %s4981_s4 = inlined_call_operand.vmem [shape: bf16[8,256], index: 4, kind: input, shape index: {}]   ;;  %s4982_s5 = inlined_call_operand.vmem [shape: bf16[256,32], index: 5, kind: input, shape index: {}]   ;;  %s4983_s6 = inlined_call_operand.vmem [shape: bf16[32,32], index: 6, kind: input, shape index: {}]   ;;  %s4984_s7 = inlined_call_operand.vmem [shape: f32[1,256], index: 7, kind: input, shape index: {}]   ;;  %s4985_s8 = inlined_call_operand.vmem [shape: f32[8,32], index: 8, kind: input, shape index: {}]   ;;  %s4986_s9 = inlined_call_operand.vmem [shape: f32[6,48], index: 9, kind: input, shape index: {}]   ;;  %s4987_s10 = inlined_call_operand.vmem [shape: f32[48,6], index: 10, kind: input, shape index: {}]   ;;  %s4988_s11 = inlined_call_operand.vmem [shape: f32[48,8], index: 11, kind: input, shape index: {}]   ;;  %s4989_s12 = inlined_call_operand.vmem [shape: f32[48,64], index: 12, kind: input, shape index: {}]   ;;  %s4990_s13 = inlined_call_operand.hbm [shape: f32[6,128], index: 13, kind: output, shape index: {}]  }
   0x1   :  { %19 = vsyncpa [#allocation4], 0  ;;  %s26_s27 = sshll.u32 %s4978_s1, 4  ;;  %s3681_s28 = smov [#allocation2]   ;;  %s27_s27 = int_to_ptr.hbm [resolvable:$true] %s26_s27 }
   0x2   :  { %s28_s29 = sshll.u32 %s3681_s28, 4  ;;  %s3682_s30 = smov 128   ;;  %s29_s29 = int_to_ptr.vmem [resolvable:$true] %s28_s29 }
   0x3   :  { %s3683_s14 = smov 8  }
   0x4   :  { %34 = dma.hbm_to_vmem [thread:$0]  %s27_s27, 8192, %s29_s29, [#allocation3], %s3682_s30, %s3682_s30, %s3683_s14  }
   0x5   :  { %3677 = dma.done.wait [#allocation3], 8192  }
   0x6   :  { %3678 = vsyncadd [#allocation3], 4294959104  ;;  %v3684_v0 = vmov 7   ;;  %v3685_v1 = vmov 3   ;;  %v3686_v2 = vmov 1   ;;  %v3781_v3 = vld [vmem:[%s4977_s0] sm:$0xff]  ;;  %v74_v18 = vlaneseq }
   0x7   :  { %3421 = vset.pattern.permute.xlu1 %v3684_v0  ;;  %3423 = vset.pattern.permute.xlu0 %v3685_v1  ;;  %v3789_v4 = vld [vmem:[%s4977_s0 + $0x8] sm:$0xff]  ;;  %v3794_v5 = vld [vmem:[%s4977_s0 + $0x18] sm:$0xff]  ;;  %v3802_v6 = vld [vmem:[%s4977_s0 + $0x10] sm:$0xff]  ;;  %v3687_v7 = vmov 5   ;;  %v3688_v10 = vmov 6   ;;  %v3689_v11 = vmov 2  }
   0x8   :  { %3422 = vset.pattern.permute.xlu2 %v3686_v2  ;;  %185 = vperm.xlu0 %3423, %v3781_v3   ;;  %v3813_v8 = vld [vmem:[%s4977_s0 + $0x20] sm:$0xff]  ;;  %v3821_v9 = vld [vmem:[%s4977_s0 + $0x28] sm:$0xff]  ;;  %v3690_v12 = vmov 4   ;;  %v3691_v13 = vmov 0   ;;  %v3855_v20 = vand.u32 127, %v74_v18  ;;  %v3692_v23 = vmov 0.0  }
   0x9   :  { %329 = vperm.xlu1 %3421, %v3781_v3   ;;  %113 = vperm.xlu2 %3422, %v3781_v3   ;;  %s3693_s26 = smov 64   ;;  %v2903_v58 = vld [vmem:[#allocation2 + $0x170] sm:$0xf]  ;;  %v3315_v59 = vld [vmem:[#allocation2 + $0x174] sm:$0xf0]  ;;  %s3696_s17 = smov 120  }
   0xa   :  { %v2904_v61 = vor.u32 %v3315_v59, %v2903_v58  ;;  %v3331_v18 = vld [vmem:[#allocation2 + $0x1f4] sm:$0xf0]  ;;  %v3305_v58 = vld [vmem:[#allocation2 + $0x124] sm:$0xf0]  ;;  %v2943_v59 = vld [vmem:[#allocation2 + $0x1c0] sm:$0xf] }
   0xb   :  { %s3697_s18 = smov 16   ;;  %s3701_s19 = smov 48  }
   0xc   :  { %929 = vmatpush.bf16.msra.mxu2 %v2904_v61 }
  0x10   :  { %3428 = vset.pattern.permute.xlu0 %v3684_v0 }
  0x11   :  { %332 = vperm.xlu1 %3421, %v3789_v4   ;;  %338 = vperm.xlu0 %3428, %v3794_v5  }
  0x12   :  { %116 = vperm.xlu2 %3422, %v3789_v4  }
  0x19   :  { %3424 = vset.pattern.permute.xlu1 %v3685_v1  ;;  %3429 = vset.pattern.permute.xlu0 %v3687_v7 }
  0x1a   :  { %188 = vperm.xlu1 %3424, %v3789_v4   ;;  %257 = vperm.xlu0 %3429, %v3781_v3  }
  0x1b   :  { %3425 = vset.pattern.permute.xlu2 %v3687_v7 }
  0x1c   :  { %263 = vperm.xlu2 %3425, %v3802_v6  }
  0x22   :  { %3426 = vset.pattern.permute.xlu1 %v3687_v7  ;;  %260 = vperm.xlu0 %3429, %v3789_v4  }
  0x23   :  { %266 = vperm.xlu1 %3426, %v3794_v5  }
  0x24   :  { %3427 = vset.pattern.permute.xlu2 %v3684_v0 }
  0x25   :  { %335 = vperm.xlu2 %3427, %v3802_v6  }
  0x2a   :  { %269 = vperm.xlu0 %3429, %v3813_v8  }
  0x2b   :  { %3430 = vset.pattern.permute.xlu1 %v3686_v2 }
  0x2c   :  { %119 = vperm.xlu1 %3430, %v3802_v6  }
  0x2d   :  { %3431 = vset.pattern.permute.xlu2 %v3686_v2 }
  0x2e   :  { %122 = vperm.xlu2 %3431, %v3794_v5  }
  0x32   :  { %3438 = vset.pattern.permute.xlu0 %v3686_v2 }
  0x33   :  { %128 = vperm.xlu0 %3438, %v3821_v9  }
  0x34   :  { %3432 = vset.pattern.permute.xlu1 %v3685_v1 }
  0x35   :  { %191 = vperm.xlu1 %3432, %v3802_v6  }
  0x36   :  { %3433 = vset.pattern.permute.xlu2 %v3685_v1 }
  0x37   :  { %194 = vperm.xlu2 %3433, %v3794_v5  }
  0x3b   :  { %3443 = vset.pattern.permute.xlu0 %v3688_v10 }
  0x3c   :  { %293 = vperm.xlu0 %3443, %v3781_v3  }
  0x3d   :  { %3434 = vset.pattern.permute.xlu1 %v3687_v7 }
  0x3e   :  { %272 = vperm.xlu1 %3434, %v3821_v9  }
  0x3f   :  { %3435 = vset.pattern.permute.xlu2 %v3684_v0 }
  0x40   :  { %341 = vperm.xlu2 %3435, %v3813_v8  }
  0x44   :  { %3447 = vset.pattern.permute.xlu0 %v3689_v11 }
  0x45   :  { %149 = vperm.xlu0 %3447, %v3781_v3  }
  0x46   :  { %3436 = vset.pattern.permute.xlu1 %v3684_v0 }
  0x47   :  { %344 = vperm.xlu1 %3436, %v3821_v9  }
  0x48   :  { %3437 = vset.pattern.permute.xlu2 %v3686_v2  ;;  %v2895_v2 = vld [vmem:[#allocation2 + $0x160] sm:$0xf] }
  0x49   :  { %125 = vperm.xlu2 %3437, %v3813_v8  }
  0x4d   :  { %3449 = vset.pattern.permute.xlu0 %v3690_v12 }
  0x4e   :  { %227 = vperm.xlu0 %3449, %v3802_v6  }
  0x4f   :  { %3439 = vset.pattern.permute.xlu1 %v3685_v1 }
  0x50   :  { %197 = vperm.xlu1 %3439, %v3813_v8  }
  0x51   :  { %3440 = vset.pattern.permute.xlu2 %v3685_v1 }
  0x52   :  { %200 = vperm.xlu2 %3440, %v3821_v9  }
  0x58   :  { %3441 = vset.pattern.permute.xlu1 %v3690_v12 }
  0x59   :  { %221 = vperm.xlu1 %3441, %v3781_v3  }
  0x5a   :  { %3442 = vset.pattern.permute.xlu2 %v3690_v12 }
  0x5b   :  { %224 = vperm.xlu2 %3442, %v3789_v4  }
  0x61   :  { %3444 = vset.pattern.permute.xlu1 %v3688_v10 }
  0x62   :  { %296 = vperm.xlu1 %3444, %v3789_v4  }
  0x63   :  { %3446 = vset.pattern.permute.xlu2 %v3691_v13  ;;  %v114_v14 = vpop.permute.xlu2 %113 }
  0x64   :  { %80 = vperm.xlu2 %3446, %v3789_v4   ;;  %vm130_vm0 = vcmp.eq.s32.totalorder %v114_v14, %v3855_v20  ;;  %v2887_v14 = vld [vmem:[#allocation2 + $0x150] sm:$0xf] }
  0x65   :  { %v2675_v24 = vsel %vm130_vm0, 1.0, %v3692_v23 }
  0x6a   :  { %3445 = vset.pattern.permute.xlu1 %v3691_v13 }
  0x6b   :  { %77 = vperm.xlu1 %3445, %v3781_v3   ;;  %v3313_v3 = vld [vmem:[#allocation2 + $0x164] sm:$0xf0] }
  0x6c   :  { %3451 = vset.pattern.permute.xlu2 %v3688_v10  ;;  %v117_v15 = vpop.permute.xlu2 %116  ;;  %v2896_v7 = vor.u32 %v3313_v3, %v2895_v2  ;;  %v3295_v3 = vld [vmem:[#allocation2 + $0xd4] sm:$0xf0] }
  0x6d   :  { %299 = vperm.xlu2 %3451, %v3802_v6   ;;  %vm131_vm1 = vcmp.eq.s32.totalorder %v117_v15, %v3855_v20  ;;  %v3311_v15 = vld [vmem:[#allocation2 + $0x154] sm:$0xf0] }
  0x6e   :  { %v2676_v25 = vsel %vm131_vm1, 1.0, %v3692_v23  ;;  %930 = vmatpush.bf16.msra.mxu2 %v2896_v7 }
  0x6f   :  { %v3463_v26 = vpack.i.bf16 %v2676_v25, %v2675_v24  ;;  %v2775_v25 = vld [vmem:[#allocation2 + $0x70] sm:$0xf] }
  0x73   :  { %3448 = vset.pattern.permute.xlu1 %v3689_v11 }
  0x74   :  { %152 = vperm.xlu1 %3448, %v3789_v4  }
  0x75   :  { %3479 = vset.pattern.permute.xlu2 %v3689_v11 }
  0x76   :  { %v264_v21 = vpop.permute.xlu2 %263 }
  0x77   :  { %vm276_vm13 = vcmp.eq.s32.totalorder %v264_v21, %v3855_v20 }
  0x78   :  { %v2701_v53 = vsel %vm276_vm13, 1.0, %v3692_v23 }
  0x7a   :  { %v186_v16 = vpop.permute.xlu0 %185 }
  0x7b   :  { %v330_v17 = vpop.permute.xlu1 %329  ;;  %vm202_vm9 = vcmp.eq.s32.totalorder %v186_v16, %v3855_v20 }
  0x7c   :  { %3450 = vset.pattern.permute.xlu1 %v3690_v12  ;;  %vm346_vm4 = vcmp.eq.s32.totalorder %v330_v17, %v3855_v20  ;;  %v2687_v45 = vsel %vm202_vm9, 1.0, %v3692_v23  ;;  %v2888_v17 = vor.u32 %v3311_v15, %v2887_v14  ;;  %v2935_v15 = vld [vmem:[#allocation2 + $0x1b0] sm:$0xf] }
  0x7d   :  { %230 = vperm.xlu1 %3450, %v3794_v5   ;;  %v2711_v36 = vsel %vm346_vm4, 1.0, %v3692_v23 }
  0x7e   :  { %931 = vmatpush.bf16.msra.mxu2 %v2888_v17 }
  0x7f   :  { %v3865_v29 = vpop.permute.xlu2 %335 }
  0x80   :  { %vm348_vm1 = vcmp.eq.s32.totalorder %v3865_v29, %v3855_v20  ;;  %v2879_v29 = vld [vmem:[#allocation2 + $0x140] sm:$0xf] }
  0x83   :  { %v333_v19 = vpop.permute.xlu1 %332  ;;  %v3857_v22 = vpop.permute.xlu0 %338 }
  0x84   :  { %vm347_vm5 = vcmp.eq.s32.totalorder %v333_v19, %v3855_v20  ;;  %vm349_vm0 = vcmp.eq.s32.totalorder %v3857_v22, %v3855_v20 }
  0x85   :  { %3452 = vset.pattern.permute.xlu1 %v3688_v10  ;;  %v2712_v37 = vsel %vm347_vm5, 1.0, %v3692_v23  ;;  %v2714_v4 = vsel %vm349_vm0, 1.0, %v3692_v23 }
  0x86   :  { %302 = vperm.xlu1 %3452, %v3794_v5   ;;  %v3458_v40 = vpack.i.bf16 %v2712_v37, %v2711_v36  ;;  %v2767_v36 = vld [vmem:[#allocation2 + $0x60] sm:$0xf]  ;;  %v3281_v37 = vld [vmem:[#allocation2 + $0x64] sm:$0xf0] }
  0x88   :  { %v123_v32 = vpop.permute.xlu2 %122 }
  0x89   :  { %vm133_vm6 = vcmp.eq.s32.totalorder %v123_v32, %v3855_v20 }
  0x8a   :  { %v2678_v38 = vsel %vm133_vm6, 1.0, %v3692_v23 }
  0x8c   :  { %v189_v27 = vpop.permute.xlu1 %188  ;;  %v258_v28 = vpop.permute.xlu0 %257 }
  0x8d   :  { %vm274_vm2 = vcmp.eq.s32.totalorder %v258_v28, %v3855_v20  ;;  %vm203_vm8 = vcmp.eq.s32.totalorder %v189_v27, %v3855_v20 }
  0x8e   :  { %3464 = vrot.lane.b32.xlu1 %v3463_v26, %s3693_s26  ;;  %v2699_v33 = vsel %vm274_vm2, 1.0, %v3692_v23  ;;  %v2688_v44 = vsel %vm203_vm8, 1.0, %v3692_v23  ;;  %v3283_v26 = vld [vmem:[#allocation2 + $0x74] sm:$0xf0] }
  0x8f   :  { %3468 = vset.pattern.permute.xlu1 %v3691_v13  ;;  %v3469_v48 = vpack.i.bf16 %v2688_v44, %v2687_v45  ;;  %v2776_v28 = vor.u32 %v3283_v26, %v2775_v25  ;;  %v2847_v25 = vld [vmem:[#allocation2 + $0x100] sm:$0xf] }
  0x91   :  { %v195_v42 = vpop.permute.xlu2 %194  ;;  %881 = vmatpush.bf16.msra.mxu0 %v2776_v28 }
  0x92   :  { %vm205_vm10 = vcmp.eq.s32.totalorder %v195_v42, %v3855_v20  ;;  %v3307_v42 = vld [vmem:[#allocation2 + $0x134] sm:$0xf0] }
  0x93   :  { %v2690_v46 = vsel %vm205_vm10, 1.0, %v3692_v23  ;;  %vm460_vm10 = vcmask 523264  }
  0x94   :  { %v261_v30 = vpop.permute.xlu0 %260 }
  0x95   :  { %v267_v31 = vpop.permute.xlu1 %266  ;;  %vm275_vm3 = vcmp.eq.s32.totalorder %v261_v30, %v3855_v20  ;;  %v3309_v30 = vld [vmem:[#allocation2 + $0x144] sm:$0xf0] }
  0x96   :  { %86 = vperm.xlu1 %3468, %v3794_v5   ;;  %v2700_v34 = vsel %vm275_vm3, 1.0, %v3692_v23  ;;  %vm277_vm12 = vcmp.eq.s32.totalorder %v267_v31, %v3855_v20  ;;  %v2959_v31 = vld [vmem:[#allocation2 + $0x1e0] sm:$0xf]  ;;  %v2880_v32 = vor.u32 %v3309_v30, %v2879_v29  ;;  %v3321_v30 = vld [vmem:[#allocation2 + $0x1a4] sm:$0xf0] }
  0x97   :  { %v3453_v35 = vpack.i.bf16 %v2700_v34, %v2699_v33  ;;  %v2702_v52 = vsel %vm277_vm12, 1.0, %v3692_v23  ;;  %v2927_v29 = vld [vmem:[#allocation2 + $0x1a0] sm:$0xf] }
  0x98   :  { %v3474_v54 = vpack.i.bf16 %v2702_v52, %v2701_v53  ;;  %932 = vmatpush.bf16.msra.mxu2 %v2880_v32  ;;  %v2831_v52 = vld [vmem:[#allocation2 + $0xe0] sm:$0xf] }
  0x99   :  { %3454 = vrot.lane.b32.xlu2 %v3453_v35, %s3693_s26  ;;  %v2735_v32 = vld [vmem:[#allocation2 + $0x20] sm:$0xf] }
  0x9a   :  { %v3895_v49 = vpop.permute.xlu2 %341 }
  0x9b   :  { %vm350_vm4 = vcmp.eq.s32.totalorder %v3895_v49, %v3855_v20 }
  0x9c   :  { %v270_v57 = vpop.permute.xlu0 %269  ;;  %v2715_v33 = vsel %vm350_vm4, 1.0, %v3692_v23 }
  0x9d   :  { %vm278_vm15 = vcmp.eq.s32.totalorder %v270_v57, %v3855_v20 }
  0x9e   :  { %v120_v39 = vpop.permute.xlu1 %119  ;;  %3480 = vset.pattern.permute.xlu1 %v3689_v11  ;;  %v2703_v62 = vsel %vm278_vm15, 1.0, %v3692_v23 }
  0x9f   :  { %vm132_vm7 = vcmp.eq.s32.totalorder %v120_v39, %v3855_v20  ;;  %158 = vperm.xlu1 %3480, %v3794_v5   ;;  %v2713_v5 = vsel %vm348_vm1, 1.0, %v3692_v23  ;;  %v2768_v39 = vor.u32 %v3281_v37, %v2767_v36  ;;  %v2919_v36 = vld [vmem:[#allocation2 + $0x190] sm:$0xf]  ;;  %v3319_v37 = vld [vmem:[#allocation2 + $0x194] sm:$0xf0] }
  0xa0   :  { %v2677_v41 = vsel %vm132_vm7, 1.0, %v3692_v23  ;;  %v3481_v16 = vpack.i.bf16 %v2714_v4, %v2713_v5  ;;  %v2855_v4 = vld [vmem:[#allocation2 + $0x110] sm:$0xf]  ;;  %v3303_v5 = vld [vmem:[#allocation2 + $0x114] sm:$0xf0] }
  0xa1   :  { %v3486_v43 = vpack.i.bf16 %v2678_v38, %v2677_v41  ;;  %3459 = vrot.lane.b32.xlu2 %v3458_v40, %s3693_s26  ;;  %v2839_v38 = vld [vmem:[#allocation2 + $0xf0] sm:$0xf]  ;;  %v3299_v40 = vld [vmem:[#allocation2 + $0xf4] sm:$0xf0]  ;;  %882 = vmatpush.bf16.msra.mxu0 %v2768_v39  ;;  %v2856_v14 = vor.u32 %v3303_v5, %v2855_v4  ;;  %v2920_v39 = vor.u32 %v3319_v37, %v2919_v36 }
  0xa2   :  { %v2871_v41 = vld [vmem:[#allocation2 + $0x130] sm:$0xf]  ;;  %v2840_v44 = vor.u32 %v3299_v40, %v2839_v38 }
  0xa3   :  { %3487 = vrot.lane.b32.xlu0 %v3486_v43, %s3693_s26  ;;  %v3906_v56 = vpop.permute.xlu2 %125  ;;  %v2872_v45 = vor.u32 %v3307_v42, %v2871_v41  ;;  %v2727_v40 = vld [vmem:[#allocation2 + $0x10] sm:$0xf]  ;;  %v3271_v41 = vld [vmem:[#allocation2 + $0x14] sm:$0xf0] }
  0xa4   :  { %905 = vmatpush.bf16.msra.mxu1 %v2840_v44  ;;  %v2799_v44 = vld [vmem:[#allocation2 + $0xa0] sm:$0xf]  ;;  %vm134_vm6 = vcmp.eq.s32.totalorder %v3906_v56, %v3855_v20 }
  0xa5   :  { %933 = vmatpush.bf16.msra.mxu2 %v2872_v45  ;;  %v3289_v45 = vld [vmem:[#allocation2 + $0xa4] sm:$0xf0] }
  0xa7   :  { %v192_v47 = vpop.permute.xlu1 %191  ;;  %3498 = vset.pattern.permute.xlu1 %v3688_v10 }
  0xa8   :  { %vm204_vm11 = vcmp.eq.s32.totalorder %v192_v47, %v3855_v20  ;;  %v3327_v47 = vld [vmem:[#allocation2 + $0x1d4] sm:$0xf0] }
  0xa9   :  { %v2689_v50 = vsel %vm204_vm11, 1.0, %v3692_v23  ;;  %3470 = vrot.lane.b32.xlu2 %v3469_v48, %s3693_s26 }
  0xaa   :  { %v3491_v51 = vpack.i.bf16 %v2690_v46, %v2689_v50  ;;  %v2951_v46 = vld [vmem:[#allocation2 + $0x1d0] sm:$0xf] }
  0xab   :  { %236 = vperm.xlu0 %3449, %v3821_v9   ;;  %v2952_v49 = vor.u32 %v3327_v47, %v2951_v46  ;;  %v2759_v50 = vld [vmem:[#allocation2 + $0x50] sm:$0xf]  ;;  %v2911_v46 = vld [vmem:[#allocation2 + $0x180] sm:$0xf]  ;;  %v2800_v47 = vor.u32 %v3289_v45, %v2799_v44  ;;  %v2897_v44 = vld [vmem:[#allocation2 + $0x168] sm:$0xf0] }
  0xac   :  { %3492 = vrot.lane.b32.xlu1 %v3491_v51, %s3693_s26  ;;  %v201_v1 = vpop.permute.xlu2 %200  ;;  %v3279_v51 = vld [vmem:[#allocation2 + $0x54] sm:$0xf0] }
  0xad   :  { %vm207_vm2 = vcmp.eq.s32.totalorder %v201_v1, %v3855_v20  ;;  %v2760_v53 = vor.u32 %v3279_v51, %v2759_v50  ;;  %v2823_v1 = vld [vmem:[#allocation2 + $0xd0] sm:$0xf] }
  0xae   :  { %v2692_v21 = vsel %vm207_vm2, 1.0, %v3692_v23  ;;  %v2824_v7 = vor.u32 %v3295_v3, %v2823_v1 }
  0xaf   :  { %883 = vmatpush.bf16.msra.mxu0 %v2760_v53  ;;  %v2791_v53 = vld [vmem:[#allocation2 + $0x90] sm:$0xf] }
  0xb0   :  { %v273_v55 = vpop.permute.xlu1 %272 }
  0xb1   :  { %3475 = vrot.lane.b32.xlu2 %v3474_v54, %s3693_s26  ;;  %vm279_vm14 = vcmp.eq.s32.totalorder %v273_v55, %v3855_v20  ;;  %v3297_v54 = vld [vmem:[#allocation2 + $0xe4] sm:$0xf0]  ;;  %v2863_v55 = vld [vmem:[#allocation2 + $0x120] sm:$0xf] }
  0xb2   :  { %v2704_v60 = vsel %vm279_vm14, 1.0, %v3692_v23  ;;  %v2832_v57 = vor.u32 %v3297_v54, %v2831_v52  ;;  %v2864_v61 = vor.u32 %v3305_v58, %v2863_v55  ;;  %v3269_v52 = vld [vmem:[#allocation2 + $0x4] sm:$0xf0]  ;;  %v3287_v54 = vld [vmem:[#allocation2 + $0x94] sm:$0xf0]  ;;  %v129_v55 = vpop.permute.xlu0 %128 }
  0xb3   :  { %3497 = vset.pattern.permute.xlu0 %v3691_v13  ;;  %v3500_v0 = vpack.i.bf16 %v2704_v60, %v2703_v62  ;;  %v3325_v60 = vld [vmem:[#allocation2 + $0x1c4] sm:$0xf0]  ;;  %v2783_v58 = vld [vmem:[#allocation2 + $0x80] sm:$0xf]  ;;  %vm135_vm7 = vcmp.eq.s32.totalorder %v129_v55, %v3855_v20 }
  0xb4   :  { %83 = vperm.xlu0 %3497, %v3802_v6   ;;  %305 = vperm.xlu1 %3498, %v3813_v8   ;;  %v2944_v62 = vor.u32 %v3325_v60, %v2943_v59  ;;  %v3285_v59 = vld [vmem:[#allocation2 + $0x84] sm:$0xf0] }
  0xb5   :  { %906 = vmatpush.bf16.msra.mxu1 %v2832_v57  ;;  %934 = vmatpush.bf16.msra.mxu2 %v2864_v61  ;;  %v3946_v26 = vpop.permute.xlu2 %224  ;;  %v2792_v57 = vor.u32 %v3287_v54, %v2791_v53  ;;  %v2784_v60 = vor.u32 %v3285_v59, %v2783_v58  ;;  %v3308_v58 = vld [vmem:[#allocation2 + $0x144] sm:$0xf]  ;;  %v2881_v59 = vld [vmem:[#allocation2 + $0x148] sm:$0xf0] }
  0xb6   :  { %vm239_vm9 = vcmp.eq.s32.totalorder %v3946_v26, %v3855_v20 }
  0xb7   :  { %v2694_v5 = vsel %vm239_vm9, 1.0, %v3692_v23 }
  0xb9   :  { %v345_v63 = vpop.permute.xlu1 %344  ;;  %155 = vperm.xlu2 %3479, %v3802_v6   ;;  %v2967_v6 = vld [vmem:[#allocation2 + $0x1f0] sm:$0xf]  ;;  %907 = vmatpush.bf16.msra.mxu1 %v2824_v7 }
  0xba   :  { %v2968_v19 = vor.u32 %v3331_v18, %v2967_v6  ;;  %vm351_vm5 = vcmp.eq.s32.totalorder %v345_v63, %v3855_v20  ;;  %v2751_v63 = vld [vmem:[#allocation2 + $0x40] sm:$0xf]  ;;  %v3323_v6 = vld [vmem:[#allocation2 + $0x1b4] sm:$0xf0]  ;;  %v2743_v18 = vld [vmem:[#allocation2 + $0x30] sm:$0xf]  ;;  %935 = vmatpush.bf16.msra.mxu2 %v2856_v14 }
  0xbb   :  { %v2716_v34 = vsel %vm351_vm5, 1.0, %v3692_v23 }
  0xbc   :  { %3501 = vrot.lane.b32.xlu1 %v3500_v0, %s3693_s26  ;;  %92 = vperm.xlu0 %3497, %v3821_v9   ;;  %v3508_v43 = vpack.i.bf16 %v2716_v34, %v2715_v33  ;;  %v3277_v0 = vld [vmem:[#allocation2 + $0x44] sm:$0xf0]  ;;  %v2807_v33 = vld [vmem:[#allocation2 + $0xb0] sm:$0xf] }
  0xbd   :  { %3506 = vset.pattern.permute.xlu1 %v3689_v11  ;;  %953 = vmatpush.bf16.msra.mxu3 %v2968_v19  ;;  %v2752_v2 = vor.u32 %v3277_v0, %v2751_v63  ;;  %v3275_v19 = vld [vmem:[#allocation2 + $0x34] sm:$0xf0]  ;;  %v2680_v63 = vsel %vm135_vm7, 1.0, %v3692_v23 }
  0xbe   :  { %v81_v51 = vpop.permute.xlu2 %80 }
  0xbf   :  { %884 = vmatpush.bf16.msra.mxu0 %v2752_v2  ;;  %v294_v2 = vpop.permute.xlu0 %293  ;;  %vm95_vm14 = vcmp.eq.s32.totalorder %v81_v51, %v3855_v20 }
  0xc0   :  { %vm310_vm11 = vcmp.eq.s32.totalorder %v294_v2, %v3855_v20 }
  0xc1   :  { %3482 = vrot.lane.b32.xlu2 %v3481_v16, %s3693_s26  ;;  %v2936_v16 = vor.u32 %v3323_v6, %v2935_v15 }
  0xc2   :  { %v198_v22 = vpop.permute.xlu1 %197  ;;  %3496 = vset.pattern.permute.xlu2 %v3690_v12  ;;  %v3329_v12 = vld [vmem:[#allocation2 + $0x1e4] sm:$0xf0] }
  0xc3   :  { %vm206_vm3 = vcmp.eq.s32.totalorder %v198_v22, %v3855_v20  ;;  %v2960_v35 = vor.u32 %v3329_v12, %v2959_v31  ;;  %v2744_v22 = vor.u32 %v3275_v19, %v2743_v18  ;;  %v2928_v31 = vor.u32 %v3321_v30, %v2927_v29  ;;  %v3273_v12 = vld [vmem:[#allocation2 + $0x24] sm:$0xf0] }
  0xc4   :  { %161 = vperm.xlu1 %3506, %v3813_v8   ;;  %v2691_v24 = vsel %vm206_vm3, 1.0, %v3692_v23  ;;  %v2736_v34 = vor.u32 %v3273_v12, %v2735_v32  ;;  %v2670_v29 = vsel %vm95_vm14, 1.0, %v3692_v23  ;;  %v3314_v32 = vld [vmem:[#allocation2 + $0x174] sm:$0xf]  ;;  %v2905_v12 = vld [vmem:[#allocation2 + $0x178] sm:$0xf0] }
  0xc5   :  { %v3518_v27 = vpack.i.bf16 %v2692_v21, %v2691_v24  ;;  %954 = vmatpush.bf16.msra.mxu3 %v2960_v35  ;;  %v2815_v21 = vld [vmem:[#allocation2 + $0xc0] sm:$0xf]  ;;  %v3293_v24 = vld [vmem:[#allocation2 + $0xc4] sm:$0xf0]  ;;  %885 = vmatpush.bf16.msra.mxu0 %v2744_v22  ;;  %v3291_v35 = vld [vmem:[#allocation2 + $0xb4] sm:$0xf0]  ;;  %v2908_v36 = vor.u32 %v3314_v32, %v2905_v12 }
  0xc6   :  { %v2808_v38 = vor.u32 %v3291_v35, %v2807_v33 }
  0xc7   :  { %3519 = vrot.lane.b32.xlu0 %v3518_v27, %s3693_s26  ;;  %v2816_v27 = vor.u32 %v3293_v24, %v2815_v21  ;;  %v3959_v0 = vpop.permute.xlu2 %299  ;;  %v150_v18 = vpop.permute.xlu0 %149 }
  0xc8   :  { %vm166_vm15 = vcmp.eq.s32.totalorder %v150_v18, %v3855_v20  ;;  %v3328_v18 = vld [vmem:[#allocation2 + $0x1e4] sm:$0xf]  ;;  %vm312_vm3 = vcmp.eq.s32.totalorder %v3959_v0, %v3855_v20 }
  0xc9   :  { %233 = vperm.xlu2 %3496, %v3813_v8   ;;  %955 = vmatpush.bf16.msra.mxu3 %v2952_v49  ;;  %v3317_v49 = vld [vmem:[#allocation2 + $0x184] sm:$0xf0]  ;;  %v2681_v33 = vsel %vm166_vm15, 1.0, %v3692_v23  ;;  %v3300_v0 = vld [vmem:[#allocation2 + $0x104] sm:$0xf] }
  0xca   :  { %908 = vmatpush.bf16.msra.mxu1 %v2816_v27  ;;  %886 = vmatpush.bf16.msra.mxu0 %v2736_v34  ;;  %v2912_v50 = vor.u32 %v3317_v49, %v2911_v46  ;;  %v3310_v49 = vld [vmem:[#allocation2 + $0x154] sm:$0xf] }
  0xcb   :  { %v3939_v48 = vpop.permute.xlu1 %221 }
  0xcc   :  { %3509 = vrot.lane.b32.xlu1 %v3508_v43, %s3693_s26  ;;  %v2728_v43 = vor.u32 %v3271_v41, %v2727_v40  ;;  %vm238_vm8 = vcmp.eq.s32.totalorder %v3939_v48, %v3855_v20  ;;  %v2705_v48 = vsel %vm310_vm11, 1.0, %v3692_v23 }
  0xcd   :  { %956 = vmatpush.bf16.msra.mxu3 %v2944_v62  ;;  %v2679_v62 = vsel %vm134_vm6, 1.0, %v3692_v23  ;;  %v2693_v4 = vsel %vm238_vm8, 1.0, %v3692_v23 }
  0xce   :  { %909 = vmatpush.bf16.msra.mxu1 %v2808_v38  ;;  %887 = vmatpush.bf16.msra.mxu0 %v2728_v43  ;;  %v3312_v43 = vld [vmem:[#allocation2 + $0x164] sm:$0xf] }
  0xcf   :  { %v228_v40 = vpop.permute.xlu0 %227  ;;  %v2900_v46 = vor.u32 %v3312_v43, %v2897_v44 }
  0xd0   :  { %vm240_vm1 = vcmp.eq.s32.totalorder %v228_v40, %v3855_v20 }
  0xd1   :  { %3499 = vset.pattern.permute.xlu2 %v3688_v10  ;;  %957 = vmatpush.bf16.msra.mxu3 %v2936_v16  ;;  %v3301_v10 = vld [vmem:[#allocation2 + $0x104] sm:$0xf0]  ;;  %v2695_v51 = vsel %vm240_vm1, 1.0, %v3692_v23 }
  0xd2   :  { %308 = vperm.xlu2 %3499, %v3821_v9   ;;  %v2848_v28 = vor.u32 %v3301_v10, %v2847_v25  ;;  %910 = vmatpush.bf16.msra.mxu1 %v2800_v47 }
  0xd4   :  { %v3944_v17 = vpop.permute.xlu1 %296  ;;  %936 = vmatpush.bf16.msra.mxu2 %v2848_v28 }
  0xd5   :  { %958 = vmatpush.bf16.msra.mxu3 %v2928_v31  ;;  %vm311_vm12 = vcmp.eq.s32.totalorder %v3944_v17, %v3855_v20 }
  0xd6   :  { %911 = vmatpush.bf16.msra.mxu1 %v2792_v57  ;;  %v2706_v22 = vsel %vm311_vm12, 1.0, %v3692_v23 }
  0xd8   :  { %1025 = vmatpush.bf16.msrb.mxu2 %v2908_v36  ;;  %v2825_v36 = vld [vmem:[#allocation2 + $0xd8] sm:$0xf0] }
  0xd9   :  { %959 = vmatpush.bf16.msra.mxu3 %v2920_v39 }
  0xda   :  { %3505 = vset.pattern.permute.xlu2 %v3691_v13  ;;  %v2719_v13 = vld [vmem:[#allocation2] sm:$0xf]  ;;  %912 = vmatpush.bf16.msra.mxu1 %v2784_v60 }
  0xdb   :  { %89 = vperm.xlu2 %3505, %v3813_v8   ;;  %v2720_v8 = vor.u32 %v3269_v52, %v2719_v13 }
  0xdc   :  { %1026 = vmatpush.bf16.msrb.mxu2 %v2900_v46 }
  0xdd   :  { %v3950_v42 = vpop.permute.xlu1 %77  ;;  %960 = vmatpush.bf16.msra.mxu3 %v2912_v50  ;;  %888 = vmatpush.bf16.msra.mxu0 %v2720_v8  ;;  %v2889_v50 = vld [vmem:[#allocation2 + $0x158] sm:$0xf0] }
  0xde   :  { %vm94_vm13 = vcmp.eq.s32.totalorder %v3950_v42, %v3855_v20  ;;  %v2892_v52 = vor.u32 %v3310_v49, %v2889_v50 }
  0xdf   :  { %v2669_v28 = vsel %vm94_vm13, 1.0, %v3692_v23 }
  0xe0   :  { %1027 = vmatpush.bf16.msrb.mxu2 %v2892_v52  ;;  %v2849_v52 = vld [vmem:[#allocation2 + $0x108] sm:$0xf0] }
  0xe3   :  { %3507 = vset.pattern.permute.xlu2 %v3689_v11  ;;  %v3513_v11 = vpack.i.bf16 %v2680_v63, %v2679_v62  ;;  %v3306_v62 = vld [vmem:[#allocation2 + $0x134] sm:$0xf]  ;;  %v2873_v63 = vld [vmem:[#allocation2 + $0x138] sm:$0xf0] }
  0xe4   :  { %164 = vperm.xlu2 %3507, %v3821_v9   ;;  %v2876_v2 = vor.u32 %v3306_v62, %v2873_v63  ;;  %v2769_v62 = vld [vmem:[#allocation2 + $0x68] sm:$0xf0]  ;;  %v3292_v63 = vld [vmem:[#allocation2 + $0xc4] sm:$0xf] }
  0xe6   :  { %v153_v61 = vpop.permute.xlu1 %152 }
  0xe7   :  { %vm167_vm0 = vcmp.eq.s32.totalorder %v153_v61, %v3855_v20  ;;  %v2884_v61 = vor.u32 %v3308_v58, %v2881_v59 }
  0xe8   :  { %v2682_v39 = vsel %vm167_vm0, 1.0, %v3692_v23 }
  0xe9   :  { %1028 = vmatpush.bf16.msrb.mxu2 %v2884_v61 }
  0xec   :  { %3514 = vrot.lane.b32.xlu2 %v3513_v11, %s3693_s26 }
  0xed   :  { %1029 = vmatpush.bf16.msrb.mxu2 %v2876_v2 }
  0xef   :  { %v3962_v1 = vpop.permute.xlu1 %230 }
  0xf0   :  { %vm241_vm2 = vcmp.eq.s32.totalorder %v3962_v1, %v3855_v20 }
  0xf1   :  { %v2696_v54 = vsel %vm241_vm2, 1.0, %v3692_v23 }
  0xf3   :  { %v3455_v9 = vpop.permute.xlu2 %3454 }
  0xf4   :  { %v3457_v56 = vunpack.i.h.bf16 %v3455_v9  ;;  %v3456_v3 = vunpack.i.l.bf16 %v3455_v9  ;;  %v3330_v9 = vld [vmem:[#allocation2 + $0x1f4] sm:$0xf] }
  0xf6   :  { %v473_v7 = vsel %vm460_vm10, %v2693_v4, %v3456_v3  ;;  %v474_v14 = vsel %vm460_vm10, %v2694_v5, %v3457_v56  ;;  %v2969_v56 = vld [vmem:[#allocation2 + $0x1f8] sm:$0xf0]  ;;  %v3298_v3 = vld [vmem:[#allocation2 + $0xf4] sm:$0xf] }
  0xf7   :  { %v3974_v6 = vpack.c.bf16 %v474_v14, %v473_v7  ;;  %v2972_v5 = vor.u32 %v3330_v9, %v2969_v56  ;;  %v2841_v7 = vld [vmem:[#allocation2 + $0xf8] sm:$0xf0]  ;;  %v3322_v56 = vld [vmem:[#allocation2 + $0x1b4] sm:$0xf] }
  0xf8   :  { %v3972_v15 = vpop.permute.xlu1 %302  ;;  %v2844_v14 = vor.u32 %v3298_v3, %v2841_v7  ;;  %v2937_v3 = vld [vmem:[#allocation2 + $0x1b8] sm:$0xf0] }
  0xf9   :  { %937 = vmatmul.bf16.vlgmr.msra.gmra.mxu2 %v3974_v6  ;;  %1049 = vmatpush.bf16.msrb.mxu3 %v2972_v5  ;;  %vm313_vm4 = vcmp.eq.s32.totalorder %v3972_v15, %v3855_v20  ;;  %v2852_v15 = vor.u32 %v3300_v0, %v2849_v52  ;;  %v2940_v7 = vor.u32 %v3322_v56, %v2937_v3 }
  0xfa   :  { %1001 = vmatpush.bf16.msrb.mxu1 %v2844_v14  ;;  %v2708_v43 = vsel %vm313_vm4, 1.0, %v3692_v23  ;;  %v3278_v14 = vld [vmem:[#allocation2 + $0x54] sm:$0xf] }
  0xfb   :  { %v3460_v16 = vpop.permute.xlu2 %3459 }
  0xfc   :  { %v3462_v19 = vunpack.i.h.bf16 %v3460_v16  ;;  %v3461_v21 = vunpack.i.l.bf16 %v3460_v16  ;;  %v2865_v16 = vld [vmem:[#allocation2 + $0x128] sm:$0xf0] }
  0xfe   :  { %v479_v24 = vsel %vm460_vm10, %v2705_v48, %v3461_v21  ;;  %v480_v25 = vsel %vm460_vm10, %v2706_v22, %v3462_v19  ;;  %v3304_v48 = vld [vmem:[#allocation2 + $0x124] sm:$0xf]  ;;  %v2961_v21 = vld [vmem:[#allocation2 + $0x1e8] sm:$0xf0] }
  0xff   :  { %v3987_v26 = vpack.c.bf16 %v480_v25, %v479_v24  ;;  %v2868_v19 = vor.u32 %v3304_v48, %v2865_v16  ;;  %v3296_v22 = vld [vmem:[#allocation2 + $0xe4] sm:$0xf]  ;;  %v2833_v24 = vld [vmem:[#allocation2 + $0xe8] sm:$0xf0]  ;;  %v2964_v25 = vor.u32 %v3328_v18, %v2961_v21  ;;  %v2761_v48 = vld [vmem:[#allocation2 + $0x58] sm:$0xf0] }
 0x100   :  { %v3465_v10 = vpop.permute.xlu1 %3464  ;;  %v3290_v16 = vld [vmem:[#allocation2 + $0xb4] sm:$0xf]  ;;  %v2809_v21 = vld [vmem:[#allocation2 + $0xb8] sm:$0xf0] }
 0x101   :  { %v3467_v17 = vunpack.i.h.bf16 %v3465_v10  ;;  %v3466_v27 = vunpack.i.l.bf16 %v3465_v10  ;;  %961 = vmatmul.bf16.vlgmr.msra.gmra.mxu3 %v3987_v26  ;;  %v2836_v10 = vor.u32 %v3296_v22, %v2833_v24  ;;  %1030 = vmatpush.bf16.msrb.mxu2 %v2868_v19  ;;  %v2764_v19 = vor.u32 %v3278_v14, %v2761_v48 }
 0x102   :  { %1050 = vmatpush.bf16.msrb.mxu3 %v2964_v25 }
 0x103   :  { %v461_v30 = vsel %vm460_vm10, %v2669_v28, %v3466_v27  ;;  %v462_v31 = vsel %vm460_vm10, %v2670_v29, %v3467_v17  ;;  %v3471_v34 = vpop.permute.xlu2 %3470  ;;  %v3302_v17 = vld [vmem:[#allocation2 + $0x114] sm:$0xf]  ;;  %v2857_v27 = vld [vmem:[#allocation2 + $0x118] sm:$0xf0]  ;;  %1002 = vmatpush.bf16.msrb.mxu1 %v2836_v10  ;;  %v2812_v10 = vor.u32 %v3290_v16, %v2809_v21  ;;  %v3268_v16 = vld [vmem:[#allocation2 + $0x4] sm:$0xf] }
 0x104   :  { %v3997_v35 = vpack.c.bf16 %v462_v31, %v461_v30  ;;  %v3473_v37 = vunpack.i.h.bf16 %v3471_v34  ;;  %v3472_v38 = vunpack.i.l.bf16 %v3471_v34  ;;  %v3326_v28 = vld [vmem:[#allocation2 + $0x1d4] sm:$0xf]  ;;  %v2953_v29 = vld [vmem:[#allocation2 + $0x1d8] sm:$0xf0]  ;;  %v2860_v32 = vor.u32 %v3302_v17, %v2857_v27  ;;  %v3320_v27 = vld [vmem:[#allocation2 + $0x1a4] sm:$0xf] }
 0x105   :  { %v3282_v30 = vld [vmem:[#allocation2 + $0x74] sm:$0xf]  ;;  %v2777_v31 = vld [vmem:[#allocation2 + $0x78] sm:$0xf0]  ;;  %v2956_v12 = vor.u32 %v3326_v28, %v2953_v29  ;;  %v2929_v28 = vld [vmem:[#allocation2 + $0x1a8] sm:$0xf0] }
 0x106   :  { %889 = vmatmul.bf16.vlgmr.msra.gmra.mxu0 %v3997_v35  ;;  %v467_v41 = vsel %vm460_vm10, %v2681_v33, %v3472_v38  ;;  %v468_v42 = vsel %vm460_vm10, %v2682_v39, %v3473_v37  ;;  %v2780_v33 = vor.u32 %v3282_v30, %v2777_v31  ;;  %v3294_v34 = vld [vmem:[#allocation2 + $0xd4] sm:$0xf]  ;;  %1031 = vmatpush.bf16.msrb.mxu2 %v2860_v32  ;;  %v3276_v31 = vld [vmem:[#allocation2 + $0x44] sm:$0xf]  ;;  %v2753_v32 = vld [vmem:[#allocation2 + $0x48] sm:$0xf0] }
 0x107   :  { %v4003_v45 = vpack.c.bf16 %v468_v42, %v467_v41  ;;  %v2828_v38 = vor.u32 %v3294_v34, %v2825_v36  ;;  %v2707_v42 = vsel %vm312_vm3, 1.0, %v3692_v23  ;;  %1051 = vmatpush.bf16.msrb.mxu3 %v2956_v12  ;;  %v2932_v30 = vor.u32 %v3320_v27, %v2929_v28  ;;  %v3288_v34 = vld [vmem:[#allocation2 + $0xa4] sm:$0xf]  ;;  %v2801_v36 = vld [vmem:[#allocation2 + $0xa8] sm:$0xf0] }
 0x108   :  { %v4007_v47 = vpop.permute.xlu1 %86  ;;  %977 = vmatpush.bf16.msrb.mxu0 %v2780_v33  ;;  %v2756_v33 = vor.u32 %v3276_v31, %v2753_v32  ;;  %vm1615_vm3 = vcmask 64512  }
 0x109   :  { %913 = vmatmul.bf16.vlgmr.msra.gmra.mxu1 %v4003_v45  ;;  %vm97_vm7 = vcmp.eq.s32.totalorder %v4007_v47, %v3855_v20 }
 0x10a   :  { %1003 = vmatpush.bf16.msrb.mxu1 %v2828_v38  ;;  %1032 = vmatpush.bf16.msrb.mxu2 %v2852_v15  ;;  %v2672_v22 = vsel %vm97_vm7, 1.0, %v3692_v23  ;;  %v3318_v38 = vld [vmem:[#allocation2 + $0x194] sm:$0xf]  ;;  %v2737_v15 = vld [vmem:[#allocation2 + $0x28] sm:$0xf0] }
 0x10b   :  { %v3476_v13 = vpop.permute.xlu2 %3475 }
 0x10c   :  { %v3478_v53 = vunpack.i.h.bf16 %v3476_v13  ;;  %v3477_v8 = vunpack.i.l.bf16 %v3476_v13 }
 0x10e   :  { %v475_v55 = vsel %vm460_vm10, %v2695_v51, %v3477_v8  ;;  %v476_v57 = vsel %vm460_vm10, %v2696_v54, %v3478_v53  ;;  %v3324_v8 = vld [vmem:[#allocation2 + $0x1c4] sm:$0xf]  ;;  %v2945_v54 = vld [vmem:[#allocation2 + $0x1c8] sm:$0xf0] }
 0x10f   :  { %v4015_v60 = vpack.c.bf16 %v476_v57, %v475_v55  ;;  %v3280_v55 = vld [vmem:[#allocation2 + $0x64] sm:$0xf]  ;;  %v2948_v61 = vor.u32 %v3324_v8, %v2945_v54 }
 0x110   :  { %v2772_v2 = vor.u32 %v3280_v55, %v2769_v62  ;;  %v3284_v8 = vld [vmem:[#allocation2 + $0x84] sm:$0xf] }
 0x111   :  { %942 = vmatmul.bf16.gmra.mxu2 %v4015_v60  ;;  %v159_v1 = vpop.permute.xlu1 %158  ;;  %1052 = vmatpush.bf16.msrb.mxu3 %v2948_v61 }
 0x112   :  { %vm169_vm5 = vcmp.eq.s32.totalorder %v159_v1, %v3855_v20  ;;  %978 = vmatpush.bf16.msrb.mxu0 %v2772_v2 }
 0x113   :  { %v156_v11 = vpop.permute.xlu2 %155  ;;  %v2684_v44 = vsel %vm169_vm5, 1.0, %v3692_v23 }
 0x114   :  { %vm168_vm6 = vcmp.eq.s32.totalorder %v156_v11, %v3855_v20  ;;  %v2817_v11 = vld [vmem:[#allocation2 + $0xc8] sm:$0xf0] }
 0x115   :  { %v4018_v4 = vpop.permute.xlu0 %3487  ;;  %v2683_v49 = vsel %vm168_vm6, 1.0, %v3692_v23  ;;  %v2820_v9 = vor.u32 %v3292_v63, %v2817_v11  ;;  %1053 = vmatpush.bf16.msrb.mxu3 %v2940_v7  ;;  %v2729_v7 = vld [vmem:[#allocation2 + $0x18] sm:$0xf0] }
 0x116   :  { %v3490_v18 = vunpack.i.h.bf16 %v4018_v4  ;;  %v3489_v17 = vunpack.i.l.bf16 %v4018_v4  ;;  %979 = vmatpush.bf16.msrb.mxu0 %v2764_v19 }
 0x117   :  { %1004 = vmatpush.bf16.msrb.mxu1 %v2820_v9 }
 0x118   :  { %v464_v47 = vsel %vm460_vm10, %v2672_v22, %v3490_v18  ;;  %v2721_v18 = vld [vmem:[#allocation2 + $0x8] sm:$0xf0] }
 0x119   :  { %1054 = vmatpush.bf16.msrb.mxu3 %v2932_v30  ;;  %v2724_v19 = vor.u32 %v3268_v16, %v2721_v18  ;;  %v2993_v18 = vld [vmem:[%s4979_s2 + $0x28] sm:$0xf0] }
 0x11a   :  { %980 = vmatpush.bf16.msrb.mxu0 %v2756_v33 }
 0x11b   :  { %v3483_v37 = vpop.permute.xlu2 %3482  ;;  %1005 = vmatpush.bf16.msrb.mxu1 %v2812_v10 }
 0x11c   :  { %v3485_v39 = vunpack.i.h.bf16 %v3483_v37  ;;  %v3484_v40 = vunpack.i.l.bf16 %v3483_v37  ;;  %v2804_v37 = vor.u32 %v3288_v34, %v2801_v36 }
 0x11d   :  { %v4026_v41 = vpop.permute.xlu0 %236 }
 0x11e   :  { %v3493_v46 = vpop.permute.xlu1 %3492  ;;  %v481_v13 = vsel %vm460_vm10, %v2707_v42, %v3484_v40  ;;  %v482_v53 = vsel %vm460_vm10, %v2708_v43, %v3485_v39  ;;  %v2921_v39 = vld [vmem:[#allocation2 + $0x198] sm:$0xf0]  ;;  %v3274_v42 = vld [vmem:[#allocation2 + $0x34] sm:$0xf]  ;;  %vm243_vm9 = vcmp.eq.s32.totalorder %v4026_v41, %v3855_v20 }
 0x11f   :  { %v3495_v50 = vunpack.i.h.bf16 %v3493_v46  ;;  %v3494_v51 = vunpack.i.l.bf16 %v3493_v46  ;;  %v4042_v57 = vpack.c.bf16 %v482_v53, %v481_v13  ;;  %v2924_v40 = vor.u32 %v3318_v38, %v2921_v39  ;;  %v2745_v43 = vld [vmem:[#allocation2 + $0x38] sm:$0xf0]  ;;  %1006 = vmatpush.bf16.msrb.mxu1 %v2804_v37  ;;  %v2913_v13 = vld [vmem:[#allocation2 + $0x188] sm:$0xf0]  ;;  %v3272_v53 = vld [vmem:[#allocation2 + $0x24] sm:$0xf] }
 0x120   :  { %v2740_v63 = vor.u32 %v3272_v53, %v2737_v15  ;;  %v3270_v41 = vld [vmem:[#allocation2 + $0x14] sm:$0xf]  ;;  %v3025_v53 = vld [vmem:[%s4979_s2 + $0x68] sm:$0xf0] }
 0x121   :  { %v469_v58 = vsel %vm460_vm10, %v2683_v49, %v3494_v51  ;;  %v470_v59 = vsel %vm460_vm10, %v2684_v44, %v3495_v50  ;;  %966 = vmatmul.bf16.gmra.mxu3 %v4042_v57  ;;  %v3286_v44 = vld [vmem:[#allocation2 + $0x94] sm:$0xf]  ;;  %v2748_v49 = vor.u32 %v3274_v42, %v2745_v43  ;;  %v2793_v50 = vld [vmem:[#allocation2 + $0x98] sm:$0xf0]  ;;  %v3316_v51 = vld [vmem:[#allocation2 + $0x184] sm:$0xf] }
 0x122   :  { %v4046_v1 = vpack.c.bf16 %v470_v59, %v469_v58  ;;  %v2796_v52 = vor.u32 %v3286_v44, %v2793_v50  ;;  %v2785_v58 = vld [vmem:[#allocation2 + $0x88] sm:$0xf0]  ;;  %v2698_v59 = vsel %vm243_vm9, 1.0, %v3692_v23  ;;  %1055 = vmatpush.bf16.msrb.mxu3 %v2924_v40  ;;  %v2916_v62 = vor.u32 %v3316_v51, %v2913_v13  ;;  %v3346_v50 = vld [vmem:[%s4979_s2 + $0x74] sm:$0xf] }
 0x123   :  { %v234_v5 = vpop.permute.xlu2 %233  ;;  %981 = vmatpush.bf16.msrb.mxu0 %v2748_v49  ;;  %v2788_v56 = vor.u32 %v3284_v8, %v2785_v58  ;;  %v3347_v49 = vld [vmem:[%s4979_s2 + $0x74] sm:$0xf0]  ;;  %v3345_v13 = vld [vmem:[%s4979_s2 + $0x64] sm:$0xf0]  ;;  %v3015_v8 = vld [vmem:[%s4979_s2 + $0x50] sm:$0xf] }
 0x124   :  { %918 = vmatmul.bf16.gmra.mxu1 %v4046_v1  ;;  %vm242_vm11 = vcmp.eq.s32.totalorder %v234_v5, %v3855_v20  ;;  %v2732_v5 = vor.u32 %v3270_v41, %v2729_v7 }
 0x125   :  { %v2697_v61 = vsel %vm242_vm11, 1.0, %v3692_v23  ;;  %1007 = vmatpush.bf16.msrb.mxu1 %v2796_v52 }
 0x126   :  { %v84_v24 = vpop.permute.xlu0 %83  ;;  %v4057_v25 = vpop.permute.xlu1 %305  ;;  %1056 = vmatpush.bf16.msrb.mxu3 %v2916_v62  ;;  %v3341_v62 = vld [vmem:[%s4979_s2 + $0x44] sm:$0xf0] }
 0x127   :  { %vm96_vm8 = vcmp.eq.s32.totalorder %v84_v24, %v3855_v20  ;;  %982 = vmatpush.bf16.msrb.mxu0 %v2740_v63  ;;  %vm314_vm13 = vcmp.eq.s32.totalorder %v4057_v25, %v3855_v20  ;;  %v3340_v63 = vld [vmem:[%s4979_s2 + $0x44] sm:$0xf] }
 0x128   :  { %v2671_v29 = vsel %vm96_vm8, 1.0, %v3692_v23  ;;  %v2709_v30 = vsel %vm314_vm13, 1.0, %v3692_v23 }
 0x129   :  { %v463_v12 = vsel %vm460_vm10, %v2671_v29, %v3489_v17  ;;  %1008 = vmatpush.bf16.msrb.mxu1 %v2788_v56  ;;  %v2999_v56 = vld [vmem:[%s4979_s2 + $0x30] sm:$0xf] }
 0x12a   :  { %v4064_v4 = vpack.c.bf16 %v464_v47, %v463_v12 }
 0x12b   :  { %983 = vmatpush.bf16.msrb.mxu0 %v2732_v5  ;;  %v2991_v5 = vld [vmem:[%s4979_s2 + $0x20] sm:$0xf] }
 0x12c   :  { %894 = vmatmul.bf16.gmra.mxu0 %v4064_v4  ;;  %v309_v46 = vpop.permute.xlu2 %308 }
 0x12d   :  { %vm315_vm14 = vcmp.eq.s32.totalorder %v309_v46, %v3855_v20 }
 0x12e   :  { %v3502_v0 = vpop.permute.xlu1 %3501  ;;  %v93_v9 = vpop.permute.xlu0 %92  ;;  %v2710_v31 = vsel %vm315_vm14, 1.0, %v3692_v23 }
 0x12f   :  { %v3504_v54 = vunpack.i.h.bf16 %v3502_v0  ;;  %v3503_v55 = vunpack.i.l.bf16 %v3502_v0  ;;  %984 = vmatpush.bf16.msrb.mxu0 %v2724_v19  ;;  %vm99_vm0 = vcmp.eq.s32.totalorder %v93_v9, %v3855_v20  ;;  %v3344_v0 = vld [vmem:[%s4979_s2 + $0x64] sm:$0xf] }
 0x130   :  { %v2674_v40 = vsel %vm99_vm0, 1.0, %v3692_v23  ;;  %v3028_v15 = vor.u32 %v3344_v0, %v3025_v53 }
 0x131   :  { %v477_v11 = vsel %vm460_vm10, %v2697_v61, %v3503_v55  ;;  %v478_v2 = vsel %vm460_vm10, %v2698_v59, %v3504_v54  ;;  %v3343_v54 = vld [vmem:[%s4979_s2 + $0x54] sm:$0xf0]  ;;  %v3342_v55 = vld [vmem:[%s4979_s2 + $0x54] sm:$0xf]  ;;  %v3017_v59 = vld [vmem:[%s4979_s2 + $0x58] sm:$0xf0] }
 0x132   :  { %v4079_v3 = vpack.c.bf16 %v478_v2, %v477_v11  ;;  %v3016_v58 = vor.u32 %v3343_v54, %v3015_v8  ;;  %v3007_v61 = vld [vmem:[%s4979_s2 + $0x40] sm:$0xf]  ;;  %v3009_v2 = vld [vmem:[%s4979_s2 + $0x48] sm:$0xf0]  ;;  %v3361_v54 = vld [vmem:[%s4979_s2 + $0xe4] sm:$0xf0] }
 0x133   :  { %v3008_v11 = vor.u32 %v3341_v62, %v3007_v61  ;;  %v3012_v9 = vor.u32 %v3340_v63, %v3009_v2  ;;  %v3087_v8 = vld [vmem:[%s4979_s2 + $0xe0] sm:$0xf]  ;;  %v3079_v2 = vld [vmem:[%s4979_s2 + $0xd0] sm:$0xf] }
 0x134   :  { %947 = vmatmul.bf16.gmra.mxu2 %v4079_v3 }
 0x135   :  { %v90_v14 = vpop.permute.xlu2 %89 }
 0x136   :  { %v162_v48 = vpop.permute.xlu1 %161  ;;  %vm98_vm1 = vcmp.eq.s32.totalorder %v90_v14, %v3855_v20  ;;  %v3337_v14 = vld [vmem:[%s4979_s2 + $0x24] sm:$0xf0] }
 0x137   :  { %vm170_vm12 = vcmp.eq.s32.totalorder %v162_v48, %v3855_v20  ;;  %v2673_v42 = vsel %vm98_vm1, 1.0, %v3692_v23  ;;  %v3336_v48 = vld [vmem:[%s4979_s2 + $0x24] sm:$0xf]  ;;  %v2992_v16 = vor.u32 %v3337_v14, %v2991_v5 }
 0x138   :  { %v2685_v17 = vsel %vm170_vm12, 1.0, %v3692_v23  ;;  %v2996_v19 = vor.u32 %v3336_v48, %v2993_v18  ;;  %v3357_v18 = vld [vmem:[%s4979_s2 + $0xc4] sm:$0xf0] }
 0x139   :  { %v3520_v21 = vpop.permute.xlu0 %3519 }
 0x13a   :  { %v3522_v22 = vunpack.i.h.bf16 %v3520_v21  ;;  %v3521_v24 = vunpack.i.l.bf16 %v3520_v21  ;;  %v2983_v21 = vld [vmem:[%s4979_s2 + $0x10] sm:$0xf] }
 0x13c   :  { %v471_v33 = vsel %vm460_vm10, %v2685_v17, %v3521_v24  ;;  %v3334_v24 = vld [vmem:[%s4979_s2 + $0x14] sm:$0xf] }
 0x13e   :  { %v3510_v10 = vpop.permute.xlu1 %3509  ;;  %v165_v29 = vpop.permute.xlu2 %164 }
 0x13f   :  { %v3512_v27 = vunpack.i.h.bf16 %v3510_v10  ;;  %v3511_v28 = vunpack.i.l.bf16 %v3510_v10  ;;  %vm171_vm15 = vcmp.eq.s32.totalorder %v165_v29, %v3855_v20  ;;  %v3332_v29 = vld [vmem:[%s4979_s2 + $0x4] sm:$0xf] }
 0x140   :  { %v2686_v32 = vsel %vm171_vm15, 1.0, %v3692_v23  ;;  %vm1790_vm15 = vcmask 1043456  }
 0x141   :  { %v483_v25 = vsel %vm460_vm10, %v2709_v30, %v3511_v28  ;;  %v484_v12 = vsel %vm460_vm10, %v2710_v31, %v3512_v27  ;;  %v472_v34 = vsel %vm460_vm10, %v2686_v32, %v3522_v22  ;;  %v3335_v22 = vld [vmem:[%s4979_s2 + $0x14] sm:$0xf0]  ;;  %v2975_v27 = vld [vmem:[%s4979_s2] sm:$0xf]  ;;  %v3333_v28 = vld [vmem:[%s4979_s2 + $0x4] sm:$0xf0] }
 0x142   :  { %v4093_v47 = vpack.c.bf16 %v484_v12, %v483_v25  ;;  %v4097_v36 = vpack.c.bf16 %v472_v34, %v471_v33  ;;  %v2984_v10 = vor.u32 %v3335_v22, %v2983_v21  ;;  %v2976_v30 = vor.u32 %v3333_v28, %v2975_v27  ;;  %v2977_v31 = vld [vmem:[%s4979_s2 + $0x8] sm:$0xf0]  ;;  %v3354_v27 = vld [vmem:[%s4979_s2 + $0xb4] sm:$0xf] }
 0x143   :  { %v2980_v32 = vor.u32 %v3332_v29, %v2977_v31  ;;  %v3073_v22 = vld [vmem:[%s4979_s2 + $0xc8] sm:$0xf0]  ;;  %v3065_v29 = vld [vmem:[%s4979_s2 + $0xb8] sm:$0xf0] }
 0x144   :  { %971 = vmatmul.bf16.gmra.mxu3 %v4093_v47  ;;  %1033 = vmatmul.bf16.vlgmr.msrb.gmra.mxu2 %v3974_v6  ;;  %v3031_v6 = vld [vmem:[%s4979_s2 + $0x70] sm:$0xf] }
 0x145   :  { %923 = vmatmul.bf16.gmra.mxu1 %v4097_v36  ;;  %v3032_v51 = vor.u32 %v3347_v49, %v3031_v6 }
 0x146   :  { %v3515_v37 = vpop.permute.xlu2 %3514 }
 0x147   :  { %v3517_v38 = vunpack.i.h.bf16 %v3515_v37  ;;  %v3516_v39 = vunpack.i.l.bf16 %v3515_v37  ;;  %1277 = vmatpush.bf16.msra.mxu0 %v3032_v51 }
 0x149   :  { %v465_v43 = vsel %vm460_vm10, %v2673_v42, %v3516_v39  ;;  %v466_v44 = vsel %vm460_vm10, %v2674_v40, %v3517_v38 }
 0x14a   :  { %v4108_v46 = vpack.c.bf16 %v466_v44, %v465_v43 }
 0x14c   :  { %899 = vmatmul.bf16.gmra.mxu0 %v4108_v46 }
 0x154   :  { %1038 = vmatmul.bf16.gmra.mxu2 %v4015_v60  ;;  %1057 = vmatmul.bf16.vlgmr.msrb.gmra.mxu3 %v3987_v26  ;;  %v3033_v60 = vld [vmem:[%s4979_s2 + $0x78] sm:$0xf0] }
 0x155   :  { %1009 = vmatmul.bf16.vlgmr.msrb.gmra.mxu1 %v4003_v45  ;;  %v3036_v26 = vor.u32 %v3346_v50, %v3033_v60  ;;  %v3023_v45 = vld [vmem:[%s4979_s2 + $0x60] sm:$0xf]  ;;  %v3095_v60 = vld [vmem:[%s4979_s2 + $0xf0] sm:$0xf] }
 0x156   :  { %v3024_v52 = vor.u32 %v3345_v13, %v3023_v45  ;;  %v3362_v45 = vld [vmem:[%s4979_s2 + $0xf4] sm:$0xf] }
 0x157   :  { %1325 = vmatpush.bf16.msra.mxu2 %v3036_v26  ;;  %v3363_v26 = vld [vmem:[%s4979_s2 + $0xf4] sm:$0xf0] }
 0x158   :  { %1278 = vmatpush.bf16.msra.mxu0 %v3024_v52  ;;  %v3096_v0 = vor.u32 %v3363_v26, %v3095_v60  ;;  %v3097_v52 = vld [vmem:[%s4979_s2 + $0xf8] sm:$0xf0] }
 0x159   :  { %v3100_v53 = vor.u32 %v3362_v45, %v3097_v52  ;;  %v3041_v45 = vld [vmem:[%s4979_s2 + $0x88] sm:$0xf0] }
 0x15a   :  { %1301 = vmatpush.bf16.msra.mxu1 %v3096_v0 }
 0x15b   :  { %1326 = vmatpush.bf16.msra.mxu2 %v3028_v15  ;;  %1349 = vmatpush.bf16.msra.mxu3 %v3100_v53 }
 0x15c   :  { %985 = vmatmul.bf16.vlgmr.msrb.gmra.mxu0 %v3997_v35  ;;  %v3020_v35 = vor.u32 %v3342_v55, %v3017_v59  ;;  %v3360_v55 = vld [vmem:[%s4979_s2 + $0xe4] sm:$0xf]  ;;  %v3089_v59 = vld [vmem:[%s4979_s2 + $0xe8] sm:$0xf0] }
 0x15d   :  { %1279 = vmatpush.bf16.msra.mxu0 %v3016_v58  ;;  %v3088_v58 = vor.u32 %v3361_v54, %v3087_v8 }
 0x15f   :  { %1327 = vmatpush.bf16.msra.mxu2 %v3020_v35  ;;  %v3092_v35 = vor.u32 %v3360_v55, %v3089_v59  ;;  %1302 = vmatpush.bf16.msra.mxu1 %v3088_v58 }
 0x161   :  { %1280 = vmatpush.bf16.msra.mxu0 %v3008_v11  ;;  %1350 = vmatpush.bf16.msra.mxu3 %v3092_v35 }
 0x163   :  { %1328 = vmatpush.bf16.msra.mxu2 %v3012_v9  ;;  %v3359_v9 = vld [vmem:[%s4979_s2 + $0xd4] sm:$0xf0] }
 0x164   :  { %1043 = vmatmul.bf16.gmra.mxu2 %v4079_v3  ;;  %1062 = vmatmul.bf16.gmra.mxu3 %v4042_v57  ;;  %v3339_v3 = vld [vmem:[%s4979_s2 + $0x34] sm:$0xf0]  ;;  %v3338_v57 = vld [vmem:[%s4979_s2 + $0x34] sm:$0xf] }
 0x165   :  { %1014 = vmatmul.bf16.gmra.mxu1 %v4046_v1  ;;  %v3000_v41 = vor.u32 %v3339_v3, %v2999_v56  ;;  %v3001_v1 = vld [vmem:[%s4979_s2 + $0x38] sm:$0xf0]  ;;  %v3358_v56 = vld [vmem:[%s4979_s2 + $0xd4] sm:$0xf] }
 0x166   :  { %v3004_v7 = vor.u32 %v3338_v57, %v3001_v1  ;;  %v3080_v57 = vor.u32 %v3359_v9, %v3079_v2 }
 0x167   :  { %1281 = vmatpush.bf16.msra.mxu0 %v3000_v41  ;;  %v3081_v41 = vld [vmem:[%s4979_s2 + $0xd8] sm:$0xf0] }
 0x168   :  { %1329 = vmatpush.bf16.msra.mxu2 %v3004_v7  ;;  %v3084_v7 = vor.u32 %v3358_v56, %v3081_v41  ;;  %1303 = vmatpush.bf16.msra.mxu1 %v3080_v57 }
 0x16a   :  { %1351 = vmatpush.bf16.msra.mxu3 %v3084_v7 }
 0x16b   :  { %1282 = vmatpush.bf16.msra.mxu0 %v2992_v16  ;;  %v3071_v16 = vld [vmem:[%s4979_s2 + $0xc0] sm:$0xf] }
 0x16c   :  { %990 = vmatmul.bf16.gmra.mxu0 %v4064_v4  ;;  %1330 = vmatpush.bf16.msra.mxu2 %v2996_v19  ;;  %v2985_v4 = vld [vmem:[%s4979_s2 + $0x18] sm:$0xf0]  ;;  %v3356_v19 = vld [vmem:[%s4979_s2 + $0xc4] sm:$0xf]  ;;  %v3072_v21 = vor.u32 %v3357_v18, %v3071_v16 }
 0x16d   :  { %v2988_v17 = vor.u32 %v3334_v24, %v2985_v4  ;;  %v3063_v4 = vld [vmem:[%s4979_s2 + $0xb0] sm:$0xf] }
 0x16e   :  { %1304 = vmatpush.bf16.msra.mxu1 %v3072_v21 }
 0x16f   :  { %1283 = vmatpush.bf16.msra.mxu0 %v2984_v10  ;;  %v3076_v10 = vor.u32 %v3356_v19, %v3073_v22 }
 0x170   :  { %1331 = vmatpush.bf16.msra.mxu2 %v2988_v17  ;;  %v3355_v17 = vld [vmem:[%s4979_s2 + $0xb4] sm:$0xf0] }
 0x171   :  { %1352 = vmatpush.bf16.msra.mxu3 %v3076_v10  ;;  %v3064_v28 = vor.u32 %v3355_v17, %v3063_v4 }
 0x173   :  { %1284 = vmatpush.bf16.msra.mxu0 %v2976_v30  ;;  %v3068_v30 = vor.u32 %v3354_v27, %v3065_v29  ;;  %1305 = vmatpush.bf16.msra.mxu1 %v3064_v28 }
 0x174   :  { %1067 = vmatmul.bf16.gmra.mxu3 %v4093_v47  ;;  %1332 = vmatpush.bf16.msra.mxu2 %v2980_v32  ;;  %v3055_v32 = vld [vmem:[%s4979_s2 + $0xa0] sm:$0xf] }
 0x175   :  { %1019 = vmatmul.bf16.gmra.mxu1 %v4097_v36  ;;  %1353 = vmatpush.bf16.msra.mxu3 %v3068_v30 }
 0x17c   :  { %995 = vmatmul.bf16.gmra.mxu0 %v4108_v46  ;;  %v938_v12 = vpop.f32.mrf.mxu2 }
 0x183   :  { %v890_v25 = vpop.f32.mrf.mxu0 }
 0x184   :  { %v962_v34 = vpop.f32.mrf.mxu3  ;;  %v940_v42 = vpop.f32.mrf.mxu2 }
 0x186   :  { %v914_v33 = vpop.f32.mrf.mxu1 }
 0x187   :  { %v915_v37 = vadd.f32 %v914_v33, %v890_v25  ;;  %v3353_v25 = vld [vmem:[%s4979_s2 + $0xa4] sm:$0xf0] }
 0x188   :  { %v3056_v33 = vor.u32 %v3353_v25, %v3055_v32 }
 0x189   :  { %v939_v47 = vadd.f32 %v938_v12, %v915_v37  ;;  %v3352_v12 = vld [vmem:[%s4979_s2 + $0xa4] sm:$0xf] }
 0x18a   :  { %1306 = vmatpush.bf16.msra.mxu1 %v3056_v33 }
 0x18b   :  { %v892_v38 = vpop.f32.mrf.mxu0  ;;  %v4218_v6 = vadd.f32 %v962_v34, %v939_v47  ;;  %v3057_v34 = vld [vmem:[%s4979_s2 + $0xa8] sm:$0xf0]  ;;  %v3351_v47 = vld [vmem:[%s4979_s2 + $0x94] sm:$0xf0] }
 0x18c   :  { %v964_v44 = vpop.f32.mrf.mxu3  ;;  %v3060_v37 = vor.u32 %v3352_v12, %v3057_v34 }
 0x18e   :  { %v916_v39 = vpop.f32.mrf.mxu1  ;;  %1354 = vmatpush.bf16.msra.mxu3 %v3060_v37 }
 0x18f   :  { %v917_v40 = vadd.f32 %v916_v39, %v892_v38  ;;  %v3047_v39 = vld [vmem:[%s4979_s2 + $0x90] sm:$0xf] }
 0x191   :  { %v941_v43 = vadd.f32 %v940_v42, %v917_v40  ;;  %v3350_v40 = vld [vmem:[%s4979_s2 + $0x94] sm:$0xf]  ;;  %v3048_v42 = vor.u32 %v3351_v47, %v3047_v39 }
 0x193   :  { %v4220_v36 = vadd.f32 %v964_v44, %v941_v43  ;;  %v3049_v43 = vld [vmem:[%s4979_s2 + $0x98] sm:$0xf0]  ;;  %1307 = vmatpush.bf16.msra.mxu1 %v3048_v42 }
 0x194   :  { %v943_v50 = vpop.f32.mrf.mxu2  ;;  %v3052_v44 = vor.u32 %v3350_v40, %v3049_v43 }
 0x195   :  { %v1073_v49 = vpack.c.bf16 %v4220_v36, %v4218_v6 }
 0x196   :  { %1355 = vmatpush.bf16.msra.mxu3 %v3052_v44 }
 0x197   :  { %1285 = vmatmul.bf16.vlgmr.msra.gmra.mxu0 %v1073_v49  ;;  %1333 = vmatmul.bf16.vlgmr.msra.gmra.mxu2 %v1073_v49  ;;  %v3039_v49 = vld [vmem:[%s4979_s2 + $0x80] sm:$0xf] }
 0x19c   :  { %v945_v3 = vpop.f32.mrf.mxu2 }
 0x1a1   :  { %v919_v46 = vpop.f32.mrf.mxu1 }
 0x1a4   :  { %v967_v13 = vpop.f32.mrf.mxu3 }
 0x1a9   :  { %v895_v51 = vpop.f32.mrf.mxu0  ;;  %v921_v61 = vpop.f32.mrf.mxu1 }
 0x1aa   :  { %v920_v15 = vadd.f32 %v919_v46, %v895_v51  ;;  %v3349_v46 = vld [vmem:[%s4979_s2 + $0x84] sm:$0xf0] }
 0x1ab   :  { %v3040_v26 = vor.u32 %v3349_v46, %v3039_v49 }
 0x1ac   :  { %v944_v63 = vadd.f32 %v943_v50, %v920_v15  ;;  %v969_v5 = vpop.f32.mrf.mxu3  ;;  %v3348_v50 = vld [vmem:[%s4979_s2 + $0x84] sm:$0xf]  ;;  %s3700_s2 = smov 40  }
 0x1ad   :  { %1308 = vmatpush.bf16.msra.mxu1 %v3040_v26 }
 0x1ae   :  { %v4260_v14 = vadd.f32 %v967_v13, %v944_v63  ;;  %v3044_v13 = vor.u32 %v3348_v50, %v3041_v45  ;;  %v3371_v45 = vld [vmem:[%s4980_s3 + $0x38] sm:$0xff] }
 0x1af   :  { %1519 = vmatpush.bf16.msrb.mxu0 %v3371_v45 }
 0x1b0   :  { %1356 = vmatpush.bf16.msra.mxu3 %v3044_v13  ;;  %v3370_v13 = vld [vmem:[%s4980_s3 + $0x30] sm:$0xff] }
 0x1b1   :  { %v897_v62 = vpop.f32.mrf.mxu0 }
 0x1b2   :  { %v922_v11 = vadd.f32 %v921_v61, %v897_v62 }
 0x1b3   :  { %1520 = vmatpush.bf16.msrb.mxu0 %v3370_v13 }
 0x1b4   :  { %v946_v1 = vadd.f32 %v945_v3, %v922_v11 }
 0x1b6   :  { %v4262_v48 = vadd.f32 %v969_v5, %v946_v1 }
 0x1b7   :  { %v948_v31 = vpop.f32.mrf.mxu2 }
 0x1b8   :  { %v1075_v24 = vpack.c.bf16 %v4262_v48, %v4260_v14 }
 0x1ba   :  { %1290 = vmatmul.bf16.gmra.mxu0 %v1075_v24  ;;  %1338 = vmatmul.bf16.gmra.mxu2 %v1075_v24 }
 0x1bf   :  { %v950_v51 = vpop.f32.mrf.mxu2 }
 0x1c2   :  { %v924_v38 = vpop.f32.mrf.mxu1 }
 0x1c7   :  { %v972_v60 = vpop.f32.mrf.mxu3  ;;  %v1034_v8 = vpop.f32.mrf.mxu2 }
 0x1c9   :  { %v900_v0 = vpop.f32.mrf.mxu0 }
 0x1ca   :  { %v926_v52 = vpop.f32.mrf.mxu1  ;;  %v925_v53 = vadd.f32 %v924_v38, %v900_v0  ;;  %v3379_v0 = vld [vmem:[%s4980_s3 + $0x78] sm:$0xff] }
 0x1cb   :  { %1543 = vmatpush.bf16.msrb.mxu1 %v3379_v0 }
 0x1cc   :  { %v949_v58 = vadd.f32 %v948_v31, %v925_v53  ;;  %v3378_v53 = vld [vmem:[%s4980_s3 + $0x70] sm:$0xff] }
 0x1ce   :  { %v4326_v62 = vadd.f32 %v972_v60, %v949_v58  ;;  %v3366_v58 = vld [vmem:[%s4980_s3 + $0x10] sm:$0xff] }
 0x1cf   :  { %v974_v15 = vpop.f32.mrf.mxu3  ;;  %v1036_v56 = vpop.f32.mrf.mxu2  ;;  %1544 = vmatpush.bf16.msrb.mxu1 %v3378_v53 }
 0x1d1   :  { %v902_v54 = vpop.f32.mrf.mxu0 }
 0x1d2   :  { %v1010_v55 = vpop.f32.mrf.mxu1  ;;  %v927_v59 = vadd.f32 %v926_v52, %v902_v54  ;;  %v3369_v52 = vld [vmem:[%s4980_s3 + $0x28] sm:$0xff]  ;;  %v3367_v54 = vld [vmem:[%s4980_s3 + $0x18] sm:$0xff] }
 0x1d3   :  { %1521 = vmatpush.bf16.msrb.mxu0 %v3369_v52 }
 0x1d4   :  { %v951_v35 = vadd.f32 %v950_v51, %v927_v59  ;;  %v3375_v59 = vld [vmem:[%s4980_s3 + $0x58] sm:$0xff] }
 0x1d6   :  { %v4328_v63 = vadd.f32 %v974_v15, %v951_v35  ;;  %v3368_v15 = vld [vmem:[%s4980_s3 + $0x20] sm:$0xff]  ;;  %v3365_v35 = vld [vmem:[%s4980_s3 + $0x8] sm:$0xff] }
 0x1d7   :  { %v1058_v61 = vpop.f32.mrf.mxu3  ;;  %v1039_v18 = vpop.f32.mrf.mxu2  ;;  %1522 = vmatpush.bf16.msrb.mxu0 %v3368_v15 }
 0x1d8   :  { %v1077_v11 = vpack.c.bf16 %v4328_v63, %v4326_v62 }
 0x1d9   :  { %v986_v2 = vpop.f32.mrf.mxu0 }
 0x1da   :  { %v1012_v9 = vpop.f32.mrf.mxu1  ;;  %1295 = vmatmul.bf16.gmra.mxu0 %v1077_v11  ;;  %1343 = vmatmul.bf16.gmra.mxu2 %v1077_v11  ;;  %v1011_v3 = vadd.f32 %v1010_v55, %v986_v2  ;;  %v3376_v55 = vld [vmem:[%s4980_s3 + $0x60] sm:$0xff]  ;;  %v3373_v2 = vld [vmem:[%s4980_s3 + $0x48] sm:$0xff] }
 0x1db   :  { %1523 = vmatpush.bf16.msrb.mxu0 %v3367_v54  ;;  %v3364_v11 = vld [vmem:[%s4980_s3] sm:$0xff] }
 0x1dc   :  { %v1035_v1 = vadd.f32 %v1034_v8, %v1011_v3  ;;  %v3377_v8 = vld [vmem:[%s4980_s3 + $0x68] sm:$0xff] }
 0x1dd   :  { %1545 = vmatpush.bf16.msrb.mxu1 %v3377_v8 }
 0x1de   :  { %v4332_v19 = vadd.f32 %v1058_v61, %v1035_v1  ;;  %v3374_v61 = vld [vmem:[%s4980_s3 + $0x50] sm:$0xff]  ;;  %v4404_v1 = vld [vmem:[%s4977_s0] sm:$0xff] }
 0x1df   :  { %v1060_v57 = vpop.f32.mrf.mxu3  ;;  %v1041_v27 = vpop.f32.mrf.mxu2  ;;  %1524 = vmatpush.bf16.msrb.mxu0 %v3366_v58 }
 0x1e1   :  { %v988_v41 = vpop.f32.mrf.mxu0  ;;  %1546 = vmatpush.bf16.msrb.mxu1 %v3376_v55 }
 0x1e2   :  { %v1013_v7 = vadd.f32 %v1012_v9, %v988_v41  ;;  %v1015_v5 = vpop.f32.mrf.mxu1  ;;  %v1111_v41 = vld [vmem:[%s4984_s7] sm:$0x3] }
 0x1e3   :  { %1525 = vmatpush.bf16.msrb.mxu0 %v3365_v35 }
 0x1e4   :  { %v1037_v16 = vadd.f32 %v1036_v56, %v1013_v7  ;;  %v3372_v56 = vld [vmem:[%s4980_s3 + $0x40] sm:$0xff]  ;;  %v4410_v7 = vld [vmem:[%s4977_s0 + $0x10] sm:$0xff]  ;;  %s3702_s3 = smov 56  }
 0x1e5   :  { %1547 = vmatpush.bf16.msrb.mxu1 %v3375_v59 }
 0x1e6   :  { %v4334_v21 = vadd.f32 %v1060_v57, %v1037_v16  ;;  %v3694_v57 = vmov 8   ;;  %v4419_v16 = vperm.slane %v1111_v41, 0 }
 0x1e7   :  { %v1063_v22 = vpop.f32.mrf.mxu3  ;;  %v1044_v37 = vpop.f32.mrf.mxu2  ;;  %1526 = vmatpush.bf16.msrb.mxu0 %v3364_v11  ;;  %3523 = vset.pattern.permute.xlu1 %v3694_v57 }
 0x1e8   :  { %v1074_v24 = vpack.c.bf16 %v4334_v21, %v4332_v19  ;;  %3525 = vset.pattern.permute.xlu0 %v3694_v57  ;;  %1568 = vperm.xlu1 %3523, %v4404_v1  }
 0x1e9   :  { %v991_v10 = vpop.f32.mrf.mxu0  ;;  %1548 = vmatpush.bf16.msrb.mxu1 %v3374_v61  ;;  %1574 = vperm.xlu0 %3525, %v4410_v7  }
 0x1ea   :  { %1309 = vmatmul.bf16.vlgmr.msra.gmra.mxu1 %v1074_v24  ;;  %1357 = vmatmul.bf16.vlgmr.msra.gmra.mxu3 %v1074_v24  ;;  %v1017_v4 = vpop.f32.mrf.mxu1  ;;  %v1016_v17 = vadd.f32 %v1015_v5, %v991_v10  ;;  %v4416_v5 = vld [vmem:[%s4977_s0 + $0x8] sm:$0xff]  ;;  %v4425_v10 = vld [vmem:[%s4977_s0 + $0x18] sm:$0xff] }
 0x1eb   :  { %3524 = vset.pattern.permute.xlu2 %v3694_v57 }
 0x1ec   :  { %v1040_v30 = vadd.f32 %v1039_v18, %v1016_v17  ;;  %1571 = vperm.xlu2 %3524, %v4416_v5  }
 0x1ed   :  { %1549 = vmatpush.bf16.msrb.mxu1 %v3373_v2 }
 0x1ee   :  { %v4338_v25 = vadd.f32 %v1063_v22, %v1040_v30  ;;  %v4434_v30 = vld [vmem:[%s4977_s0 + $0x20] sm:$0xff] }
 0x1ef   :  { %v1065_v28 = vpop.f32.mrf.mxu3  ;;  %v1046_v49 = vpop.f32.mrf.mxu2 }
 0x1f0   :  { %1577 = vperm.xlu1 %3523, %v4425_v10  }
 0x1f1   :  { %v993_v29 = vpop.f32.mrf.mxu0  ;;  %1550 = vmatpush.bf16.msrb.mxu1 %v3372_v56 }
 0x1f2   :  { %v1018_v31 = vadd.f32 %v1017_v4, %v993_v29  ;;  %v1020_v33 = vpop.f32.mrf.mxu1  ;;  %v4428_v4 = vperm.slane %v1111_v41, 1 }
 0x1f4   :  { %v1042_v32 = vadd.f32 %v1041_v27, %v1018_v31  ;;  %1580 = vperm.xlu2 %3524, %v4434_v30  }
 0x1f6   :  { %v4340_v12 = vadd.f32 %v1065_v28, %v1042_v32 }
 0x1f7   :  { %v1068_v39 = vpop.f32.mrf.mxu3 }
 0x1f8   :  { %v1076_v34 = vpack.c.bf16 %v4340_v12, %v4338_v25 }
 0x1f9   :  { %v996_v38 = vpop.f32.mrf.mxu0 }
 0x1fa   :  { %1314 = vmatmul.bf16.gmra.mxu1 %v1076_v34  ;;  %1362 = vmatmul.bf16.gmra.mxu3 %v1076_v34  ;;  %v1021_v47 = vadd.f32 %v1020_v33, %v996_v38  ;;  %v1022_v40 = vpop.f32.mrf.mxu1 }
 0x1fc   :  { %v1045_v43 = vadd.f32 %v1044_v37, %v1021_v47 }
 0x1fe   :  { %v4344_v51 = vadd.f32 %v1068_v39, %v1045_v43  ;;  %v4442_v39 = vld [vmem:[%s4977_s0 + $0x28] sm:$0xff] }
 0x1ff   :  { %v1070_v50 = vpop.f32.mrf.mxu3  ;;  %1583 = vperm.xlu1 %3523, %v4442_v39  }
 0x201   :  { %v998_v42 = vpop.f32.mrf.mxu0 }
 0x202   :  { %v1023_v44 = vadd.f32 %v1022_v40, %v998_v42 }
 0x204   :  { %v1047_v46 = vadd.f32 %v1046_v49, %v1023_v44 }
 0x206   :  { %v4346_v60 = vadd.f32 %v1070_v50, %v1047_v46 }
 0x208   :  { %v1078_v26 = vpack.c.bf16 %v4346_v60, %v4344_v51 }
 0x20a   :  { %1319 = vmatmul.bf16.gmra.mxu1 %v1078_v26  ;;  %1367 = vmatmul.bf16.gmra.mxu3 %v1078_v26 }
 0x214   :  { %v1286_v9 = vpop.f32.mrf.mxu0 }
 0x215   :  { %v1287_v24 = vadd.f32 %v1286_v9, %v4419_v16 }
 0x21a   :  { %v1334_v3 = vpop.f32.mrf.mxu2 }
 0x21b   :  { %v1335_v34 = vadd.f32 %v1334_v3, %v4428_v4 }
 0x21c   :  { %v1288_v18 = vpop.f32.mrf.mxu0 }
 0x21d   :  { %v1289_v29 = vadd.f32 %v1288_v18, %v4419_v16 }
 0x222   :  { %v1336_v17 = vpop.f32.mrf.mxu2 }
 0x223   :  { %v1337_v38 = vadd.f32 %v1336_v17, %v4428_v4 }
 0x237   :  { %v1291_v31 = vpop.f32.mrf.mxu0 }
 0x238   :  { %v1292_v26 = vadd.f32 %v1291_v31, %v4419_v16 }
 0x23d   :  { %v1339_v47 = vpop.f32.mrf.mxu2 }
 0x23e   :  { %v1340_v58 = vadd.f32 %v1339_v47, %v4428_v4 }
 0x23f   :  { %v1293_v46 = vpop.f32.mrf.mxu0 }
 0x240   :  { %v1294_v53 = vadd.f32 %v1293_v46, %v4419_v16 }
 0x245   :  { %v1341_v15 = vpop.f32.mrf.mxu2 }
 0x246   :  { %v1342_v61 = vadd.f32 %v1341_v15, %v4428_v4 }
 0x257   :  { %v1296_v59 = vpop.f32.mrf.mxu0 }
 0x258   :  { %v1297_v18 = vadd.f32 %v1296_v59, %v4419_v16 }
 0x25d   :  { %v1344_v56 = vpop.f32.mrf.mxu2 }
 0x267   :  { %v1310_v22 = vpop.f32.mrf.mxu1 }
 0x268   :  { %v1311_v27 = vadd.f32 %v1310_v22, %v1287_v24  ;;  %v1298_v22 = vpop.f32.mrf.mxu0 }
 0x26a   :  { %3547 = vtanh.f32 %v1311_v27 }
 0x26d   :  { %v1358_v28 = vpop.f32.mrf.mxu3 }
 0x26e   :  { %v1359_v37 = vadd.f32 %v1358_v28, %v1335_v34  ;;  %v1345_v34 = vadd.f32 %v1344_v56, %v4428_v4 }
 0x26f   :  { %v1312_v32 = vpop.f32.mrf.mxu1 }
 0x270   :  { %v1313_v33 = vadd.f32 %v1312_v32, %v1289_v29  ;;  %v3548_v43 = vpop.eup %3547  ;;  %v1299_v29 = vadd.f32 %v1298_v22, %v4419_v16 }
 0x272   :  { %3549 = vtanh.f32 %v1313_v33 }
 0x273   :  { %3551 = vtanh.f32 %v1359_v37  ;;  %v1346_v37 = vpop.f32.mrf.mxu2 }
 0x274   :  { %v1347_v47 = vadd.f32 %v1346_v37, %v4428_v4 }
 0x275   :  { %v1360_v40 = vpop.f32.mrf.mxu3 }
 0x276   :  { %v1361_v42 = vadd.f32 %v1360_v40, %v1337_v38 }
 0x277   :  { %v1315_v44 = vpop.f32.mrf.mxu1 }
 0x278   :  { %v3550_v49 = vpop.eup %3549  ;;  %3553 = vtanh.f32 %v1361_v42  ;;  %v1316_v13 = vadd.f32 %v1315_v44, %v1292_v26  ;;  %v1569_v26 = vpop.permute.xlu1 %1568 }
 0x279   :  { %v1385_v50 = vpack.c.bf16 %v3550_v49, %v3548_v43  ;;  %v3552_v45 = vpop.eup %3551  ;;  %vm1585_vm10 = vcmp.lt.s32.totalorder %v3855_v20, %v1569_v26 }
 0x27a   :  { %3555 = vtanh.f32 %v1316_v13  ;;  %v4455_v13 = vsel %vm1585_vm10, 1.0, %v3692_v23 }
 0x27b   :  { %1527 = vmatmul.bf16.vlgmr.msrb.gmra.mxu0 %v1385_v50  ;;  %vm1603_vm2 = vcmp.gt.f32.partialorder %v4455_v13, 0.0 }
 0x27d   :  { %v1363_v0 = vpop.f32.mrf.mxu3 }
 0x27e   :  { %v3554_v52 = vpop.eup %3553  ;;  %v1364_v35 = vadd.f32 %v1363_v0, %v1340_v58  ;;  %v1572_v0 = vpop.permute.xlu2 %1571 }
 0x27f   :  { %v1317_v8 = vpop.f32.mrf.mxu1  ;;  %v1386_v54 = vpack.c.bf16 %v3554_v52, %v3552_v45  ;;  %vm1586_vm4 = vcmp.lt.s32.totalorder %v3855_v20, %v1572_v0 }
 0x280   :  { %v1318_v55 = vadd.f32 %v1317_v8, %v1294_v53  ;;  %v3556_v9 = vpop.eup %3555 }
 0x281   :  { %1551 = vmatmul.bf16.vlgmr.msrb.gmra.mxu1 %v1386_v54  ;;  %v4461_v54 = vsel %vm1586_vm4, 1.0, %v3692_v23 }
 0x282   :  { %3557 = vtanh.f32 %v1318_v55  ;;  %v1575_v55 = vpop.permute.xlu0 %1574  ;;  %vm1604_vm5 = vcmp.gt.f32.partialorder %v4461_v54, 0.0 }
 0x283   :  { %3559 = vtanh.f32 %v1364_v35  ;;  %vm1587_vm6 = vcmp.lt.s32.totalorder %v3855_v20, %v1575_v55 }
 0x285   :  { %v1365_v11 = vpop.f32.mrf.mxu3 }
 0x286   :  { %v1366_v2 = vadd.f32 %v1365_v11, %v1342_v61 }
 0x287   :  { %v1320_v3 = vpop.f32.mrf.mxu1 }
 0x288   :  { %v3558_v57 = vpop.eup %3557  ;;  %3561 = vtanh.f32 %v1366_v2  ;;  %v1321_v17 = vadd.f32 %v1320_v3, %v1297_v18  ;;  %v3167_v2 = vsel %vm1587_vm6, 1.0, %v3692_v23  ;;  %v1578_v3 = vpop.permute.xlu1 %1577 }
 0x289   :  { %v1387_v41 = vpack.c.bf16 %v3558_v57, %v3556_v9  ;;  %v3560_v24 = vpop.eup %3559  ;;  %vm1605_vm7 = vcmp.gt.f32.partialorder %v3167_v2, 0.0  ;;  %vm1588_vm8 = vcmp.lt.s32.totalorder %v3855_v20, %v1578_v3 }
 0x28a   :  { %3563 = vtanh.f32 %v1321_v17  ;;  %v3168_v22 = vsel %vm1588_vm8, 1.0, %v3692_v23  ;;  %v1581_v17 = vpop.permute.xlu2 %1580 }
 0x28b   :  { %1532 = vmatmul.bf16.gmra.mxu0 %v1387_v41  ;;  %vm1606_vm9 = vcmp.gt.f32.partialorder %v3168_v22, 0.0  ;;  %vm1589_vm11 = vcmp.lt.s32.totalorder %v3855_v20, %v1581_v17 }
 0x28d   :  { %v1368_v27 = vpop.f32.mrf.mxu3 }
 0x28e   :  { %v3562_v28 = vpop.eup %3561  ;;  %v1369_v38 = vadd.f32 %v1368_v27, %v1345_v34 }
 0x28f   :  { %v1322_v31 = vpop.f32.mrf.mxu1  ;;  %v1388_v32 = vpack.c.bf16 %v3562_v28, %v3560_v24 }
 0x290   :  { %v1323_v33 = vadd.f32 %v1322_v31, %v1299_v29  ;;  %v3564_v43 = vpop.eup %3563  ;;  %v1584_v34 = vpop.permute.xlu1 %1583 }
 0x291   :  { %1556 = vmatmul.bf16.gmra.mxu1 %v1388_v32  ;;  %v3169_v32 = vsel %vm1589_vm11, 1.0, %v3692_v23  ;;  %vm1590_vm13 = vcmp.lt.s32.totalorder %v3855_v20, %v1584_v34 }
 0x292   :  { %3565 = vtanh.f32 %v1323_v33  ;;  %vm1607_vm12 = vcmp.gt.f32.partialorder %v3169_v32, 0.0 }
 0x293   :  { %3567 = vtanh.f32 %v1369_v38 }
 0x295   :  { %v1370_v40 = vpop.f32.mrf.mxu3 }
 0x296   :  { %v1371_v42 = vadd.f32 %v1370_v40, %v1347_v47  ;;  %v3170_v40 = vsel %vm1590_vm13, 1.0, %v3692_v23 }
 0x297   :  { %vm1608_vm14 = vcmp.gt.f32.partialorder %v3170_v40, 0.0 }
 0x298   :  { %v3566_v44 = vpop.eup %3565  ;;  %3569 = vtanh.f32 %v1371_v42 }
 0x299   :  { %v1389_v49 = vpack.c.bf16 %v3566_v44, %v3564_v43  ;;  %v3568_v16 = vpop.eup %3567 }
 0x29b   :  { %1537 = vmatmul.bf16.gmra.mxu0 %v1389_v49 }
 0x29e   :  { %v3570_v46 = vpop.eup %3569 }
 0x29f   :  { %v1390_v50 = vpack.c.bf16 %v3570_v46, %v3568_v16 }
 0x2a1   :  { %1561 = vmatmul.bf16.gmra.mxu1 %v1390_v50 }
 0x2f8   :  { %v1528_v45 = vpop.f32.mrf.mxu0 }
 0x2fe   :  { %v1552_v4 = vpop.f32.mrf.mxu1 }
 0x2ff   :  { %v1553_v52 = vadd.f32 %v1552_v4, %v1528_v45 }
 0x300   :  { %v1530_v53 = vpop.f32.mrf.mxu0 }
 0x301   :  { %v1609_v15 = vsel %vm1603_vm2, %v1553_v52, -1e+30 }
 0x302   :  { %v1616_v8 = vsel %vm1615_vm3, %v1609_v15, -inf }
 0x303   :  { %1617 = vmax.xlane.f32.xlu2 %v1616_v8 }
 0x306   :  { %v1554_v58 = vpop.f32.mrf.mxu1 }
 0x307   :  { %v1555_v59 = vadd.f32 %v1554_v58, %v1530_v53 }
 0x308   :  { %v1533_v35 = vpop.f32.mrf.mxu0 }
 0x309   :  { %v1610_v61 = vsel %vm1604_vm5, %v1555_v59, -1e+30 }
 0x30a   :  { %v1619_v11 = vsel %vm1615_vm3, %v1610_v61, -inf }
 0x30b   :  { %1620 = vmax.xlane.f32.xlu0 %v1619_v11 }
 0x30e   :  { %v1557_v9 = vpop.f32.mrf.mxu1 }
 0x30f   :  { %v1558_v56 = vadd.f32 %v1557_v9, %v1533_v35 }
 0x310   :  { %v1535_v41 = vpop.f32.mrf.mxu0 }
 0x311   :  { %v1611_v57 = vsel %vm1605_vm7, %v1558_v56, -1e+30 }
 0x312   :  { %v1622_v18 = vsel %vm1615_vm3, %v1611_v57, -inf }
 0x313   :  { %1623 = vmax.xlane.f32.xlu1 %v1622_v18 }
 0x316   :  { %v1559_v24 = vpop.f32.mrf.mxu1 }
 0x317   :  { %v1560_v27 = vadd.f32 %v1559_v24, %v1535_v41 }
 0x318   :  { %v1538_v31 = vpop.f32.mrf.mxu0 }
 0x319   :  { %v1612_v28 = vsel %vm1606_vm9, %v1560_v27, -1e+30 }
 0x31a   :  { %v1625_v29 = vsel %vm1615_vm3, %v1612_v28, -inf }
 0x31b   :  { %1626 = vmax.xlane.f32.xlu2 %v1625_v29 }
 0x31e   :  { %v1562_v33 = vpop.f32.mrf.mxu1 }
 0x31f   :  { %v1563_v37 = vadd.f32 %v1562_v33, %v1538_v31 }
 0x320   :  { %v1540_v42 = vpop.f32.mrf.mxu0 }
 0x321   :  { %v1613_v38 = vsel %vm1607_vm12, %v1563_v37, -1e+30 }
 0x322   :  { %v1628_v47 = vsel %vm1615_vm3, %v1613_v38, -inf }
 0x323   :  { %1629 = vmax.xlane.f32.xlu2 %v1628_v47  ;;  %v1775_v47 = vld [vmem:[%s4981_s4] sm:$0xff] }
 0x326   :  { %v1564_v43 = vpop.f32.mrf.mxu1 }
 0x327   :  { %v1565_v44 = vadd.f32 %v1564_v43, %v1540_v42  ;;  %v1777_v42 = vunpack.c.l.b16 %v1775_v47  ;;  %v1778_v43 = vunpack.c.h.b16 %v1775_v47 }
 0x329   :  { %v1614_v49 = vsel %vm1608_vm14, %v1565_v44, -1e+30  ;;  %v1780_v44 = vpack.c.b16 %v1778_v43, %v1778_v43 }
 0x32a   :  { %v1631_v16 = vsel %vm1615_vm3, %v1614_v49, -inf }
 0x32b   :  { %1632 = vmax.xlane.f32.xlu0 %v1631_v16  ;;  %v1795_v16 = vsel %vm1790_vm15, %v1780_v44, 0 }
 0x32c   :  { %1828 = vmatpush.bf16.msrb.mxu3 %v1795_v16 }
 0x376   :  { %v1618_v46 = vpop.xlane.xlu2 %1617 }
 0x377   :  { %v1634_v50 = vsub.f32 %v1609_v15, %v1618_v46 }
 0x379   :  { %v1640_v26 = vmul.f32 1.442695, %v1634_v50 }
 0x37b   :  { %3571 = vpow2.f32 %v1640_v26 }
 0x37e   :  { %v1621_v45 = vpop.xlane.xlu0 %1620 }
 0x37f   :  { %v1635_v4 = vsub.f32 %v1610_v61, %v1621_v45 }
 0x381   :  { %v3572_v0 = vpop.eup %3571  ;;  %v1642_v52 = vmul.f32 1.442695, %v1635_v4 }
 0x382   :  { %v4478_v53 = vmul.f32 %v3572_v0, %v4455_v13 }
 0x383   :  { %3573 = vpow2.f32 %v1642_v52 }
 0x384   :  { %v1658_v8 = vsel %vm1615_vm3, %v4478_v53, 0.0 }
 0x385   :  { %1659 = vadd.xlane.f32.xlu1 %v1658_v8 }
 0x386   :  { %v1624_v55 = vpop.xlane.xlu1 %1623 }
 0x387   :  { %v1636_v58 = vsub.f32 %v1611_v57, %v1624_v55 }
 0x389   :  { %v3574_v59 = vpop.eup %3573  ;;  %v1644_v35 = vmul.f32 1.442695, %v1636_v58 }
 0x38a   :  { %v4483_v15 = vmul.f32 %v3574_v59, %v4461_v54 }
 0x38b   :  { %3575 = vpow2.f32 %v1644_v35 }
 0x38c   :  { %v1661_v61 = vsel %vm1615_vm3, %v4483_v15, 0.0 }
 0x38d   :  { %1662 = vadd.xlane.f32.xlu2 %v1661_v61 }
 0x38e   :  { %v1627_v11 = vpop.xlane.xlu2 %1626 }
 0x38f   :  { %v1637_v13 = vsub.f32 %v1612_v28, %v1627_v11 }
 0x391   :  { %v3576_v9 = vpop.eup %3575  ;;  %v1646_v56 = vmul.f32 1.442695, %v1637_v13 }
 0x392   :  { %v4487_v3 = vmul.f32 %v3576_v9, %v3167_v2 }
 0x393   :  { %3577 = vpow2.f32 %v1646_v56 }
 0x394   :  { %v1664_v57 = vsel %vm1615_vm3, %v4487_v3, 0.0 }
 0x395   :  { %1665 = vadd.xlane.f32.xlu0 %v1664_v57 }
 0x396   :  { %v1630_v41 = vpop.xlane.xlu2 %1629 }
 0x397   :  { %v1638_v18 = vsub.f32 %v1613_v38, %v1630_v41 }
 0x399   :  { %v3578_v54 = vpop.eup %3577  ;;  %v1648_v24 = vmul.f32 1.442695, %v1638_v18 }
 0x39a   :  { %v4491_v17 = vmul.f32 %v3578_v54, %v3168_v22 }
 0x39b   :  { %3579 = vpow2.f32 %v1648_v24 }
 0x39c   :  { %v1667_v27 = vsel %vm1615_vm3, %v4491_v17, 0.0 }
 0x39d   :  { %1668 = vadd.xlane.f32.xlu1 %v1667_v27 }
 0x39e   :  { %v1633_v28 = vpop.xlane.xlu0 %1632 }
 0x39f   :  { %v1639_v29 = vsub.f32 %v1614_v49, %v1633_v28 }
 0x3a1   :  { %v3580_v2 = vpop.eup %3579  ;;  %v1650_v31 = vmul.f32 1.442695, %v1639_v29 }
 0x3a2   :  { %v4495_v33 = vmul.f32 %v3580_v2, %v3169_v32  ;;  %v1779_v32 = vpack.c.b16 %v1777_v42, %v1777_v42 }
 0x3a3   :  { %3581 = vpow2.f32 %v1650_v31 }
 0x3a4   :  { %v1670_v34 = vsel %vm1615_vm3, %v4495_v33, 0.0  ;;  %v1792_v49 = vsel %vm1790_vm15, %v1779_v32, 0 }
 0x3a5   :  { %1671 = vadd.xlane.f32.xlu2 %v1670_v34  ;;  %1804 = vmatpush.bf16.msrb.mxu2 %v1792_v49  ;;  %v3387_v49 = vld [vmem:[%s4982_s5 + $0x38] sm:$0xff] }
 0x3a6   :  { %1995 = vmatpush.bf16.msra.mxu0 %v3387_v49 }
 0x3a9   :  { %v3582_v37 = vpop.eup %3581 }
 0x3aa   :  { %v4499_v38 = vmul.f32 %v3582_v37, %v3170_v40 }
 0x3ac   :  { %v1673_v22 = vsel %vm1615_vm3, %v4499_v38, 0.0 }
 0x3ad   :  { %1674 = vadd.xlane.f32.xlu0 %v1673_v22 }
 0x3f8   :  { %v1660_v46 = vpop.xlane.xlu1 %1659 }
 0x3f9   :  { %v1676_v40 = vmax.f32 %v1660_v46, 1e-09 }
 0x3fb   :  { %3583 = vrcp.f32 %v1676_v40  ;;  %v1693_v61 = vand.u32 2147483648, %v1676_v40  ;;  %vm1687_vm1 = vweird.f32 %v1676_v40  ;;  %v1691_v11 = vand.u32 2147483647, %v1676_v40 }
 0x3fd   :  { %v1694_v18 = vor.u32 1.1754944e-38, %v1693_v61  ;;  %vm1692_vm4 = vcmp.eq.f32.partialorder %v1691_v11, 8.507059e+37  ;;  %v3385_v61 = vld [vmem:[%s4982_s5 + $0x28] sm:$0xff] }
 0x400   :  { %v1663_v50 = vpop.xlane.xlu2 %1662 }
 0x401   :  { %v3584_v26 = vpop.eup %3583  ;;  %v1677_v45 = vmax.f32 %v1663_v50, 1e-09  ;;  %v3386_v50 = vld [vmem:[%s4982_s5 + $0x30] sm:$0xff] }
 0x402   :  { %v1683_v4 = vmul.f32 %v3584_v26, %v1676_v40  ;;  %vm1688_vm0 = vweird.f32 %v3584_v26  ;;  %1996 = vmatpush.bf16.msra.mxu0 %v3386_v50 }
 0x403   :  { %3585 = vrcp.f32 %v1677_v45  ;;  %vm1689_vm10 = vmor %vm1687_vm1, %vm1688_vm0  ;;  %v1708_v9 = vand.u32 2147483648, %v1677_v45  ;;  %v1706_v41 = vand.u32 2147483647, %v1677_v45  ;;  %vm1702_vm5 = vweird.f32 %v1677_v45 }
 0x404   :  { %v1684_v0 = vsub.f32 1.0, %v1683_v4 }
 0x405   :  { %v1709_v29 = vor.u32 1.1754944e-38, %v1708_v9  ;;  %vm1707_vm7 = vcmp.eq.f32.partialorder %v1706_v41, 8.507059e+37 }
 0x406   :  { %v1685_v52 = vmul.f32 %v3584_v26, %v1684_v0  ;;  %1997 = vmatpush.bf16.msra.mxu0 %v3385_v61  ;;  %v3382_v61 = vld [vmem:[%s4982_s5 + $0x10] sm:$0xff] }
 0x408   :  { %v1666_v8 = vpop.xlane.xlu0 %1665  ;;  %v1686_v59 = vadd.f32 %v3584_v26, %v1685_v52 }
 0x409   :  { %v3586_v55 = vpop.eup %3585  ;;  %v4506_v58 = vmax.f32 %v1666_v8, 1e-09 }
 0x40a   :  { %v1698_v35 = vmul.f32 %v3586_v55, %v1677_v45  ;;  %v1690_v56 = vsel %vm1689_vm10, %v3584_v26, %v1686_v59  ;;  %vm1703_vm2 = vweird.f32 %v3586_v55  ;;  %v3394_v26 = vld [vmem:[%s4982_s5 + $0x70] sm:$0xff] }
 0x40b   :  { %3587 = vrcp.f32 %v4506_v58  ;;  %v1695_v28 = vsel %vm1692_vm4, %v1694_v18, %v1690_v56  ;;  %vm1704_vm6 = vmor %vm1702_vm5, %vm1703_vm2  ;;  %v1723_v45 = vand.u32 2147483648, %v4506_v58  ;;  %vm1717_vm9 = vweird.f32 %v4506_v58 }
 0x40c   :  { %v1699_v13 = vsub.f32 1.0, %v1698_v35  ;;  %v4511_v22 = vmul.f32 %v1695_v28, %v4478_v53  ;;  %v3395_v53 = vld [vmem:[%s4982_s5 + $0x78] sm:$0xff]  ;;  %v1721_v4 = vand.u32 2147483647, %v4506_v58  ;;  %v3392_v28 = vld [vmem:[%s4982_s5 + $0x60] sm:$0xff] }
 0x40d   :  { %2019 = vmatpush.bf16.msra.mxu1 %v3395_v53  ;;  %v1724_v11 = vor.u32 1.1754944e-38, %v1723_v45 }
 0x40e   :  { %v1700_v57 = vmul.f32 %v3586_v55, %v1699_v13  ;;  %vm1722_vm13 = vcmp.eq.f32.partialorder %v1721_v4, 8.507059e+37 }
 0x410   :  { %v1701_v54 = vadd.f32 %v3586_v55, %v1700_v57  ;;  %v1669_v24 = vpop.xlane.xlu1 %1668 }
 0x411   :  { %v3588_v27 = vpop.eup %3587  ;;  %v1679_v2 = vmax.f32 %v1669_v24, 1e-09  ;;  %2020 = vmatpush.bf16.msra.mxu1 %v3394_v26 }
 0x412   :  { %v1705_v31 = vsel %vm1704_vm6, %v3586_v55, %v1701_v54  ;;  %v1713_v34 = vmul.f32 %v3588_v27, %v4506_v58  ;;  %vm1718_vm8 = vweird.f32 %v3588_v27  ;;  %v3393_v58 = vld [vmem:[%s4982_s5 + $0x68] sm:$0xff] }
 0x413   :  { %v1710_v37 = vsel %vm1707_vm7, %v1709_v29, %v1705_v31  ;;  %3589 = vrcp.f32 %v1679_v2  ;;  %vm4538_vm11 = vmor %vm1717_vm9, %vm1718_vm8  ;;  %v1738_v8 = vand.u32 2147483648, %v1679_v2  ;;  %v1736_v35 = vand.u32 2147483647, %v1679_v2 }
 0x414   :  { %v4514_v47 = vmul.f32 %v1710_v37, %v4483_v15  ;;  %v1714_v42 = vsub.f32 1.0, %v1713_v34  ;;  %vm1732_vm14 = vweird.f32 %v1679_v2  ;;  %vm2069_vm9 = vcmask 261120  }
 0x415   :  { %v1739_v41 = vor.u32 1.1754944e-38, %v1738_v8  ;;  %vm1737_vm0 = vcmp.eq.f32.partialorder %v1736_v35, 8.507059e+37  ;;  %2021 = vmatpush.bf16.msra.mxu1 %v3393_v58  ;;  %v3390_v58 = vld [vmem:[%s4982_s5 + $0x50] sm:$0xff] }
 0x416   :  { %v1715_v43 = vmul.f32 %v3588_v27, %v1714_v42  ;;  %v1772_v32 = vpack.c.bf16 %v4514_v47, %v4511_v22 }
 0x418   :  { %3171 = vmatmul.msk.bf16.vlgmr.msrb.gmra.mxu2 %vm1615_vm3, %v1772_v32  ;;  %3174 = vmatmul.msk.bf16.vlgmr.msrb.gmra.mxu3 %vm1615_vm3, %v1772_v32  ;;  %v1672_v44 = vpop.xlane.xlu2 %1671  ;;  %v1716_v46 = vadd.f32 %v3588_v27, %v1715_v43  ;;  %v3383_v43 = vld [vmem:[%s4982_s5 + $0x18] sm:$0xff] }
 0x419   :  { %v3590_v15 = vpop.eup %3589  ;;  %v4526_v16 = vmax.f32 %v1672_v44, 1e-09  ;;  %2022 = vmatpush.bf16.msra.mxu1 %v3392_v28  ;;  %v3391_v32 = vld [vmem:[%s4982_s5 + $0x58] sm:$0xff] }
 0x41a   :  { %v1728_v40 = vmul.f32 %v3590_v15, %v1679_v2  ;;  %v1720_v55 = vsel %vm4538_vm11, %v3588_v27, %v1716_v46  ;;  %vm1733_vm12 = vweird.f32 %v3590_v15  ;;  %v3384_v27 = vld [vmem:[%s4982_s5 + $0x20] sm:$0xff]  ;;  %vm2213_vm11 = vcmask 392192  }
 0x41b   :  { %3591 = vrcp.f32 %v4526_v16  ;;  %v1725_v57 = vsel %vm1722_vm13, %v1724_v11, %v1720_v55  ;;  %vm1734_vm15 = vmor %vm1732_vm14, %vm1733_vm12  ;;  %1998 = vmatpush.bf16.msra.mxu0 %v3384_v27  ;;  %v1753_v49 = vand.u32 2147483648, %v4526_v16  ;;  %vm1747_vm10 = vweird.f32 %v4526_v16  ;;  %v3380_v11 = vld [vmem:[%s4982_s5] sm:$0xff] }
 0x41c   :  { %v1729_v0 = vsub.f32 1.0, %v1728_v40  ;;  %v4558_v2 = vmul.f32 %v1725_v57, %v4487_v3  ;;  %v1751_v53 = vand.u32 2147483647, %v4526_v16  ;;  %vm2247_vm13 = vcmask 62464  }
 0x41d   :  { %2023 = vmatpush.bf16.msra.mxu1 %v3391_v32  ;;  %v1754_v45 = vor.u32 1.1754944e-38, %v1753_v49 }
 0x41e   :  { %v1730_v59 = vmul.f32 %v3590_v15, %v1729_v0  ;;  %vm1752_vm5 = vcmp.eq.f32.partialorder %v1751_v53, 8.507059e+37 }
 0x41f   :  { %1999 = vmatpush.bf16.msra.mxu0 %v3383_v43 }
 0x420   :  { %v1731_v13 = vadd.f32 %v3590_v15, %v1730_v59  ;;  %v1675_v9 = vpop.xlane.xlu0 %1674 }
 0x421   :  { %v3592_v56 = vpop.eup %3591  ;;  %v1681_v18 = vmax.f32 %v1675_v9, 1e-09  ;;  %2024 = vmatpush.bf16.msra.mxu1 %v3390_v58  ;;  %v72_v58 = vcvt.s32.f32 %v4434_v30 }
 0x422   :  { %v1735_v54 = vsel %vm1734_vm15, %v3590_v15, %v1731_v13  ;;  %v1743_v24 = vmul.f32 %v3592_v56, %v4526_v16  ;;  %vm1748_vm1 = vweird.f32 %v3592_v56  ;;  %v3388_v13 = vld [vmem:[%s4982_s5 + $0x40] sm:$0xff]  ;;  %vm2500_vm15 = vcmask 130048  }
 0x423   :  { %v1740_v29 = vsel %vm1737_vm0, %v1739_v41, %v1735_v54  ;;  %3593 = vrcp.f32 %v1681_v18  ;;  %vm1749_vm2 = vmor %vm1747_vm10, %vm1748_vm1  ;;  %v1768_v46 = vand.u32 2147483648, %v1681_v18  ;;  %v1766_v26 = vand.u32 2147483647, %v1681_v18  ;;  %2000 = vmatpush.bf16.msra.mxu0 %v3382_v61 }
 0x424   :  { %v4561_v31 = vmul.f32 %v1740_v29, %v4491_v17  ;;  %v1744_v34 = vsub.f32 1.0, %v1743_v24  ;;  %vm1762_vm6 = vweird.f32 %v1681_v18  ;;  %v68_v61 = vcvt.s32.f32 %v4404_v1 }
 0x425   :  { %v1769_v52 = vor.u32 1.1754944e-38, %v1768_v46  ;;  %vm1767_vm8 = vcmp.eq.f32.partialorder %v1766_v26, 8.507059e+37  ;;  %v69_v1 = vcvt.s32.f32 %v4416_v5  ;;  %vm2507_vm0 = vcmask 195584  }
 0x426   :  { %v1745_v37 = vmul.f32 %v3592_v56, %v1744_v34  ;;  %v1773_v42 = vpack.c.bf16 %v4561_v31, %v4558_v2 }
 0x428   :  { %3172 = vmatmul.msk.bf16.gmra.mxu2 %vm1615_vm3, %v1773_v42  ;;  %3175 = vmatmul.msk.bf16.gmra.mxu3 %vm1615_vm3, %v1773_v42  ;;  %v1746_v17 = vadd.f32 %v3592_v56, %v1745_v37 }
 0x429   :  { %v3594_v3 = vpop.eup %3593 }
 0x42a   :  { %v1758_v44 = vmul.f32 %v3594_v3, %v1681_v18  ;;  %v1750_v40 = vsel %vm1749_vm2, %v3592_v56, %v1746_v17  ;;  %vm1763_vm4 = vweird.f32 %v3594_v3 }
 0x42b   :  { %v1755_v0 = vsel %vm1752_vm5, %v1754_v45, %v1750_v40  ;;  %vm1764_vm7 = vmor %vm1762_vm6, %vm1763_vm4  ;;  %vm2299_vm5 = vcmask 1045504   ;;  %vm2520_vm6 = vcmask 326656  }
 0x42c   :  { %v1759_v15 = vsub.f32 1.0, %v1758_v44  ;;  %v4577_v59 = vmul.f32 %v1755_v0, %v4495_v33  ;;  %v3381_v33 = vld [vmem:[%s4982_s5 + $0x8] sm:$0xff] }
 0x42d   :  { %2001 = vmatpush.bf16.msra.mxu0 %v3381_v33 }
 0x42e   :  { %v1760_v50 = vmul.f32 %v3594_v3, %v1759_v15 }
 0x430   :  { %v1761_v4 = vadd.f32 %v3594_v3, %v1760_v50  ;;  %v3396_v50 = vld [vmem:[%s4983_s6] sm:$0xff] }
 0x431   :  { %2002 = vmatpush.bf16.msra.mxu0 %v3380_v11 }
 0x432   :  { %v1765_v8 = vsel %vm1764_vm7, %v3594_v3, %v1761_v4  ;;  %v70_v4 = vcvt.s32.f32 %v4410_v7  ;;  %vm2280_vm7 = vcmask 48128  }
 0x433   :  { %v1770_v55 = vsel %vm1767_vm8, %v1769_v52, %v1765_v8  ;;  %vm2533_vm8 = vcmask 457728  }
 0x434   :  { %v4580_v16 = vmul.f32 %v1770_v55, %v4499_v38  ;;  %v3389_v38 = vld [vmem:[%s4982_s5 + $0x48] sm:$0xff]  ;;  %s3699_s5 = smov 32  }
 0x435   :  { %2025 = vmatpush.bf16.msra.mxu1 %v3389_v38 }
 0x436   :  { %v1774_v35 = vpack.c.bf16 %v4580_v16, %v4577_v59 }
 0x438   :  { %3173 = vmatmul.msk.bf16.gmra.mxu2 %vm1615_vm3, %v1774_v35  ;;  %3176 = vmatmul.msk.bf16.gmra.mxu3 %vm1615_vm3, %v1774_v35  ;;  %v71_v35 = vcvt.s32.f32 %v4425_v10 }
 0x439   :  { %2026 = vmatpush.bf16.msra.mxu1 %v3388_v13 }
 0x49b   :  { %v1806_v9 = vpop.f32.mrf.mxu2  ;;  %v1830_v56 = vpop.f32.mrf.mxu3 }
 0x49c   :  { %v1848_v18 = vmul.f32 %v1806_v9, %v4218_v6  ;;  %v1849_v54 = vmul.f32 %v1830_v56, %v4332_v19 }
 0x4a3   :  { %v1808_v57 = vpop.f32.mrf.mxu2  ;;  %v1832_v41 = vpop.f32.mrf.mxu3 }
 0x4a4   :  { %v1850_v24 = vmul.f32 %v1808_v57, %v4220_v36  ;;  %v1851_v27 = vmul.f32 %v1832_v41, %v4334_v21 }
 0x4a6   :  { %v1860_v28 = vpack.c.bf16 %v1850_v24, %v1848_v18  ;;  %v1861_v29 = vpack.c.bf16 %v1851_v27, %v1849_v54 }
 0x4a8   :  { %2003 = vmatmul.bf16.vlgmr.msra.gmra.mxu0 %v1860_v28  ;;  %2027 = vmatmul.bf16.vlgmr.msra.gmra.mxu1 %v1861_v29 }
 0x4ab   :  { %v1811_v34 = vpop.f32.mrf.mxu2  ;;  %v1835_v37 = vpop.f32.mrf.mxu3 }
 0x4ac   :  { %v1852_v32 = vmul.f32 %v1811_v34, %v4260_v14  ;;  %v1853_v3 = vmul.f32 %v1835_v37, %v4338_v25 }
 0x4b3   :  { %v1813_v42 = vpop.f32.mrf.mxu2  ;;  %v1837_v43 = vpop.f32.mrf.mxu3 }
 0x4b4   :  { %v1854_v6 = vmul.f32 %v1813_v42, %v4262_v48  ;;  %v1855_v19 = vmul.f32 %v1837_v43, %v4340_v12  ;;  %v3397_v12 = vld [vmem:[%s4983_s6 + $0x8] sm:$0xff] }
 0x4b5   :  { %2085 = vmatpush.bf16.msra.mxu2 %v3397_v12  ;;  %v3546_v12 = vld [vmem:[%s4985_s8 + $0x2] ss:$0 sm:$0xff] }
 0x4b6   :  { %v1862_v17 = vpack.c.bf16 %v1854_v6, %v1852_v32  ;;  %v1863_v36 = vpack.c.bf16 %v1855_v19, %v1853_v3  ;;  %v4655_v19 = vld [vmem:[%s4988_s11 + $0x20] sm:$0xff] }
 0x4b8   :  { %2008 = vmatmul.bf16.gmra.mxu0 %v1862_v17  ;;  %2032 = vmatmul.bf16.gmra.mxu1 %v1863_v36  ;;  %v4660_v36 = vld [vmem:[%s4988_s11 + $0x28] sm:$0xff] }
 0x4b9   :  { %2086 = vmatpush.bf16.msra.mxu2 %v3396_v50 }
 0x4bb   :  { %v1816_v21 = vpop.f32.mrf.mxu2  ;;  %v1840_v44 = vpop.f32.mrf.mxu3 }
 0x4bc   :  { %v1856_v15 = vmul.f32 %v1816_v21, %v4326_v62  ;;  %v1857_v46 = vmul.f32 %v1840_v44, %v4344_v51  ;;  %v73_v62 = vcvt.s32.f32 %v4442_v39  ;;  %v3695_v51 = vmov 9  }
 0x4bd   :  { %3526 = vset.pattern.permute.xlu1 %v3695_v51  ;;  %3528 = vset.pattern.permute.xlu0 %v3695_v51 }
 0x4be   :  { %2174 = vperm.xlu1 %3526, %v73_v62   ;;  %3527 = vset.pattern.permute.xlu2 %v3695_v51 }
 0x4bf   :  { %2164 = vperm.xlu0 %3528, %v71_v35   ;;  %2169 = vperm.xlu2 %3527, %v72_v58  }
 0x4c3   :  { %v1818_v49 = vpop.f32.mrf.mxu2  ;;  %v1842_v53 = vpop.f32.mrf.mxu3 }
 0x4c4   :  { %v1858_v14 = vmul.f32 %v1818_v49, %v4328_v63  ;;  %v1859_v25 = vmul.f32 %v1842_v53, %v4346_v60  ;;  %v3544_v63 = vld [vmem:[%s4985_s8] ss:$0 sm:$0xff] }
 0x4c6   :  { %v1864_v40 = vpack.c.bf16 %v1858_v14, %v1856_v15  ;;  %v1865_v48 = vpack.c.bf16 %v1859_v25, %v1857_v46  ;;  %2159 = vperm.xlu1 %3526, %v70_v4   ;;  %v3545_v14 = vld [vmem:[%s4985_s8 + $0x1] ss:$0 sm:$0xff] }
 0x4c7   :  { %2154 = vperm.xlu2 %3527, %v69_v1  }
 0x4c8   :  { %2013 = vmatmul.bf16.gmra.mxu0 %v1864_v40  ;;  %2037 = vmatmul.bf16.gmra.mxu1 %v1865_v48 }
 0x4ce   :  { %2149 = vperm.xlu1 %3526, %v68_v61  }
 0x519   :  { %v2170_v17 = vpop.permute.xlu2 %2169 }
 0x51a   :  { %v2181_v21 = vmul.f32 %v2170_v17, %v4655_v19 }
 0x525   :  { %v2004_v60 = vpop.f32.mrf.mxu0  ;;  %v2028_v26 = vpop.f32.mrf.mxu1 }
 0x526   :  { %v2005_v45 = vadd.f32 %v3544_v63, %v2004_v60 }
 0x528   :  { %v2029_v0 = vadd.f32 %v2028_v26, %v2005_v45 }
 0x52a   :  { %3595 = vtanh.f32 %v2029_v0 }
 0x52d   :  { %v2006_v52 = vpop.f32.mrf.mxu0  ;;  %v2030_v8 = vpop.f32.mrf.mxu1 }
 0x52e   :  { %v2007_v55 = vadd.f32 %v3544_v63, %v2006_v52 }
 0x530   :  { %v2031_v39 = vadd.f32 %v2030_v8, %v2007_v55  ;;  %v4630_v7 = vpop.eup %3595  ;;  %v2175_v44 = vpop.permute.xlu1 %2174 }
 0x531   :  { %v2182_v49 = vmul.f32 %v2175_v44, %v4660_v36 }
 0x532   :  { %3597 = vtanh.f32 %v2031_v39 }
 0x533   :  { %v3529_v53 = vpack.i.bf16 %v2181_v21, %v2182_v49 }
 0x535   :  { %v2009_v33 = vpop.f32.mrf.mxu0  ;;  %v2033_v38 = vpop.f32.mrf.mxu1  ;;  %3530 = vrot.lane.b32.xlu0 %v3529_v53, %s3683_s14 }
 0x536   :  { %v2010_v9 = vadd.f32 %v3544_v63, %v2009_v33  ;;  %v4677_v33 = vld [vmem:[%s4988_s11 + $0x8] sm:$0xff] }
 0x538   :  { %v4632_v11 = vpop.eup %3597  ;;  %v2034_v10 = vadd.f32 %v2033_v38, %v2010_v9  ;;  %v2160_v52 = vpop.permute.xlu1 %2159 }
 0x539   :  { %v2049_v13 = vpack.c.bf16 %v4632_v11, %v4630_v7  ;;  %v2155_v38 = vpop.permute.xlu2 %2154 }
 0x53a   :  { %3599 = vtanh.f32 %v2034_v10 }
 0x53b   :  { %3249 = vmatmul.msk.bf16.vlgmr.msra.gmra.mxu2 %vm2069_vm9, %v2049_v13  ;;  %v4682_v13 = vld [vmem:[%s4988_s11] sm:$0xff] }
 0x53d   :  { %v2011_v30 = vpop.f32.mrf.mxu0  ;;  %v2035_v56 = vpop.f32.mrf.mxu1 }
 0x53e   :  { %v2012_v57 = vadd.f32 %v3544_v63, %v2011_v30 }
 0x540   :  { %v2036_v41 = vadd.f32 %v2035_v56, %v2012_v57  ;;  %v4638_v24 = vpop.eup %3599  ;;  %v2150_v9 = vpop.permute.xlu1 %2149  ;;  %v2178_v56 = vmul.f32 %v2155_v38, %v4677_v33 }
 0x541   :  { %v2177_v57 = vmul.f32 %v2150_v9, %v4682_v13  ;;  %v4717_v9 = vld [vmem:[%s4986_s9] sm:$0x3f]  ;;  %s3698_s9 = smov 24  }
 0x542   :  { %3601 = vtanh.f32 %v2036_v41 }
 0x545   :  { %v2014_v18 = vpop.f32.mrf.mxu0  ;;  %v2038_v54 = vpop.f32.mrf.mxu1 }
 0x546   :  { %v2015_v28 = vadd.f32 %v3544_v63, %v2014_v18 }
 0x548   :  { %v4640_v27 = vpop.eup %3601  ;;  %v2039_v5 = vadd.f32 %v2038_v54, %v2015_v28  ;;  %v3539_v54 = vpack.i.bf16 %v2177_v57, %v2178_v56 }
 0x549   :  { %v2050_v29 = vpack.c.bf16 %v4640_v27, %v4638_v24 }
 0x54a   :  { %3603 = vtanh.f32 %v2039_v5 }
 0x54b   :  { %3250 = vmatmul.msk.bf16.gmra.mxu2 %vm2069_vm9, %v2050_v29 }
 0x54d   :  { %v2016_v34 = vpop.f32.mrf.mxu0  ;;  %v2040_v42 = vpop.f32.mrf.mxu1 }
 0x54e   :  { %v2017_v37 = vadd.f32 %v3544_v63, %v2016_v34  ;;  %v4692_v34 = vld [vmem:[%s4988_s11 + $0x10] sm:$0xff] }
 0x550   :  { %v2041_v43 = vadd.f32 %v2040_v42, %v2017_v37  ;;  %v4645_v32 = vpop.eup %3603  ;;  %v4697_v37 = vld [vmem:[%s4988_s11 + $0x18] sm:$0xff]  ;;  %v2165_v42 = vpop.permute.xlu0 %2164 }
 0x552   :  { %3605 = vtanh.f32 %v2041_v43  ;;  %v2179_v43 = vmul.f32 %v2160_v52, %v4692_v34 }
 0x558   :  { %v4647_v3 = vpop.eup %3605 }
 0x559   :  { %v2051_v6 = vpack.c.bf16 %v4647_v3, %v4645_v32 }
 0x55b   :  { %3251 = vmatmul.msk.bf16.gmra.mxu2 %vm2069_vm9, %v2051_v6  ;;  %v2180_v6 = vmul.f32 %v2165_v42, %v4697_v37 }
 0x55d   :  { %v3534_v44 = vpack.i.bf16 %v2179_v43, %v2180_v6 }
 0x5a7   :  { %v3531_v53 = vpop.permute.xlu0 %3530 }
 0x5be   :  { %v2088_v15 = vpop.f32.mrf.mxu2 }
 0x5bf   :  { %v2089_v30 = vadd.f32 %v3545_v14, %v2088_v15 }
 0x5c6   :  { %v2090_v46 = vpop.f32.mrf.mxu2 }
 0x5c7   :  { %v2091_v61 = vadd.f32 %v3545_v14, %v2090_v46 }
 0x5ce   :  { %v2093_v25 = vpop.f32.mrf.mxu2 }
 0x5cf   :  { %v2094_v40 = vadd.f32 %v3545_v14, %v2093_v25 }
 0x5d1   :  { %3607 = vtanh.f32 %v2094_v40 }
 0x5d6   :  { %v2095_v48 = vpop.f32.mrf.mxu2 }
 0x5d7   :  { %v3608_v50 = vpop.eup %3607  ;;  %v2096_v62 = vadd.f32 %v3545_v14, %v2095_v48  ;;  %v3533_v48 = vunpack.i.h.bf16 %v3531_v53 }
 0x5d8   :  { %v2112_v51 = vmul.f32 %v3608_v50, %v3546_v12 }
 0x5d9   :  { %3609 = vtanh.f32 %v2096_v62 }
 0x5da   :  { %v2122_v63 = vsel %vm2069_vm9, %v2112_v51, 0.0 }
 0x5db   :  { %2123 = vadd.xlane.f32.xlu2 %v2122_v63 }
 0x5de   :  { %v2098_v60 = vpop.f32.mrf.mxu2 }
 0x5df   :  { %v3610_v26 = vpop.eup %3609  ;;  %v2099_v45 = vadd.f32 %v3545_v14, %v2098_v60 }
 0x5e0   :  { %v2113_v4 = vmul.f32 %v3610_v26, %v3546_v12 }
 0x5e1   :  { %3611 = vtanh.f32 %v2099_v45 }
 0x5e2   :  { %v2125_v0 = vsel %vm2069_vm9, %v2113_v4, 0.0 }
 0x5e3   :  { %2126 = vadd.xlane.f32.xlu0 %v2125_v0 }
 0x5e6   :  { %v2100_v8 = vpop.f32.mrf.mxu2 }
 0x5e7   :  { %v3612_v55 = vpop.eup %3611  ;;  %v2101_v39 = vadd.f32 %v3545_v14, %v2100_v8  ;;  %v3532_v14 = vunpack.i.l.bf16 %v3531_v53 }
 0x5e8   :  { %v2114_v35 = vmul.f32 %v3612_v55, %v3546_v12 }
 0x5e9   :  { %3613 = vtanh.f32 %v2101_v39 }
 0x5ea   :  { %v2128_v58 = vsel %vm2069_vm9, %v2114_v35, 0.0  ;;  %3615 = vtanh.f32 %v2091_v61 }
 0x5eb   :  { %2129 = vadd.xlane.f32.xlu1 %v2128_v58  ;;  %3617 = vtanh.f32 %v2089_v30  ;;  %v2237_v30 = vcvt.s32.f32 %v3855_v20 }
 0x5ef   :  { %v3614_v1 = vpop.eup %3613 }
 0x5f0   :  { %v2115_v10 = vmul.f32 %v3614_v1, %v3546_v12  ;;  %v3616_v18 = vpop.eup %3615 }
 0x5f1   :  { %v2111_v28 = vmul.f32 %v3616_v18, %v3546_v12  ;;  %v3618_v5 = vpop.eup %3617 }
 0x5f2   :  { %v2131_v41 = vsel %vm2069_vm9, %v2115_v10, 0.0  ;;  %v2110_v17 = vmul.f32 %v3618_v5, %v3546_v12 }
 0x5f3   :  { %2132 = vadd.xlane.f32.xlu2 %v2131_v41  ;;  %v2119_v29 = vsel %vm2069_vm9, %v2111_v28, 0.0 }
 0x5f4   :  { %v2116_v21 = vsel %vm2069_vm9, %v2110_v17, 0.0 }
 0x5f7   :  { %3540 = vrot.lane.b32.xlu0 %v3539_v54, %s3683_s14 }
 0x5fb   :  { %2120 = vadd.xlane.f32.xlu2 %v2119_v29 }
 0x603   :  { %2117 = vadd.xlane.f32.xlu2 %v2116_v21 }
 0x604   :  { %3535 = vrot.lane.b32.xlu1 %v3534_v44, %s3683_s14 }
 0x64e   :  { %v2124_v49 = vpop.xlane.xlu2 %2123 }
 0x64f   :  { %v2143_v52 = vmul.f32 %v4692_v34, %v2124_v49 }
 0x656   :  { %v2127_v51 = vpop.xlane.xlu0 %2126 }
 0x657   :  { %v2144_v60 = vmul.f32 %v4697_v37, %v2127_v51 }
 0x65e   :  { %v2130_v15 = vpop.xlane.xlu1 %2129 }
 0x65f   :  { %v2145_v25 = vmul.f32 %v4655_v19, %v2130_v15 }
 0x661   :  { %v2211_v12 = vsel %vm1615_vm3, %v2145_v25, %v3533_v48 }
 0x666   :  { %v2133_v46 = vpop.xlane.xlu2 %2132 }
 0x667   :  { %v2146_v40 = vmul.f32 %v4660_v36, %v2133_v46 }
 0x669   :  { %v2212_v50 = vsel %vm1615_vm3, %v2146_v40, %v3532_v14  ;;  %v3541_v4 = vpop.permute.xlu0 %3540 }
 0x66a   :  { %2227 = vmatpush.msra.mxu3 %v2212_v50  ;;  %v3542_v39 = vunpack.i.l.bf16 %v3541_v4  ;;  %v3543_v58 = vunpack.i.h.bf16 %v3541_v4 }
 0x66c   :  { %2228 = vmatpush.msra.mxu3 %v2211_v12 }
 0x66e   :  { %v2121_v62 = vpop.xlane.xlu2 %2120 }
 0x66f   :  { %v2142_v8 = vmul.f32 %v4677_v33, %v2121_v62 }
 0x671   :  { %v2208_v38 = vsel %vm1615_vm3, %v2142_v8, %v3542_v39 }
 0x676   :  { %v3536_v63 = vpop.permute.xlu1 %3535  ;;  %v2118_v0 = vpop.xlane.xlu2 %2117 }
 0x677   :  { %v3538_v26 = vunpack.i.h.bf16 %v3536_v63  ;;  %v3537_v45 = vunpack.i.l.bf16 %v3536_v63  ;;  %v2141_v35 = vmul.f32 %v4682_v13, %v2118_v0 }
 0x679   :  { %v2210_v55 = vsel %vm1615_vm3, %v2144_v60, %v3537_v45  ;;  %v2209_v61 = vsel %vm1615_vm3, %v2143_v52, %v3538_v26  ;;  %v2207_v1 = vsel %vm1615_vm3, %v2141_v35, %v3543_v58 }
 0x67a   :  { %2229 = vmatpush.msra.mxu3 %v2210_v55 }
 0x67c   :  { %2230 = vmatpush.msra.mxu3 %v2209_v61  ;;  %v2274_v61 = vld [vmem:[%s4987_s10] sm:$0xff] }
 0x67e   :  { %2231 = vmatpush.msra.mxu3 %v2208_v38 }
 0x680   :  { %2232 = vmatpush.msra.mxu3 %v2207_v1 }
 0x681   :  { %3252 = vmatmul.msk.f32.vlgmr.msra.gmra.mxu3 %vm2213_vm11, %v4717_v9 }
 0x704   :  { %v2234_v10 = vpop.f32.mrf.mxu3 }
 0x705   :  { %2239 = vrot.lane.b32.xlu2 %v2234_v10, %s3696_s17 }
 0x70d   :  { %2378 = vrot.lane.b32.xlu2 %v4580_v16, %s3683_s14 }
 0x715   :  { %2396 = vrot.lane.b32.xlu2 %v4580_v16, %s3697_s18 }
 0x71d   :  { %2376 = vrot.lane.b32.xlu2 %v4577_v59, %s3683_s14 }
 0x725   :  { %2394 = vrot.lane.b32.xlu2 %v4577_v59, %s3697_s18 }
 0x72d   :  { %2374 = vrot.lane.b32.xlu2 %v4561_v31, %s3683_s14 }
 0x735   :  { %2412 = vrot.lane.b32.xlu2 %v4577_v59, %s3698_s9 }
 0x73d   :  { %2428 = vrot.lane.b32.xlu2 %v4561_v31, %s3699_s5 }
 0x745   :  { %2446 = vrot.lane.b32.xlu2 %v4561_v31, %s3700_s2 }
 0x74d   :  { %2388 = vrot.lane.b32.xlu2 %v4514_v47, %s3697_s18 }
 0x755   :  { %2368 = vrot.lane.b32.xlu2 %v4511_v22, %s3683_s14 }
 0x75d   :  { %2444 = vrot.lane.b32.xlu2 %v4558_v2, %s3700_s2 }
 0x75f   :  { %v2240_v56 = vpop.permute.xlu2 %2239 }
 0x760   :  { %vm2242_vm12 = vcmp.lt.f32.partialorder %v2237_v30, %v2240_v56  ;;  %v2275_v30 = vld [vmem:[%s4987_s10 + $0x8] sm:$0xff] }
 0x761   :  { %v3253_v57 = vsel %vm2242_vm12, 1.0, %v3692_v23 }
 0x762   :  { %vm2245_vm14 = vcmp.gt.f32.partialorder %v3253_v57, 0.0 }
 0x763   :  { %v2246_v41 = vsel %vm2245_vm14, %v2234_v10, -1e+30 }
 0x764   :  { %v2248_v18 = vsel %vm2247_vm13, %v2246_v41, -inf }
 0x765   :  { %2440 = vrot.lane.b32.xlu2 %v4511_v22, %s3700_s2  ;;  %2249 = vmax.xlane.f32.xlu1 %v2248_v18 }
 0x767   :  { %v2379_v54 = vpop.permute.xlu2 %2378 }
 0x768   :  { %v2499_v20 = vsel %vm1615_vm3, %v4580_v16, %v2379_v54  ;;  %v2277_v54 = vld [vmem:[%s4987_s10 + $0x18] sm:$0xff] }
 0x76f   :  { %v2397_v28 = vpop.permute.xlu2 %2396 }
 0x770   :  { %v2506_v29 = vsel %vm2500_vm15, %v2499_v20, %v2397_v28 }
 0x777   :  { %v2377_v5 = vpop.permute.xlu2 %2376 }
 0x778   :  { %v2498_v23 = vsel %vm1615_vm3, %v4577_v59, %v2377_v5 }
 0x77e   :  { %2414 = vrot.lane.b32.xlu1 %v4580_v16, %s3698_s9 }
 0x77f   :  { %v2395_v42 = vpop.permute.xlu2 %2394 }
 0x780   :  { %v2505_v43 = vsel %vm2500_vm15, %v2498_v23, %v2395_v42 }
 0x786   :  { %2450 = vrot.lane.b32.xlu1 %v4580_v16, %s3700_s2 }
 0x787   :  { %v2375_v14 = vpop.permute.xlu2 %2374 }
 0x788   :  { %v2497_v38 = vsel %vm1615_vm3, %v4561_v31, %v2375_v14 }
 0x78e   :  { %2430 = vrot.lane.b32.xlu1 %v4577_v59, %s3699_s5 }
 0x78f   :  { %v2413_v40 = vpop.permute.xlu2 %2412 }
 0x790   :  { %v2512_v48 = vsel %vm2507_vm0, %v2505_v43, %v2413_v40 }
 0x796   :  { %2372 = vrot.lane.b32.xlu1 %v4558_v2, %s3683_s14 }
 0x79e   :  { %2448 = vrot.lane.b32.xlu1 %v4577_v59, %s3700_s2 }
 0x7a6   :  { %2464 = vrot.lane.b32.xlu1 %v4561_v31, %s3701_s19 }
 0x7ae   :  { %2424 = vrot.lane.b32.xlu1 %v4514_v47, %s3699_s5 }
 0x7b6   :  { %2404 = vrot.lane.b32.xlu1 %v4511_v22, %s3698_s9 }
 0x7be   :  { %2480 = vrot.lane.b32.xlu1 %v4558_v2, %s3702_s3 }
 0x7c6   :  { %2422 = vrot.lane.b32.xlu1 %v4511_v22, %s3699_s5 }
 0x7ce   :  { %2460 = vrot.lane.b32.xlu1 %v4514_v47, %s3701_s19 }
 0x7d6   :  { %2478 = vrot.lane.b32.xlu1 %v4514_v47, %s3702_s3 }
 0x7d8   :  { %v2250_v6 = vpop.xlane.xlu1 %2249 }
 0x7d9   :  { %v2251_v17 = vsub.f32 %v2246_v41, %v2250_v6  ;;  %v2276_v41 = vld [vmem:[%s4987_s10 + $0x10] sm:$0xff] }
 0x7db   :  { %v2252_v21 = vmul.f32 1.442695, %v2251_v17 }
 0x7dd   :  { %3619 = vpow2.f32 %v2252_v21 }
 0x7e3   :  { %v3620_v44 = vpop.eup %3619 }
 0x7e4   :  { %v2254_v49 = vmul.f32 %v3620_v44, %v3253_v57 }
 0x7e6   :  { %v2255_v53 = vsel %vm2247_vm13, %v2254_v49, 0.0 }
 0x7e7   :  { %2256 = vadd.xlane.f32.xlu0 %v2255_v53 }
 0x7f0   :  { %v2415_v15 = vpop.permute.xlu1 %2414 }
 0x7f1   :  { %v2513_v46 = vsel %vm2507_vm0, %v2506_v29, %v2415_v15  ;;  %v2278_v29 = vld [vmem:[%s4987_s10 + $0x20] sm:$0xff]  ;;  %v2279_v15 = vld [vmem:[%s4987_s10 + $0x28] sm:$0xff] }
 0x7f8   :  { %v2451_v25 = vpop.permute.xlu1 %2450 }
 0x7fb   :  { %2432 = vrot.lane.b32.xlu0 %v4580_v16, %s3699_s5 }
 0x800   :  { %v2431_v50 = vpop.permute.xlu1 %2430 }
 0x801   :  { %v4785_v12 = vsel %vm2069_vm9, %v2512_v48, %v2431_v50 }
 0x803   :  { %2392 = vrot.lane.b32.xlu0 %v4561_v31, %s3697_s18 }
 0x808   :  { %v2373_v5 = vpop.permute.xlu1 %2372 }
 0x80b   :  { %2468 = vrot.lane.b32.xlu0 %v4580_v16, %s3701_s19 }
 0x810   :  { %v2449_v42 = vpop.permute.xlu1 %2448 }
 0x811   :  { %v2525_v43 = vsel %vm2520_vm6, %v4785_v12, %v2449_v42 }
 0x813   :  { %2410 = vrot.lane.b32.xlu0 %v4561_v31, %s3698_s9 }
 0x81b   :  { %2486 = vrot.lane.b32.xlu0 %v4580_v16, %s3702_s3 }
 0x823   :  { %2390 = vrot.lane.b32.xlu0 %v4558_v2, %s3697_s18 }
 0x82b   :  { %2466 = vrot.lane.b32.xlu0 %v4577_v59, %s3701_s19 }
 0x833   :  { %2370 = vrot.lane.b32.xlu0 %v4514_v47, %s3683_s14 }
 0x83b   :  { %2408 = vrot.lane.b32.xlu0 %v4558_v2, %s3698_s9 }
 0x843   :  { %2484 = vrot.lane.b32.xlu0 %v4577_v59, %s3702_s3 }
 0x84b   :  { %2426 = vrot.lane.b32.xlu0 %v4558_v2, %s3699_s5 }
 0x853   :  { %2406 = vrot.lane.b32.xlu0 %v4514_v47, %s3698_s9 }
 0x85a   :  { %v2257_v16 = vpop.xlane.xlu0 %2256 }
 0x85b   :  { %v2258_v62 = vmax.f32 %v2257_v16, 1e-09  ;;  %2482 = vrot.lane.b32.xlu0 %v4561_v31, %s3702_s3 }
 0x85d   :  { %3621 = vrcp.f32 %v2258_v62  ;;  %v2270_v26 = vand.u32 2147483648, %v2258_v62  ;;  %v2268_v45 = vand.u32 2147483647, %v2258_v62  ;;  %vm2264_vm10 = vweird.f32 %v2258_v62 }
 0x85f   :  { %v2271_v0 = vor.u32 1.1754944e-38, %v2270_v26  ;;  %vm2269_vm4 = vcmp.eq.f32.partialorder %v2268_v45, 8.507059e+37 }
 0x863   :  { %v3622_v51 = vpop.eup %3621  ;;  %2386 = vrot.lane.b32.xlu0 %v4511_v22, %s3697_s18 }
 0x864   :  { %v2260_v63 = vmul.f32 %v3622_v51, %v2258_v62  ;;  %vm2265_vm1 = vweird.f32 %v3622_v51 }
 0x865   :  { %vm2266_vm2 = vmor %vm2264_vm10, %vm2265_vm1 }
 0x866   :  { %v2261_v60 = vsub.f32 1.0, %v2260_v63 }
 0x868   :  { %v2262_v59 = vmul.f32 %v3622_v51, %v2261_v60 }
 0x86a   :  { %v2263_v4 = vadd.f32 %v3622_v51, %v2262_v59  ;;  %v2465_v59 = vpop.permute.xlu1 %2464 }
 0x86b   :  { %2462 = vrot.lane.b32.xlu0 %v4558_v2, %s3701_s19 }
 0x86c   :  { %v2267_v52 = vsel %vm2266_vm2, %v3622_v51, %v2263_v4 }
 0x86d   :  { %v2433_v8 = vpop.permute.xlu0 %2432  ;;  %v2272_v55 = vsel %vm2269_vm4, %v2271_v0, %v2267_v52 }
 0x86e   :  { %v2519_v39 = vsel %vm2069_vm9, %v2513_v46, %v2433_v8  ;;  %v2273_v35 = vmul.f32 %v2272_v55, %v2254_v49  ;;  %v2429_v49 = vpop.permute.xlu2 %2428 }
 0x86f   :  { %v2526_v58 = vsel %vm2520_vm6, %v2519_v39, %v2451_v25 }
 0x870   :  { %3254 = vmatpush.msk.msrb.mxu3 %vm2299_vm5, %v2273_v35 }
 0x871   :  { %3255 = vmatmul.msk.f32.vlgmr.msrb.gmra.mxu3 %vm2280_vm7, %v2274_v61  ;;  %v2496_v61 = vsel %vm1615_vm3, %v4558_v2, %v2373_v5 }
 0x872   :  { %v2425_v0 = vpop.permute.xlu1 %2424 }
 0x873   :  { %2442 = vrot.lane.b32.xlu0 %v4514_v47, %s3700_s2 }
 0x875   :  { %v2393_v1 = vpop.permute.xlu0 %2392 }
 0x876   :  { %v2504_v10 = vsel %vm2500_vm15, %v2497_v38, %v2393_v1  ;;  %v2447_v46 = vpop.permute.xlu2 %2446 }
 0x879   :  { %3256 = vmatmul.msk.f32.gmra.mxu3 %vm2280_vm7, %v2275_v30 }
 0x87a   :  { %v4871_v39 = vpop.permute.xlu1 %2404 }
 0x87d   :  { %v2469_v56 = vpop.permute.xlu0 %2468 }
 0x87e   :  { %v2532_v57 = vsel %vm2213_vm11, %v2526_v58, %v2469_v56  ;;  %v2389_v40 = vpop.permute.xlu2 %2388 }
 0x881   :  { %3257 = vmatmul.msk.f32.gmra.mxu3 %vm2280_vm7, %v2276_v41 }
 0x885   :  { %v2411_v18 = vpop.permute.xlu0 %2410 }
 0x886   :  { %v4836_v31 = vsel %vm2507_vm0, %v2504_v10, %v2411_v18  ;;  %v2369_v62 = vpop.permute.xlu2 %2368 }
 0x887   :  { %v2494_v51 = vsel %vm1615_vm3, %v4511_v22, %v2369_v62 }
 0x889   :  { %3258 = vmatmul.msk.f32.gmra.mxu3 %vm2280_vm7, %v2277_v54 }
 0x88d   :  { %v2487_v20 = vpop.permute.xlu0 %2486 }
 0x88e   :  { %v4843_v28 = vsel %vm2533_vm8, %v2532_v57, %v2487_v20  ;;  %v2445_v57 = vpop.permute.xlu2 %2444  ;;  %v2481_v20 = vpop.permute.xlu1 %2480 }
 0x891   :  { %3259 = vmatmul.msk.f32.gmra.mxu3 %vm2280_vm7, %v2278_v29 }
 0x895   :  { %v2391_v23 = vpop.permute.xlu0 %2390 }
 0x896   :  { %v2503_v38 = vsel %vm2500_vm15, %v2496_v61, %v2391_v23  ;;  %v2542_v23 = vld [vmem:[%s4989_s12 + $0x10] sm:$0xff] }
 0x899   :  { %3260 = vmatmul.msk.f32.gmra.mxu3 %vm2280_vm7, %v2279_v15  ;;  %v2544_v15 = vld [vmem:[%s4989_s12 + $0x20] sm:$0xff] }
 0x89d   :  { %v2467_v6 = vpop.permute.xlu0 %2466 }
 0x89e   :  { %v2531_v17 = vsel %vm2213_vm11, %v2525_v43, %v2467_v6 }
 0x8a5   :  { %v2371_v21 = vpop.permute.xlu0 %2370 }
 0x8a6   :  { %v2495_v25 = vsel %vm1615_vm3, %v4514_v47, %v2371_v21  ;;  %v2545_v21 = vld [vmem:[%s4989_s12 + $0x28] sm:$0xff] }
 0x8a7   :  { %v2502_v50 = vsel %vm2500_vm15, %v2495_v25, %v2389_v40  ;;  %v2517_v25 = vsel %vm2069_vm9, %v4836_v31, %v2429_v49  ;;  %v2423_v49 = vpop.permute.xlu1 %2422 }
 0x8ad   :  { %v2409_v44 = vpop.permute.xlu0 %2408 }
 0x8ae   :  { %v2510_v1 = vsel %vm2507_vm0, %v2503_v38, %v2409_v44  ;;  %v2551_v44 = vmul.f32 %v2545_v21, %v4843_v28  ;;  %v2543_v28 = vld [vmem:[%s4989_s12 + $0x18] sm:$0xff] }
 0x8b5   :  { %v2485_v53 = vpop.permute.xlu0 %2484 }
 0x8bd   :  { %v2427_v14 = vpop.permute.xlu0 %2426 }
 0x8be   :  { %v2516_v30 = vsel %vm2069_vm9, %v2510_v1, %v2427_v14  ;;  %v2538_v14 = vsel %vm2533_vm8, %v2531_v17, %v2485_v53 }
 0x8bf   :  { %v2523_v41 = vsel %vm2520_vm6, %v2516_v30, %v2445_v57  ;;  %v2550_v40 = vmul.f32 %v2544_v15, %v2538_v14 }
 0x8c5   :  { %v2407_v48 = vpop.permute.xlu0 %2406 }
 0x8c6   :  { %v4860_v12 = vsel %vm2507_vm0, %v2502_v50, %v2407_v48 }
 0x8cd   :  { %v2483_v16 = vpop.permute.xlu0 %2482 }
 0x8d5   :  { %v2387_v63 = vpop.permute.xlu0 %2386 }
 0x8d6   :  { %v4865_v60 = vsel %vm2500_vm15, %v2494_v51, %v2387_v63  ;;  %v2441_v51 = vpop.permute.xlu2 %2440 }
 0x8dd   :  { %v2463_v56 = vpop.permute.xlu0 %2462 }
 0x8de   :  { %v2529_v18 = vsel %vm2213_vm11, %v2523_v41, %v2463_v56 }
 0x8df   :  { %v2536_v29 = vsel %vm2533_vm8, %v2529_v18, %v2481_v20 }
 0x8e0   :  { %v2548_v42 = vmul.f32 %v2542_v23, %v2536_v29 }
 0x8f4   :  { %v2320_v26 = vpop.f32.mrf.mxu3 }
 0x8f5   :  { %v2338_v43 = vmul.f32 %v2320_v26, %v4682_v13 }
 0x8f7   :  { %v2344_v6 = vsel %vm1615_vm3, %v2338_v43, 0.0 }
 0x8fc   :  { %v2323_v45 = vpop.f32.mrf.mxu3 }
 0x8fd   :  { %v2339_v47 = vmul.f32 %v2323_v45, %v4677_v33 }
 0x8ff   :  { %v2347_v4 = vsel %vm1615_vm3, %v2339_v47, 0.0  ;;  %v2443_v47 = vpop.permute.xlu0 %2442 }
 0x900   :  { %2348 = vadd.xlane.f32.xlu0 %v2347_v4  ;;  %v2515_v4 = vsel %vm2069_vm9, %v4860_v12, %v2425_v0  ;;  %v2541_v12 = vld [vmem:[%s4989_s12 + $0x8] sm:$0xff] }
 0x904   :  { %v2326_v52 = vpop.f32.mrf.mxu3 }
 0x905   :  { %v2340_v8 = vmul.f32 %v2326_v52, %v4692_v34  ;;  %v2522_v52 = vsel %vm2520_vm6, %v2515_v4, %v2443_v47 }
 0x907   :  { %v2350_v55 = vsel %vm1615_vm3, %v2340_v8, 0.0 }
 0x908   :  { %2351 = vadd.xlane.f32.xlu2 %v2350_v55 }
 0x90c   :  { %v2329_v35 = vpop.f32.mrf.mxu3 }
 0x90d   :  { %v2341_v58 = vmul.f32 %v2329_v35, %v4697_v37 }
 0x90f   :  { %v2353_v10 = vsel %vm1615_vm3, %v2341_v58, 0.0 }
 0x910   :  { %2354 = vadd.xlane.f32.xlu1 %v2353_v10 }
 0x914   :  { %2476 = vrot.lane.b32.xlu0 %v4511_v22, %s3702_s3  ;;  %v2332_v2 = vpop.f32.mrf.mxu3 }
 0x915   :  { %v2342_v54 = vmul.f32 %v2332_v2, %v4655_v19 }
 0x917   :  { %v2356_v5 = vsel %vm1615_vm3, %v2342_v54, 0.0 }
 0x918   :  { %2357 = vadd.xlane.f32.xlu1 %v2356_v5 }
 0x91c   :  { %2598 = vrot.lane.b32.xlu0 %v2548_v42, %s3700_s2  ;;  %v2335_v17 = vpop.f32.mrf.mxu3 }
 0x91d   :  { %v2343_v53 = vmul.f32 %v2335_v17, %v4660_v36 }
 0x91f   :  { %v2359_v31 = vsel %vm1615_vm3, %v2343_v53, 0.0  ;;  %vm2624_vm3 = vcmask 850944  }
 0x920   :  { %2458 = vrot.lane.b32.xlu2 %v4511_v22, %s3701_s19  ;;  %2345 = vadd.xlane.f32.xlu1 %v2344_v6  ;;  %v2524_v22 = vsel %vm2520_vm6, %v2517_v25, %v2447_v46  ;;  %v2461_v46 = vpop.permute.xlu1 %2460  ;;  %s2659_s19 = sshll.u32 %s4990_s13, 4  ;;  %s2660_s19 = int_to_ptr.hbm [resolvable:$true] %s2659_s19 }
 0x921   :  { %v2530_v48 = vsel %vm2213_vm11, %v2524_v22, %v2465_v59  ;;  %v2528_v35 = vsel %vm2213_vm11, %v2522_v52, %v2461_v46 }
 0x922   :  { %v2537_v50 = vsel %vm2533_vm8, %v2530_v48, %v2483_v16 }
 0x923   :  { %v2549_v62 = vmul.f32 %v2543_v28, %v2537_v50 }
 0x928   :  { %2604 = vrot.lane.b32.xlu2 %v2551_v44, %s3700_s2  ;;  %v2479_v63 = vpop.permute.xlu1 %2478 }
 0x930   :  { %2602 = vrot.lane.b32.xlu2 %v2550_v40, %s3700_s2 }
 0x938   :  { %2600 = vrot.lane.b32.xlu2 %v2549_v62, %s3700_s2 }
 0x961   :  { %2360 = vadd.xlane.f32.xlu2 %v2359_v31 }
 0x973   :  { %v2349_v61 = vpop.xlane.xlu0 %2348 }
 0x974   :  { %v2559_v54 = vmul.f32 %v2349_v61, %v4677_v33 }
 0x97b   :  { %v2352_v26 = vpop.xlane.xlu2 %2351 }
 0x97c   :  { %v2560_v59 = vmul.f32 %v2352_v26, %v4692_v34  ;;  %v2508_v34 = vsel %vm2507_vm0, %v4865_v60, %v4871_v39  ;;  %v2540_v60 = vld [vmem:[%s4989_s12] sm:$0xff]  ;;  %s3703_s12 = smov [#allocation5]  }
 0x97d   :  { %v2514_v0 = vsel %vm2069_vm9, %v2508_v34, %v2423_v49  ;;  %s2657_s9 = sshll.u32 %s3703_s12, 4  ;;  %s2658_s9 = int_to_ptr.vmem [resolvable:$true] %s2657_s9 }
 0x97e   :  { %2574 = vrot.lane.b32.xlu1 %v2560_v59, %s3699_s5  ;;  %v2521_v1 = vsel %vm2520_vm6, %v2514_v0, %v2441_v51 }
 0x983   :  { %v2355_v45 = vpop.xlane.xlu1 %2354  ;;  %v2459_v38 = vpop.permute.xlu2 %2458 }
 0x984   :  { %v2561_v16 = vmul.f32 %v2355_v45, %v4697_v37  ;;  %v2535_v37 = vsel %vm2533_vm8, %v2528_v35, %v2479_v63  ;;  %v2527_v10 = vsel %vm2213_vm11, %v2521_v1, %v2459_v38  ;;  %v2555_v23 = vmul.f32 %v4640_v27, %v2355_v45 }
 0x985   :  { %v2547_v58 = vmul.f32 %v2541_v12, %v2535_v37  ;;  %v2554_v27 = vmul.f32 %v4638_v24, %v2352_v26 }
 0x986   :  { %2576 = vrot.lane.b32.xlu0 %v2561_v16, %s3699_s5 }
 0x98b   :  { %v2358_v8 = vpop.xlane.xlu1 %2357  ;;  %v2605_v56 = vpop.permute.xlu2 %2604 }
 0x98c   :  { %v2562_v55 = vmul.f32 %v2358_v8, %v4655_v19  ;;  %v2477_v19 = vpop.permute.xlu0 %2476  ;;  %v2556_v21 = vmul.f32 %v4645_v32, %v2358_v8  ;;  %v2553_v32 = vmul.f32 %v4632_v11, %v2349_v61 }
 0x98d   :  { %v2534_v39 = vsel %vm2533_vm8, %v2527_v10, %v2477_v19 }
 0x98e   :  { %2578 = vrot.lane.b32.xlu0 %v2562_v55, %s3699_s5  ;;  %v2546_v30 = vmul.f32 %v2540_v60, %v2534_v39 }
 0x993   :  { %v2603_v57 = vpop.permute.xlu2 %2602  ;;  %v2346_v20 = vpop.xlane.xlu1 %2345 }
 0x994   :  { %v2558_v29 = vmul.f32 %v2346_v20, %v4682_v13  ;;  %v2599_v5 = vpop.permute.xlu0 %2598  ;;  %v2552_v62 = vmul.f32 %v4630_v7, %v2346_v20 }
 0x996   :  { %2596 = vrot.lane.b32.xlu0 %v2547_v58, %s3700_s2 }
 0x99b   :  { %v2601_v41 = vpop.permute.xlu2 %2600 }
 0x99e   :  { %2594 = vrot.lane.b32.xlu0 %v2546_v30, %s3700_s2 }
 0x9d4   :  { %v2361_v18 = vpop.xlane.xlu2 %2360 }
 0x9d5   :  { %v2563_v2 = vmul.f32 %v2361_v18, %v4660_v36  ;;  %v2557_v33 = vmul.f32 %v4647_v3, %v2361_v18 }
 0x9d7   :  { %2580 = vrot.lane.b32.xlu2 %v2563_v2, %s3699_s5 }
 0x9df   :  { %2572 = vrot.lane.b32.xlu2 %v2559_v54, %s3699_s5 }
 0x9e7   :  { %2570 = vrot.lane.b32.xlu2 %v2558_v29, %s3699_s5 }
 0x9f0   :  { %v2575_v14 = vpop.permute.xlu1 %2574 }
 0x9f1   :  { %v2614_v22 = vsel %vm2069_vm9, %v2554_v27, %v2575_v14 }
 0x9f2   :  { %v2620_v28 = vsel %vm2520_vm6, %v2614_v22, %v2599_v5 }
 0x9f8   :  { %v2577_v42 = vpop.permute.xlu0 %2576 }
 0x9f9   :  { %v2615_v43 = vsel %vm2069_vm9, %v2555_v23, %v2577_v42 }
 0x9fa   :  { %v2621_v6 = vsel %vm2520_vm6, %v2615_v43, %v2601_v41 }
 0xa00   :  { %v2579_v36 = vpop.permute.xlu0 %2578 }
 0xa01   :  { %v2616_v15 = vsel %vm2069_vm9, %v2556_v21, %v2579_v36 }
 0xa02   :  { %v2622_v40 = vsel %vm2520_vm6, %v2616_v15, %v2603_v57 }
 0xa08   :  { %v2597_v3 = vpop.permute.xlu0 %2596 }
 0xa10   :  { %v2595_v53 = vpop.permute.xlu0 %2594 }
 0xa31   :  { %v2581_v44 = vpop.permute.xlu2 %2580 }
 0xa32   :  { %v2617_v13 = vsel %vm2069_vm9, %v2557_v33, %v2581_v44 }
 0xa33   :  { %v2623_v25 = vsel %vm2520_vm6, %v2617_v13, %v2605_v56 }
 0xa34   :  { %3261 = vmatpush.msk.msrb.mxu0 %vm2624_vm3, %v2623_v25 }
 0xa36   :  { %3262 = vmatpush.msk.msrb.mxu0 %vm2624_vm3, %v2622_v40 }
 0xa38   :  { %3263 = vmatpush.msk.msrb.mxu0 %vm2624_vm3, %v2621_v6 }
 0xa39   :  { %v2573_v48 = vpop.permute.xlu2 %2572 }
 0xa3a   :  { %v2613_v50 = vsel %vm2069_vm9, %v2553_v32, %v2573_v48  ;;  %3264 = vmatpush.msk.msrb.mxu0 %vm2624_vm3, %v2620_v28 }
 0xa3b   :  { %v2619_v24 = vsel %vm2520_vm6, %v2613_v50, %v2597_v3 }
 0xa3c   :  { %3265 = vmatpush.msk.msrb.mxu0 %vm2624_vm3, %v2619_v24 }
 0xa41   :  { %v2571_v17 = vpop.permute.xlu2 %2570 }
 0xa42   :  { %v2612_v11 = vsel %vm2069_vm9, %v2552_v62, %v2571_v17 }
 0xa43   :  { %v2618_v31 = vsel %vm2520_vm6, %v2612_v11, %v2595_v53 }
 0xa44   :  { %3266 = vmatpush.msk.msrb.mxu0 %vm2624_vm3, %v2618_v31 }
 0xa45   :  { %3267 = vmatmul.msk.f32.vlgmr.msrb.gmra.mxu0 %vm2213_vm11, %v4717_v9 }
 0xac2   :  { %v2648_v7 = vpop.f32.mrf.mxu0 }
 0xac3   :  { %2651 = vst [vmem:[#allocation5] sm:$0x3f] %v2648_v7 }
 0xac4   :  { %2662 = dma.vmem_to_hbm [thread:$0]  %s2658_s9, 128, %s2660_s19, [#allocation4]  }
 0xac5   :  { %3679 = dma.done.wait [#allocation4], 128  }
 0xac6   :  { %3680 = vsyncadd [#allocation4], 4294967168 }
 0xac7   :  { %2667 = vsyncpa [#allocation3], 1 }
 0xac8   :  { %2668 = vsyncpa [#allocation4], 1 }

</bundles_post_ra>
